<compile_context>
chip_gen: v7x
topology: tpu7x:2x2x1
jax: 0.10.0
libtpu: 0.0.40
codegen_flags: <defaults>
</compile_context>

<pallas_src>
import math
import functools

import jax
import jax.numpy as jnp
from jax import lax
from jax.experimental import pallas as pl
from jax.experimental.pallas import tpu as pltpu

_VMEM_LIMIT = 32 * 1024 * 1024  # explicit, fits scoped VMEM on v5e/v6e/v7x


# ----------------------------- Pallas kernels -----------------------------

def _mha_ln_kernel(tgt_ref, qpos_ref, kin_ref, kpos_ref, vin_ref, mask_ref,
                   wq_ref, bq_ref, wk_ref, bk_ref, wv_ref, bv_ref,
                   wo_ref, bo_ref, g_ref, beta_ref, o_ref, *, num_heads, scale):
    """Fused: pos-add -> QKV proj -> per-head SDPA -> out proj -> residual -> LayerNorm.

    One grid step handles one batch element (grid axis marked "parallel")."""
    tgt = tgt_ref[0]                                               # (Q, D) f32 residual
    q_in = (tgt + qpos_ref[0]).astype(jnp.bfloat16)                # fused `tgt + query_pos`
    k_in = (kin_ref[0] + kpos_ref[0]).astype(jnp.bfloat16)
    v_in = vin_ref[0].astype(jnp.bfloat16)

    q = jnp.dot(q_in, wq_ref[...], preferred_element_type=jnp.float32) + bq_ref[...]
    k = jnp.dot(k_in, wk_ref[...], preferred_element_type=jnp.float32) + bk_ref[...]
    v = jnp.dot(v_in, wv_ref[...], preferred_element_type=jnp.float32) + bv_ref[...]
    qb = q.astype(jnp.bfloat16)
    kb = k.astype(jnp.bfloat16)
    vb = v.astype(jnp.bfloat16)

    Q, D = q.shape
    dh = D // num_heads
    mask = mask_ref[0]                                             # (1, Lk) additive row
    dn = (((1,), (1,)), ((), ()))                                  # 'qd,kd->qk'

    # Heads are unrolled inside the kernel (Lk stays on lanes); per-head output is
    # folded directly into the output projection (no concat / head-merge transpose).
    attn = jnp.zeros((Q, D), jnp.float32)
    for h in range(num_heads):
        sl = slice(h * dh, (h + 1) * dh)
        s = lax.dot_general(qb[:, sl], kb[:, sl], dn,
                            preferred_element_type=jnp.float32) * scale + mask
        mx = jnp.max(s, axis=-1, keepdims=True)
        p = jnp.exp(s - mx)
        l = jnp.sum(p, axis=-1, keepdims=True)
        o_h = jnp.dot(p.astype(jnp.bfloat16), vb[:, sl],
                      preferred_element_type=jnp.float32)
        o_h = o_h * pl.reciprocal(l, approx=True)                  # EUP, frees VPU slot
        attn = attn + jnp.dot(o_h.astype(jnp.bfloat16), wo_ref[sl, :],
                              preferred_element_type=jnp.float32)
    attn = attn + bo_ref[...]

    x = tgt + attn                                                 # residual add (fused)
    mu = jnp.mean(x, axis=-1, keepdims=True)
    var = jnp.mean((x - mu) ** 2, axis=-1, keepdims=True)
    o_ref[0] = (x - mu) * lax.rsqrt(var + 1e-5) * g_ref[...] + beta_ref[...]


def _mlp_ln_kernel(x_ref, w1_ref, b1_ref, w2_ref, b2_ref, g_ref, bt_ref, o_ref,
                   *, with_residual):
    """Fused: linear -> GELU -> linear -> (+residual) -> LayerNorm, tiled over rows."""
    x = x_ref[...]                                                 # (tm, K1) f32
    h = jnp.dot(x.astype(jnp.bfloat16), w1_ref[...],
                preferred_element_type=jnp.float32) + b1_ref[...]
    # TODO(synk): nn.GELU uses exact erf; tanh approximation used here (|err| ~ 1e-3).
    h = 0.5 * h * (1.0 + jnp.tanh(0.7978845608028654 * (h + 0.044715 * h * h * h)))
    y = jnp.dot(h.astype(jnp.bfloat16), w2_ref[...],
                preferred_element_type=jnp.float32) + b2_ref[...]
    if with_residual:
        y = y + x                                                  # residual (K1 == K2)
    mu = jnp.mean(y, axis=-1, keepdims=True)
    var = jnp.mean((y - mu) ** 2, axis=-1, keepdims=True)
    o_ref[...] = (y - mu) * lax.rsqrt(var + 1e-5) * g_ref[...] + bt_ref[...]


# ----------------------------- kernel wrappers -----------------------------

def _pick_tm(m, cap=256):
    """Largest multiple-of-8 tile dividing m, <= cap, leaving >= 2 grid blocks
    (so v7x can shard across its 2 TensorCores); falls back to the full extent."""
    if m <= 8:
        return m
    best = None
    t = 8
    while t <= min(cap, m // 2):
        if m % t == 0:
            best = t
        t += 8
    return best if best is not None else m


def mha_ln(tgt, qpos, kin, kpos, vin, mask_add, ap, ln_g, ln_b, num_heads):
    """LayerNorm(tgt + MHA(q=tgt+qpos, k=kin+kpos, v=vin, additive mask))."""
    B, Q, D = tgt.shape
    Lk = kin.shape[1]
    scale = 1.0 / math.sqrt(D // num_heads)
    kernel = functools.partial(_mha_ln_kernel, num_heads=num_heads, scale=scale)

    def full2(shape):
        return pl.BlockSpec(shape, lambda b: (0, 0))

    def batch3(l, d):
        return pl.BlockSpec((1, l, d), lambda b: (b, 0, 0))

    def shared3(l, d):
        return pl.BlockSpec((1, l, d), lambda b: (0, 0, 0))

    return pl.pallas_call(
        kernel,
        out_shape=jax.ShapeDtypeStruct((B, Q, D), jnp.float32),
        grid=(B,),
        in_specs=[batch3(Q, D), shared3(Q, D),               # tgt, qpos
                  batch3(Lk, D), shared3(Lk, D),             # kin, kpos
                  batch3(Lk, D), batch3(1, Lk),              # vin, mask (B,1,Lk)
                  full2((D, D)), full2((1, D)),              # wq, bq
                  full2((D, D)), full2((1, D)),              # wk, bk
                  full2((D, D)), full2((1, D)),              # wv, bv
                  full2((D, D)), full2((1, D)),              # wo, bo
                  full2((1, D)), full2((1, D))],             # ln gamma, beta
        out_specs=batch3(Q, D),
        compiler_params=pltpu.CompilerParams(
            dimension_semantics=("parallel",),
            vmem_limit_bytes=_VMEM_LIMIT),
    )(tgt, qpos, kin, kpos, vin, mask_add,
      ap['wq'], ap['bq'], ap['wk'], ap['bk'], ap['wv'], ap['bv'], ap['wo'], ap['bo'],
      ln_g, ln_b)


def mlp_ln(x, w1, b1, w2, b2, g, bt, *, with_residual):
    """LayerNorm((residual?) + Linear(GELU(Linear(x)))) tiled over rows of x."""
    M, K1 = x.shape
    Kh = w1.shape[1]
    K2 = w2.shape[1]
    tm = _pick_tm(M)
    kernel = functools.partial(_mlp_ln_kernel, with_residual=with_residual)

    def full(shape):
        return pl.BlockSpec(shape, lambda i: (0, 0))

    return pl.pallas_call(
        kernel,
        out_shape=jax.ShapeDtypeStruct((M, K2), jnp.float32),
        grid=(M // tm,),
        in_specs=[pl.BlockSpec((tm, K1), lambda i: (i, 0)),
                  full((K1, Kh)), full((1, Kh)),
                  full((Kh, K2)), full((1, K2)),
                  full((1, K2)), full((1, K2))],
        out_specs=pl.BlockSpec((tm, K2), lambda i: (i, 0)),
        compiler_params=pltpu.CompilerParams(
            dimension_semantics=("parallel",),
            vmem_limit_bytes=_VMEM_LIMIT),
    )(x, w1, b1, w2, b2, g, bt)


# ----------------------------- model glue -----------------------------

def position_embedding_sine(size, num_pos_feats, temperature=10000.0):
    """DETR PositionEmbeddingSine(normalize=True), returned as (1, size*size, 2*npf)."""
    scale = 2.0 * math.pi
    eps = 1e-6
    ar = jnp.arange(1, size + 1, dtype=jnp.float32)
    y_embed = jnp.broadcast_to(ar[:, None], (size, size))
    x_embed = jnp.broadcast_to(ar[None, :], (size, size))
    y_embed = y_embed / (y_embed[-1:, :] + eps) * scale
    x_embed = x_embed / (x_embed[:, -1:] + eps) * scale
    i = jnp.arange(num_pos_feats)
    dim_t = temperature ** (2.0 * (i // 2).astype(jnp.float32) / num_pos_feats)
    pos_x = x_embed[:, :, None] / dim_t
    pos_y = y_embed[:, :, None] / dim_t
    pos_x = jnp.stack([jnp.sin(pos_x[:, :, 0::2]), jnp.cos(pos_x[:, :, 1::2])],
                      axis=3).reshape(size, size, -1)
    pos_y = jnp.stack([jnp.sin(pos_y[:, :, 0::2]), jnp.cos(pos_y[:, :, 1::2])],
                      axis=3).reshape(size, size, -1)
    pos = jnp.concatenate([pos_y, pos_x], axis=2).reshape(size * size, -1)
    return pos[None].astype(jnp.float32)


def transformer_decoder_forward(params, embeds, attn_mask, *,
                                embed_dim, num_heads, num_queries, depth):
    bs, len_src, latent = embeds.shape
    hw = int(math.sqrt(num_queries))
    patch_pos = position_embedding_sine(hw, embed_dim // 2)            # (1, Q, D)
    tgts = jnp.broadcast_to(params['tgt_embed'][None], (bs, num_queries, embed_dim))

    # Compact additive mask rows (B, 1, S); broadcast over heads & queries in-kernel
    # (never expanded to (B*num_heads, Q, S)).
    if attn_mask is not None:
        cross_mask = jnp.where(attn_mask[:, None, :], -1e9, 0.0).astype(jnp.float32)
    else:
        cross_mask = jnp.zeros((bs, 1, len_src), jnp.float32)
    self_mask = jnp.zeros((bs, 1, num_queries), jnp.float32)
    zero_kpos = jnp.zeros((1, len_src, embed_dim), jnp.float32)

    x_flat = embeds.reshape(bs * len_src, latent)
    for i in range(depth):
        ip = params['in_projs'][i]
        # in_proj = MLPBlock(latent, latent, out_dim=embed) -> LayerNorm(embed), fully fused
        memory = mlp_ln(x_flat, ip['w1'], ip['b1'], ip['w2'], ip['b2'],
                        ip['ln_g'], ip['ln_b'],
                        with_residual=False).reshape(bs, len_src, embed_dim)

        lp = params['layers'][i]
        if i != 0:   # with_self_attn = (i != 0), post-norm
            tgts = mha_ln(tgts, patch_pos, tgts, patch_pos, tgts, self_mask,
                          lp['self_attn'], lp['n1g'], lp['n1b'], num_heads)
        tgts = mha_ln(tgts, patch_pos, memory, zero_kpos, memory, cross_mask,
                      lp['cross_attn'], lp['n2g'], lp['n2b'], num_heads)
        tgts = mlp_ln(tgts.reshape(bs * num_queries, embed_dim),
                      lp['mlp_w1'], lp['mlp_b1'], lp['mlp_w2'], lp['mlp_b2'],
                      lp['n3g'], lp['n3b'],
                      with_residual=True).reshape(bs, num_queries, embed_dim)

    # tgts.transpose(1,2).view(bs, -1, hw, hw) -> NCHW
    out = jnp.transpose(tgts, (0, 2, 1)).reshape(bs, embed_dim, hw, hw)
    # add_up_sample=False (module default); zero-init Upsample conv would be identity residual.
    return out


# ----------------------------- deterministic params -----------------------------

def init_params(key, latent_dim, embed_dim, depth, num_heads, num_queries, mlp_ratio):
    keys = iter(jax.random.split(key, 128))

    def w(shape, scale=0.02):
        # matmul weights stored bf16 (halves HBM/VMEM traffic; f32 accumulation in-kernel)
        return (scale * jax.random.normal(next(keys), shape, jnp.float32)).astype(jnp.bfloat16)

    def b(n):
        return jnp.zeros((1, n), jnp.float32)

    def ln(n):
        return jnp.ones((1, n), jnp.float32), jnp.zeros((1, n), jnp.float32)

    def attn(d):
        return {'wq': w((d, d)), 'bq': b(d), 'wk': w((d, d)), 'bk': b(d),
                'wv': w((d, d)), 'bv': b(d), 'wo': w((d, d)), 'bo': b(d)}

    params = {
        'tgt_embed': jax.random.normal(next(keys), (num_queries, embed_dim), jnp.float32),
        'in_projs': [], 'layers': [],
    }
    hidden = embed_dim * mlp_ratio
    for i in range(depth):
        g, bt = ln(embed_dim)
        params['in_projs'].append({
            'w1': w((latent_dim, latent_dim)), 'b1': b(latent_dim),
            'w2': w((latent_dim, embed_dim)), 'b2': b(embed_dim),
            'ln_g': g, 'ln_b': bt,
        })
        lp = {}
        if i != 0:
            lp['self_attn'] = attn(embed_dim)
            lp['n1g'], lp['n1b'] = ln(embed_dim)
        lp['cross_attn'] = attn(embed_dim)
        lp['n2g'], lp['n2b'] = ln(embed_dim)
        lp['mlp_w1'] = w((embed_dim, hidden)); lp['mlp_b1'] = b(hidden)
        lp['mlp_w2'] = w((hidden, embed_dim)); lp['mlp_b2'] = b(embed_dim)
        lp['n3g'], lp['n3b'] = ln(embed_dim)
        params['layers'].append(lp)
    return params


# ----------------------------- main -----------------------------

if __name__ == "__main__":
    key = jax.random.PRNGKey(0)
    k_param, k_x = jax.random.split(key)

    bs, len_src = 2, 8
    latent_dim, embed_dim, depth, num_heads = 16, 32, 2, 4
    num_queries, mlp_ratio = 16, 4          # hw_size = 4
    hw = int(math.sqrt(num_queries))

    params = init_params(k_param, latent_dim, embed_dim, depth,
                         num_heads, num_queries, mlp_ratio)
    embeds = jax.random.normal(k_x, (bs, len_src, latent_dim), jnp.float32)
    # True = masked source position
    attn_mask = jnp.array([[0, 0, 0, 0, 0, 0, 0, 0],
                           [0, 0, 0, 0, 0, 1, 1, 1]], dtype=bool)

    fwd = jax.jit(functools.partial(
        transformer_decoder_forward,
        embed_dim=embed_dim, num_heads=num_heads,
        num_queries=num_queries, depth=depth))

    out = fwd(params, embeds, attn_mask)
    out = jax.block_until_ready(out)
    assert out.shape == (bs, embed_dim, hw, hw), out.shape
    assert bool(jnp.all(jnp.isfinite(out)))
    print("KERNEL_OK")
</pallas_src>

<mosaic_0001>
module attributes {stable_mosaic.version = 11 : i64} {
  func.func @_mha_ln_kernel(%arg0: i32, %arg1: memref<1x16x32xf32, #tpu.memory_space<vmem>>, %arg2: memref<1x16x32xf32, #tpu.memory_space<vmem>>, %arg3: memref<1x8x32xf32, #tpu.memory_space<vmem>>, %arg4: memref<1x8x32xf32, #tpu.memory_space<vmem>>, %arg5: memref<1x8x32xf32, #tpu.memory_space<vmem>>, %arg6: memref<1x1x8xf32, #tpu.memory_space<vmem>>, %arg7: memref<32x32xbf16, #tpu.memory_space<vmem>>, %arg8: memref<1x32xf32, #tpu.memory_space<vmem>>, %arg9: memref<32x32xbf16, #tpu.memory_space<vmem>>, %arg10: memref<1x32xf32, #tpu.memory_space<vmem>>, %arg11: memref<32x32xbf16, #tpu.memory_space<vmem>>, %arg12: memref<1x32xf32, #tpu.memory_space<vmem>>, %arg13: memref<32x32xbf16, #tpu.memory_space<vmem>>, %arg14: memref<1x32xf32, #tpu.memory_space<vmem>>, %arg15: memref<1x32xf32, #tpu.memory_space<vmem>>, %arg16: memref<1x32xf32, #tpu.memory_space<vmem>>, %arg17: memref<1x16x32xf32, #tpu.memory_space<vmem>>) attributes {dimension_semantics = [#tpu.dimension_semantics<parallel>], iteration_bounds = array<i64: 2>, scalar_prefetch = 0 : i64, scratch_operands = 0 : i64, tpu.core_type = #tpu.core_type<tc>, window_params = [{transform_indices = @transform_0, window_bounds = array<i64: 1, 16, 32>}, {pipeline_mode = #tpu.pipeline_mode<synchronous>, transform_indices = @transform_1, window_bounds = array<i64: 1, 16, 32>}, {transform_indices = @transform_2, window_bounds = array<i64: 1, 8, 32>}, {pipeline_mode = #tpu.pipeline_mode<synchronous>, transform_indices = @transform_3, window_bounds = array<i64: 1, 8, 32>}, {transform_indices = @transform_4, window_bounds = array<i64: 1, 8, 32>}, {transform_indices = @transform_5, window_bounds = array<i64: 1, 1, 8>}, {pipeline_mode = #tpu.pipeline_mode<synchronous>, transform_indices = @transform_6, window_bounds = array<i64: 32, 32>}, {pipeline_mode = #tpu.pipeline_mode<synchronous>, transform_indices = @transform_7, window_bounds = array<i64: 1, 32>}, {pipeline_mode = #tpu.pipeline_mode<synchronous>, transform_indices = @transform_8, window_bounds = array<i64: 32, 32>}, {pipeline_mode = #tpu.pipeline_mode<synchronous>, transform_indices = @transform_9, window_bounds = array<i64: 1, 32>}, {pipeline_mode = #tpu.pipeline_mode<synchronous>, transform_indices = @transform_10, window_bounds = array<i64: 32, 32>}, {pipeline_mode = #tpu.pipeline_mode<synchronous>, transform_indices = @transform_11, window_bounds = array<i64: 1, 32>}, {pipeline_mode = #tpu.pipeline_mode<synchronous>, transform_indices = @transform_12, window_bounds = array<i64: 32, 32>}, {pipeline_mode = #tpu.pipeline_mode<synchronous>, transform_indices = @transform_13, window_bounds = array<i64: 1, 32>}, {pipeline_mode = #tpu.pipeline_mode<synchronous>, transform_indices = @transform_14, window_bounds = array<i64: 1, 32>}, {pipeline_mode = #tpu.pipeline_mode<synchronous>, transform_indices = @transform_15, window_bounds = array<i64: 1, 32>}, {transform_indices = @transform_16, window_bounds = array<i64: 1, 16, 32>}]} {
    %c0 = arith.constant 0 : index
    %c0_0 = arith.constant 0 : index
    %c0_1 = arith.constant 0 : index
    %0 = vector.load %arg1[%c0, %c0_0, %c0_1] : memref<1x16x32xf32, #tpu.memory_space<vmem>>, vector<1x16x32xf32>
    %1 = vector.shape_cast %0 : vector<1x16x32xf32> to vector<16x32xf32>
    %c0_2 = arith.constant 0 : index
    %c0_3 = arith.constant 0 : index
    %c0_4 = arith.constant 0 : index
    %2 = vector.load %arg2[%c0_2, %c0_3, %c0_4] : memref<1x16x32xf32, #tpu.memory_space<vmem>>, vector<1x16x32xf32>
    %3 = vector.shape_cast %2 : vector<1x16x32xf32> to vector<16x32xf32>
    %4 = arith.addf %1, %3 : vector<16x32xf32>
    %5 = arith.truncf %4 : vector<16x32xf32> to vector<16x32xbf16>
    %c0_5 = arith.constant 0 : index
    %c0_6 = arith.constant 0 : index
    %c0_7 = arith.constant 0 : index
    %6 = vector.load %arg3[%c0_5, %c0_6, %c0_7] : memref<1x8x32xf32, #tpu.memory_space<vmem>>, vector<1x8x32xf32>
    %7 = vector.shape_cast %6 : vector<1x8x32xf32> to vector<8x32xf32>
    %c0_8 = arith.constant 0 : index
    %c0_9 = arith.constant 0 : index
    %c0_10 = arith.constant 0 : index
    %8 = vector.load %arg4[%c0_8, %c0_9, %c0_10] : memref<1x8x32xf32, #tpu.memory_space<vmem>>, vector<1x8x32xf32>
    %9 = vector.shape_cast %8 : vector<1x8x32xf32> to vector<8x32xf32>
    %10 = arith.addf %7, %9 : vector<8x32xf32>
    %11 = arith.truncf %10 : vector<8x32xf32> to vector<8x32xbf16>
    %c0_11 = arith.constant 0 : index
    %c0_12 = arith.constant 0 : index
    %c0_13 = arith.constant 0 : index
    %12 = vector.load %arg5[%c0_11, %c0_12, %c0_13] : memref<1x8x32xf32, #tpu.memory_space<vmem>>, vector<1x8x32xf32>
    %13 = vector.shape_cast %12 : vector<1x8x32xf32> to vector<8x32xf32>
    %14 = arith.truncf %13 : vector<8x32xf32> to vector<8x32xbf16>
    %c0_14 = arith.constant 0 : index
    %c0_15 = arith.constant 0 : index
    %15 = vector.load %arg7[%c0_14, %c0_15] : memref<32x32xbf16, #tpu.memory_space<vmem>>, vector<32x32xbf16>
    %cst = arith.constant dense<0.000000e+00> : vector<16x32xf32>
    %16 = tpu.matmul %5, %15, %cst {dimension_numbers = #tpu.dot_dimension_numbers<[1], [0], [0], [1], [0, 0, 1, 1], [], []>} : vector<16x32xbf16>, vector<32x32xbf16>, vector<16x32xf32> -> vector<16x32xf32>
    %c0_16 = arith.constant 0 : index
    %c0_17 = arith.constant 0 : index
    %17 = vector.load %arg8[%c0_16, %c0_17] : memref<1x32xf32, #tpu.memory_space<vmem>>, vector<1x32xf32>
    %18 = vector.broadcast %17 : vector<1x32xf32> to vector<16x32xf32>
    %19 = arith.addf %16, %18 : vector<16x32xf32>
    %c0_18 = arith.constant 0 : index
    %c0_19 = arith.constant 0 : index
    %20 = vector.load %arg9[%c0_18, %c0_19] : memref<32x32xbf16, #tpu.memory_space<vmem>>, vector<32x32xbf16>
    %cst_20 = arith.constant dense<0.000000e+00> : vector<8x32xf32>
    %21 = tpu.matmul %11, %20, %cst_20 {dimension_numbers = #tpu.dot_dimension_numbers<[1], [0], [0], [1], [0, 0, 1, 1], [], []>} : vector<8x32xbf16>, vector<32x32xbf16>, vector<8x32xf32> -> vector<8x32xf32>
    %c0_21 = arith.constant 0 : index
    %c0_22 = arith.constant 0 : index
    %22 = vector.load %arg10[%c0_21, %c0_22] : memref<1x32xf32, #tpu.memory_space<vmem>>, vector<1x32xf32>
    %23 = vector.broadcast %22 : vector<1x32xf32> to vector<8x32xf32>
    %24 = arith.addf %21, %23 : vector<8x32xf32>
    %c0_23 = arith.constant 0 : index
    %c0_24 = arith.constant 0 : index
    %25 = vector.load %arg11[%c0_23, %c0_24] : memref<32x32xbf16, #tpu.memory_space<vmem>>, vector<32x32xbf16>
    %cst_25 = arith.constant dense<0.000000e+00> : vector<8x32xf32>
    %26 = tpu.matmul %14, %25, %cst_25 {dimension_numbers = #tpu.dot_dimension_numbers<[1], [0], [0], [1], [0, 0, 1, 1], [], []>} : vector<8x32xbf16>, vector<32x32xbf16>, vector<8x32xf32> -> vector<8x32xf32>
    %c0_26 = arith.constant 0 : index
    %c0_27 = arith.constant 0 : index
    %27 = vector.load %arg12[%c0_26, %c0_27] : memref<1x32xf32, #tpu.memory_space<vmem>>, vector<1x32xf32>
    %28 = vector.broadcast %27 : vector<1x32xf32> to vector<8x32xf32>
    %29 = arith.addf %26, %28 : vector<8x32xf32>
    %30 = arith.truncf %19 : vector<16x32xf32> to vector<16x32xbf16>
    %31 = arith.truncf %24 : vector<8x32xf32> to vector<8x32xbf16>
    %32 = arith.truncf %29 : vector<8x32xf32> to vector<8x32xbf16>
    %c0_28 = arith.constant 0 : index
    %c0_29 = arith.constant 0 : index
    %c0_30 = arith.constant 0 : index
    %33 = vector.load %arg6[%c0_28, %c0_29, %c0_30] : memref<1x1x8xf32, #tpu.memory_space<vmem>>, vector<1x1x8xf32>
    %34 = vector.shape_cast %33 : vector<1x1x8xf32> to vector<1x8xf32>
    %cst_31 = arith.constant 0.000000e+00 : f32
    %35 = vector.broadcast %cst_31 : f32 to vector<16x32xf32>
    %36 = vector.extract_strided_slice %30 {offsets = [0, 0], sizes = [16, 8], strides = [1, 1]} : vector<16x32xbf16> to vector<16x8xbf16>
    %37 = vector.extract_strided_slice %31 {offsets = [0, 0], sizes = [8, 8], strides = [1, 1]} : vector<8x32xbf16> to vector<8x8xbf16>
    %cst_32 = arith.constant dense<0.000000e+00> : vector<16x8xf32>
    %38 = tpu.matmul %36, %37, %cst_32 {dimension_numbers = #tpu.dot_dimension_numbers<[1], [1], [0], [0], [0, 0, 1, 0], [], []>} : vector<16x8xbf16>, vector<8x8xbf16>, vector<16x8xf32> -> vector<16x8xf32>
    %cst_33 = arith.constant 0.353553385 : f32
    %39 = vector.broadcast %cst_33 : f32 to vector<16x8xf32>
    %40 = arith.mulf %38, %39 : vector<16x8xf32>
    %41 = vector.broadcast %34 : vector<1x8xf32> to vector<16x8xf32>
    %42 = arith.addf %40, %41 : vector<16x8xf32>
    %cst_34 = arith.constant dense<0xFF800000> : vector<16xf32>
    %43 = vector.multi_reduction <maximumf>, %42, %cst_34 [1] : vector<16x8xf32> to vector<16xf32>
    %44 = vector.shape_cast %43 : vector<16xf32> to vector<16x1xf32>
    %45 = vector.broadcast %44 : vector<16x1xf32> to vector<16x8xf32>
    %46 = arith.subf %42, %45 : vector<16x8xf32>
    %47 = math.exp %46 : vector<16x8xf32>
    %cst_35 = arith.constant dense<0.000000e+00> : vector<16xf32>
    %48 = vector.multi_reduction <add>, %47, %cst_35 [1] : vector<16x8xf32> to vector<16xf32>
    %49 = vector.shape_cast %48 : vector<16xf32> to vector<16x1xf32>
    %50 = arith.truncf %47 : vector<16x8xf32> to vector<16x8xbf16>
    %51 = vector.extract_strided_slice %32 {offsets = [0, 0], sizes = [8, 8], strides = [1, 1]} : vector<8x32xbf16> to vector<8x8xbf16>
    %cst_36 = arith.constant dense<0.000000e+00> : vector<16x8xf32>
    %52 = tpu.matmul %50, %51, %cst_36 {dimension_numbers = #tpu.dot_dimension_numbers<[1], [0], [0], [1], [0, 0, 1, 1], [], []>} : vector<16x8xbf16>, vector<8x8xbf16>, vector<16x8xf32> -> vector<16x8xf32>
    %53 = tpu.reciprocal %49 {approx = true} : vector<16x1xf32> -> vector<16x1xf32>
    %54 = vector.broadcast %53 : vector<16x1xf32> to vector<16x8xf32>
    %55 = arith.mulf %52, %54 : vector<16x8xf32>
    %56 = arith.truncf %55 : vector<16x8xf32> to vector<16x8xbf16>
    %c0_37 = arith.constant 0 : index
    %c0_38 = arith.constant 0 : index
    %57 = vector.load %arg13[%c0_37, %c0_38] : memref<32x32xbf16, #tpu.memory_space<vmem>>, vector<8x32xbf16>
    %cst_39 = arith.constant dense<0.000000e+00> : vector<16x32xf32>
    %58 = tpu.matmul %56, %57, %cst_39 {dimension_numbers = #tpu.dot_dimension_numbers<[1], [0], [0], [1], [0, 0, 1, 1], [], []>} : vector<16x8xbf16>, vector<8x32xbf16>, vector<16x32xf32> -> vector<16x32xf32>
    %59 = arith.addf %35, %58 : vector<16x32xf32>
    %60 = vector.extract_strided_slice %30 {offsets = [0, 8], sizes = [16, 8], strides = [1, 1]} : vector<16x32xbf16> to vector<16x8xbf16>
    %61 = vector.extract_strided_slice %31 {offsets = [0, 8], sizes = [8, 8], strides = [1, 1]} : vector<8x32xbf16> to vector<8x8xbf16>
    %cst_40 = arith.constant dense<0.000000e+00> : vector<16x8xf32>
    %62 = tpu.matmul %60, %61, %cst_40 {dimension_numbers = #tpu.dot_dimension_numbers<[1], [1], [0], [0], [0, 0, 1, 0], [], []>} : vector<16x8xbf16>, vector<8x8xbf16>, vector<16x8xf32> -> vector<16x8xf32>
    %cst_41 = arith.constant 0.353553385 : f32
    %63 = vector.broadcast %cst_41 : f32 to vector<16x8xf32>
    %64 = arith.mulf %62, %63 : vector<16x8xf32>
    %65 = vector.broadcast %34 : vector<1x8xf32> to vector<16x8xf32>
    %66 = arith.addf %64, %65 : vector<16x8xf32>
    %cst_42 = arith.constant dense<0xFF800000> : vector<16xf32>
    %67 = vector.multi_reduction <maximumf>, %66, %cst_42 [1] : vector<16x8xf32> to vector<16xf32>
    %68 = vector.shape_cast %67 : vector<16xf32> to vector<16x1xf32>
    %69 = vector.broadcast %68 : vector<16x1xf32> to vector<16x8xf32>
    %70 = arith.subf %66, %69 : vector<16x8xf32>
    %71 = math.exp %70 : vector<16x8xf32>
    %cst_43 = arith.constant dense<0.000000e+00> : vector<16xf32>
    %72 = vector.multi_reduction <add>, %71, %cst_43 [1] : vector<16x8xf32> to vector<16xf32>
    %73 = vector.shape_cast %72 : vector<16xf32> to vector<16x1xf32>
    %74 = arith.truncf %71 : vector<16x8xf32> to vector<16x8xbf16>
    %75 = vector.extract_strided_slice %32 {offsets = [0, 8], sizes = [8, 8], strides = [1, 1]} : vector<8x32xbf16> to vector<8x8xbf16>
    %cst_44 = arith.constant dense<0.000000e+00> : vector<16x8xf32>
    %76 = tpu.matmul %74, %75, %cst_44 {dimension_numbers = #tpu.dot_dimension_numbers<[1], [0], [0], [1], [0, 0, 1, 1], [], []>} : vector<16x8xbf16>, vector<8x8xbf16>, vector<16x8xf32> -> vector<16x8xf32>
    %77 = tpu.reciprocal %73 {approx = true} : vector<16x1xf32> -> vector<16x1xf32>
    %78 = vector.broadcast %77 : vector<16x1xf32> to vector<16x8xf32>
    %79 = arith.mulf %76, %78 : vector<16x8xf32>
    %80 = arith.truncf %79 : vector<16x8xf32> to vector<16x8xbf16>
    %c8 = arith.constant 8 : index
    %c0_45 = arith.constant 0 : index
    %81 = vector.load %arg13[%c8, %c0_45] : memref<32x32xbf16, #tpu.memory_space<vmem>>, vector<8x32xbf16>
    %cst_46 = arith.constant dense<0.000000e+00> : vector<16x32xf32>
    %82 = tpu.matmul %80, %81, %cst_46 {dimension_numbers = #tpu.dot_dimension_numbers<[1], [0], [0], [1], [0, 0, 1, 1], [], []>} : vector<16x8xbf16>, vector<8x32xbf16>, vector<16x32xf32> -> vector<16x32xf32>
    %83 = arith.addf %59, %82 : vector<16x32xf32>
    %84 = vector.extract_strided_slice %30 {offsets = [0, 16], sizes = [16, 8], strides = [1, 1]} : vector<16x32xbf16> to vector<16x8xbf16>
    %85 = vector.extract_strided_slice %31 {offsets = [0, 16], sizes = [8, 8], strides = [1, 1]} : vector<8x32xbf16> to vector<8x8xbf16>
    %cst_47 = arith.constant dense<0.000000e+00> : vector<16x8xf32>
    %86 = tpu.matmul %84, %85, %cst_47 {dimension_numbers = #tpu.dot_dimension_numbers<[1], [1], [0], [0], [0, 0, 1, 0], [], []>} : vector<16x8xbf16>, vector<8x8xbf16>, vector<16x8xf32> -> vector<16x8xf32>
    %cst_48 = arith.constant 0.353553385 : f32
    %87 = vector.broadcast %cst_48 : f32 to vector<16x8xf32>
    %88 = arith.mulf %86, %87 : vector<16x8xf32>
    %89 = vector.broadcast %34 : vector<1x8xf32> to vector<16x8xf32>
    %90 = arith.addf %88, %89 : vector<16x8xf32>
    %cst_49 = arith.constant dense<0xFF800000> : vector<16xf32>
    %91 = vector.multi_reduction <maximumf>, %90, %cst_49 [1] : vector<16x8xf32> to vector<16xf32>
    %92 = vector.shape_cast %91 : vector<16xf32> to vector<16x1xf32>
    %93 = vector.broadcast %92 : vector<16x1xf32> to vector<16x8xf32>
    %94 = arith.subf %90, %93 : vector<16x8xf32>
    %95 = math.exp %94 : vector<16x8xf32>
    %cst_50 = arith.constant dense<0.000000e+00> : vector<16xf32>
    %96 = vector.multi_reduction <add>, %95, %cst_50 [1] : vector<16x8xf32> to vector<16xf32>
    %97 = vector.shape_cast %96 : vector<16xf32> to vector<16x1xf32>
    %98 = arith.truncf %95 : vector<16x8xf32> to vector<16x8xbf16>
    %99 = vector.extract_strided_slice %32 {offsets = [0, 16], sizes = [8, 8], strides = [1, 1]} : vector<8x32xbf16> to vector<8x8xbf16>
    %cst_51 = arith.constant dense<0.000000e+00> : vector<16x8xf32>
    %100 = tpu.matmul %98, %99, %cst_51 {dimension_numbers = #tpu.dot_dimension_numbers<[1], [0], [0], [1], [0, 0, 1, 1], [], []>} : vector<16x8xbf16>, vector<8x8xbf16>, vector<16x8xf32> -> vector<16x8xf32>
    %101 = tpu.reciprocal %97 {approx = true} : vector<16x1xf32> -> vector<16x1xf32>
    %102 = vector.broadcast %101 : vector<16x1xf32> to vector<16x8xf32>
    %103 = arith.mulf %100, %102 : vector<16x8xf32>
    %104 = arith.truncf %103 : vector<16x8xf32> to vector<16x8xbf16>
    %c16 = arith.constant 16 : index
    %c0_52 = arith.constant 0 : index
    %105 = vector.load %arg13[%c16, %c0_52] : memref<32x32xbf16, #tpu.memory_space<vmem>>, vector<8x32xbf16>
    %cst_53 = arith.constant dense<0.000000e+00> : vector<16x32xf32>
    %106 = tpu.matmul %104, %105, %cst_53 {dimension_numbers = #tpu.dot_dimension_numbers<[1], [0], [0], [1], [0, 0, 1, 1], [], []>} : vector<16x8xbf16>, vector<8x32xbf16>, vector<16x32xf32> -> vector<16x32xf32>
    %107 = arith.addf %83, %106 : vector<16x32xf32>
    %108 = vector.extract_strided_slice %30 {offsets = [0, 24], sizes = [16, 8], strides = [1, 1]} : vector<16x32xbf16> to vector<16x8xbf16>
    %109 = vector.extract_strided_slice %31 {offsets = [0, 24], sizes = [8, 8], strides = [1, 1]} : vector<8x32xbf16> to vector<8x8xbf16>
    %cst_54 = arith.constant dense<0.000000e+00> : vector<16x8xf32>
    %110 = tpu.matmul %108, %109, %cst_54 {dimension_numbers = #tpu.dot_dimension_numbers<[1], [1], [0], [0], [0, 0, 1, 0], [], []>} : vector<16x8xbf16>, vector<8x8xbf16>, vector<16x8xf32> -> vector<16x8xf32>
    %cst_55 = arith.constant 0.353553385 : f32
    %111 = vector.broadcast %cst_55 : f32 to vector<16x8xf32>
    %112 = arith.mulf %110, %111 : vector<16x8xf32>
    %113 = vector.broadcast %34 : vector<1x8xf32> to vector<16x8xf32>
    %114 = arith.addf %112, %113 : vector<16x8xf32>
    %cst_56 = arith.constant dense<0xFF800000> : vector<16xf32>
    %115 = vector.multi_reduction <maximumf>, %114, %cst_56 [1] : vector<16x8xf32> to vector<16xf32>
    %116 = vector.shape_cast %115 : vector<16xf32> to vector<16x1xf32>
    %117 = vector.broadcast %116 : vector<16x1xf32> to vector<16x8xf32>
    %118 = arith.subf %114, %117 : vector<16x8xf32>
    %119 = math.exp %118 : vector<16x8xf32>
    %cst_57 = arith.constant dense<0.000000e+00> : vector<16xf32>
    %120 = vector.multi_reduction <add>, %119, %cst_57 [1] : vector<16x8xf32> to vector<16xf32>
    %121 = vector.shape_cast %120 : vector<16xf32> to vector<16x1xf32>
    %122 = arith.truncf %119 : vector<16x8xf32> to vector<16x8xbf16>
    %123 = vector.extract_strided_slice %32 {offsets = [0, 24], sizes = [8, 8], strides = [1, 1]} : vector<8x32xbf16> to vector<8x8xbf16>
    %cst_58 = arith.constant dense<0.000000e+00> : vector<16x8xf32>
    %124 = tpu.matmul %122, %123, %cst_58 {dimension_numbers = #tpu.dot_dimension_numbers<[1], [0], [0], [1], [0, 0, 1, 1], [], []>} : vector<16x8xbf16>, vector<8x8xbf16>, vector<16x8xf32> -> vector<16x8xf32>
    %125 = tpu.reciprocal %121 {approx = true} : vector<16x1xf32> -> vector<16x1xf32>
    %126 = vector.broadcast %125 : vector<16x1xf32> to vector<16x8xf32>
    %127 = arith.mulf %124, %126 : vector<16x8xf32>
    %128 = arith.truncf %127 : vector<16x8xf32> to vector<16x8xbf16>
    %c24 = arith.constant 24 : index
    %c0_59 = arith.constant 0 : index
    %129 = vector.load %arg13[%c24, %c0_59] : memref<32x32xbf16, #tpu.memory_space<vmem>>, vector<8x32xbf16>
    %cst_60 = arith.constant dense<0.000000e+00> : vector<16x32xf32>
    %130 = tpu.matmul %128, %129, %cst_60 {dimension_numbers = #tpu.dot_dimension_numbers<[1], [0], [0], [1], [0, 0, 1, 1], [], []>} : vector<16x8xbf16>, vector<8x32xbf16>, vector<16x32xf32> -> vector<16x32xf32>
    %131 = arith.addf %107, %130 : vector<16x32xf32>
    %c0_61 = arith.constant 0 : index
    %c0_62 = arith.constant 0 : index
    %132 = vector.load %arg14[%c0_61, %c0_62] : memref<1x32xf32, #tpu.memory_space<vmem>>, vector<1x32xf32>
    %133 = vector.broadcast %132 : vector<1x32xf32> to vector<16x32xf32>
    %134 = arith.addf %131, %133 : vector<16x32xf32>
    %135 = arith.addf %1, %134 : vector<16x32xf32>
    %cst_63 = arith.constant dense<0.000000e+00> : vector<16xf32>
    %136 = vector.multi_reduction <add>, %135, %cst_63 [1] : vector<16x32xf32> to vector<16xf32>
    %137 = vector.shape_cast %136 : vector<16xf32> to vector<16x1xf32>
    %cst_64 = arith.constant 3.200000e+01 : f32
    %138 = vector.broadcast %cst_64 : f32 to vector<16x1xf32>
    %139 = arith.divf %137, %138 : vector<16x1xf32>
    %140 = vector.broadcast %139 : vector<16x1xf32> to vector<16x32xf32>
    %141 = arith.subf %135, %140 : vector<16x32xf32>
    %142 = arith.mulf %141, %141 : vector<16x32xf32>
    %cst_65 = arith.constant dense<0.000000e+00> : vector<16xf32>
    %143 = vector.multi_reduction <add>, %142, %cst_65 [1] : vector<16x32xf32> to vector<16xf32>
    %144 = vector.shape_cast %143 : vector<16xf32> to vector<16x1xf32>
    %cst_66 = arith.constant 3.200000e+01 : f32
    %145 = vector.broadcast %cst_66 : f32 to vector<16x1xf32>
    %146 = arith.divf %144, %145 : vector<16x1xf32>
    %147 = vector.broadcast %139 : vector<16x1xf32> to vector<16x32xf32>
    %148 = arith.subf %135, %147 : vector<16x32xf32>
    %cst_67 = arith.constant 9.99999974E-6 : f32
    %149 = vector.broadcast %cst_67 : f32 to vector<16x1xf32>
    %150 = arith.addf %146, %149 : vector<16x1xf32>
    %151 = math.rsqrt %150 : vector<16x1xf32>
    %152 = vector.broadcast %151 : vector<16x1xf32> to vector<16x32xf32>
    %153 = arith.mulf %148, %152 : vector<16x32xf32>
    %c0_68 = arith.constant 0 : index
    %c0_69 = arith.constant 0 : index
    %154 = vector.load %arg15[%c0_68, %c0_69] : memref<1x32xf32, #tpu.memory_space<vmem>>, vector<1x32xf32>
    %155 = vector.broadcast %154 : vector<1x32xf32> to vector<16x32xf32>
    %156 = arith.mulf %153, %155 : vector<16x32xf32>
    %c0_70 = arith.constant 0 : index
    %c0_71 = arith.constant 0 : index
    %157 = vector.load %arg16[%c0_70, %c0_71] : memref<1x32xf32, #tpu.memory_space<vmem>>, vector<1x32xf32>
    %158 = vector.broadcast %157 : vector<1x32xf32> to vector<16x32xf32>
    %159 = arith.addf %156, %158 : vector<16x32xf32>
    %c0_72 = arith.constant 0 : index
    %c0_73 = arith.constant 0 : index
    %c0_74 = arith.constant 0 : index
    %160 = vector.load %arg17[%c0_72, %c0_73, %c0_74] : memref<1x16x32xf32, #tpu.memory_space<vmem>>, vector<1x16x32xf32>
    %161 = vector.shape_cast %160 : vector<1x16x32xf32> to vector<16x32xf32>
    %162 = vector.shape_cast %159 : vector<16x32xf32> to vector<1x16x32xf32>
    tpu.vector_store %arg17[%c0_72, %c0_73, %c0_74], %162 {strides = array<i32>} : memref<1x16x32xf32, #tpu.memory_space<vmem>>, vector<1x16x32xf32>,
    return
  }
  func.func @transform_0(%arg0: i32) -> (i32, i32, i32) {
    %c0_i32 = arith.constant 0 : i32
    %c0_i32_0 = arith.constant 0 : i32
    %c0_i32_1 = arith.constant 0 : i32
    return %arg0, %c0_i32, %c0_i32_0 : i32, i32, i32
  }
  func.func @transform_1(%arg0: i32) -> (i32, i32, i32) {
    %c0_i32 = arith.constant 0 : i32
    %c0_i32_0 = arith.constant 0 : i32
    %c0_i32_1 = arith.constant 0 : i32
    %c0_i32_2 = arith.constant 0 : i32
    return %c0_i32, %c0_i32_0, %c0_i32_1 : i32, i32, i32
  }
  func.func @transform_2(%arg0: i32) -> (i32, i32, i32) {
    %c0_i32 = arith.constant 0 : i32
    %c0_i32_0 = arith.constant 0 : i32
    %c0_i32_1 = arith.constant 0 : i32
    return %arg0, %c0_i32, %c0_i32_0 : i32, i32, i32
  }
  func.func @transform_3(%arg0: i32) -> (i32, i32, i32) {
    %c0_i32 = arith.constant 0 : i32
    %c0_i32_0 = arith.constant 0 : i32
    %c0_i32_1 = arith.constant 0 : i32
    %c0_i32_2 = arith.constant 0 : i32
    return %c0_i32, %c0_i32_0, %c0_i32_1 : i32, i32, i32
  }
  func.func @transform_4(%arg0: i32) -> (i32, i32, i32) {
    %c0_i32 = arith.constant 0 : i32
    %c0_i32_0 = arith.constant 0 : i32
    %c0_i32_1 = arith.constant 0 : i32
    return %arg0, %c0_i32, %c0_i32_0 : i32, i32, i32
  }
  func.func @transform_5(%arg0: i32) -> (i32, i32, i32) {
    %c0_i32 = arith.constant 0 : i32
    %c0_i32_0 = arith.constant 0 : i32
    %c0_i32_1 = arith.constant 0 : i32
    return %arg0, %c0_i32, %c0_i32_0 : i32, i32, i32
  }
  func.func @transform_6(%arg0: i32) -> (i32, i32) {
    %c0_i32 = arith.constant 0 : i32
    %c0_i32_0 = arith.constant 0 : i32
    %c0_i32_1 = arith.constant 0 : i32
    return %c0_i32, %c0_i32_0 : i32, i32
  }
  func.func @transform_7(%arg0: i32) -> (i32, i32) {
    %c0_i32 = arith.constant 0 : i32
    %c0_i32_0 = arith.constant 0 : i32
    %c0_i32_1 = arith.constant 0 : i32
    return %c0_i32, %c0_i32_0 : i32, i32
  }
  func.func @transform_8(%arg0: i32) -> (i32, i32) {
    %c0_i32 = arith.constant 0 : i32
    %c0_i32_0 = arith.constant 0 : i32
    %c0_i32_1 = arith.constant 0 : i32
    return %c0_i32, %c0_i32_0 : i32, i32
  }
  func.func @transform_9(%arg0: i32) -> (i32, i32) {
    %c0_i32 = arith.constant 0 : i32
    %c0_i32_0 = arith.constant 0 : i32
    %c0_i32_1 = arith.constant 0 : i32
    return %c0_i32, %c0_i32_0 : i32, i32
  }
  func.func @transform_10(%arg0: i32) -> (i32, i32) {
    %c0_i32 = arith.constant 0 : i32
    %c0_i32_0 = arith.constant 0 : i32
    %c0_i32_1 = arith.constant 0 : i32
    return %c0_i32, %c0_i32_0 : i32, i32
  }
  func.func @transform_11(%arg0: i32) -> (i32, i32) {
    %c0_i32 = arith.constant 0 : i32
    %c0_i32_0 = arith.constant 0 : i32
    %c0_i32_1 = arith.constant 0 : i32
    return %c0_i32, %c0_i32_0 : i32, i32
  }
  func.func @transform_12(%arg0: i32) -> (i32, i32) {
    %c0_i32 = arith.constant 0 : i32
    %c0_i32_0 = arith.constant 0 : i32
    %c0_i32_1 = arith.constant 0 : i32
    return %c0_i32, %c0_i32_0 : i32, i32
  }
  func.func @transform_13(%arg0: i32) -> (i32, i32) {
    %c0_i32 = arith.constant 0 : i32
    %c0_i32_0 = arith.constant 0 : i32
    %c0_i32_1 = arith.constant 0 : i32
    return %c0_i32, %c0_i32_0 : i32, i32
  }
  func.func @transform_14(%arg0: i32) -> (i32, i32) {
    %c0_i32 = arith.constant 0 : i32
    %c0_i32_0 = arith.constant 0 : i32
    %c0_i32_1 = arith.constant 0 : i32
    return %c0_i32, %c0_i32_0 : i32, i32
  }
  func.func @transform_15(%arg0: i32) -> (i32, i32) {
    %c0_i32 = arith.constant 0 : i32
    %c0_i32_0 = arith.constant 0 : i32
    %c0_i32_1 = arith.constant 0 : i32
    return %c0_i32, %c0_i32_0 : i32, i32
  }
  func.func @transform_16(%arg0: i32) -> (i32, i32, i32) {
    %c0_i32 = arith.constant 0 : i32
    %c0_i32_0 = arith.constant 0 : i32
    %c0_i32_1 = arith.constant 0 : i32
    return %arg0, %c0_i32, %c0_i32_0 : i32, i32, i32
  }
}

module attributes {stable_mosaic.version = 11 : i64} {
  func.func @_mlp_ln_kernel(%arg0: i32, %arg1: memref<8x16xf32, #tpu.memory_space<vmem>>, %arg2: memref<16x16xbf16, #tpu.memory_space<vmem>>, %arg3: memref<1x16xf32, #tpu.memory_space<vmem>>, %arg4: memref<16x32xbf16, #tpu.memory_space<vmem>>, %arg5: memref<1x32xf32, #tpu.memory_space<vmem>>, %arg6: memref<1x32xf32, #tpu.memory_space<vmem>>, %arg7: memref<1x32xf32, #tpu.memory_space<vmem>>, %arg8: memref<8x32xf32, #tpu.memory_space<vmem>>) attributes {dimension_semantics = [#tpu.dimension_semantics<parallel>], iteration_bounds = array<i64: 2>, scalar_prefetch = 0 : i64, scratch_operands = 0 : i64, tpu.core_type = #tpu.core_type<tc>, window_params = [{transform_indices = @transform_0, window_bounds = array<i64: 8, 16>}, {pipeline_mode = #tpu.pipeline_mode<synchronous>, transform_indices = @transform_1, window_bounds = array<i64: 16, 16>}, {pipeline_mode = #tpu.pipeline_mode<synchronous>, transform_indices = @transform_2, window_bounds = array<i64: 1, 16>}, {pipeline_mode = #tpu.pipeline_mode<synchronous>, transform_indices = @transform_3, window_bounds = array<i64: 16, 32>}, {pipeline_mode = #tpu.pipeline_mode<synchronous>, transform_indices = @transform_4, window_bounds = array<i64: 1, 32>}, {pipeline_mode = #tpu.pipeline_mode<synchronous>, transform_indices = @transform_5, window_bounds = array<i64: 1, 32>}, {pipeline_mode = #tpu.pipeline_mode<synchronous>, transform_indices = @transform_6, window_bounds = array<i64: 1, 32>}, {transform_indices = @transform_7, window_bounds = array<i64: 8, 32>}]} {
    %c0 = arith.constant 0 : index
    %c0_0 = arith.constant 0 : index
    %0 = vector.load %arg1[%c0, %c0_0] : memref<8x16xf32, #tpu.memory_space<vmem>>, vector<8x16xf32>
    %1 = arith.truncf %0 : vector<8x16xf32> to vector<8x16xbf16>
    %c0_1 = arith.constant 0 : index
    %c0_2 = arith.constant 0 : index
    %2 = vector.load %arg2[%c0_1, %c0_2] : memref<16x16xbf16, #tpu.memory_space<vmem>>, vector<16x16xbf16>
    %cst = arith.constant dense<0.000000e+00> : vector<8x16xf32>
    %3 = tpu.matmul %1, %2, %cst {dimension_numbers = #tpu.dot_dimension_numbers<[1], [0], [0], [1], [0, 0, 1, 1], [], []>} : vector<8x16xbf16>, vector<16x16xbf16>, vector<8x16xf32> -> vector<8x16xf32>
    %c0_3 = arith.constant 0 : index
    %c0_4 = arith.constant 0 : index
    %4 = vector.load %arg3[%c0_3, %c0_4] : memref<1x16xf32, #tpu.memory_space<vmem>>, vector<1x16xf32>
    %5 = vector.broadcast %4 : vector<1x16xf32> to vector<8x16xf32>
    %6 = arith.addf %3, %5 : vector<8x16xf32>
    %cst_5 = arith.constant 5.000000e-01 : f32
    %7 = vector.broadcast %cst_5 : f32 to vector<8x16xf32>
    %8 = arith.mulf %7, %6 : vector<8x16xf32>
    %cst_6 = arith.constant 4.471500e-02 : f32
    %9 = vector.broadcast %cst_6 : f32 to vector<8x16xf32>
    %10 = arith.mulf %9, %6 : vector<8x16xf32>
    %11 = arith.mulf %10, %6 : vector<8x16xf32>
    %12 = arith.mulf %11, %6 : vector<8x16xf32>
    %13 = arith.addf %6, %12 : vector<8x16xf32>
    %cst_7 = arith.constant 0.797884583 : f32
    %14 = vector.broadcast %cst_7 : f32 to vector<8x16xf32>
    %15 = arith.mulf %14, %13 : vector<8x16xf32>
    %16 = math.tanh %15 : vector<8x16xf32>
    %cst_8 = arith.constant 1.000000e+00 : f32
    %17 = vector.broadcast %cst_8 : f32 to vector<8x16xf32>
    %18 = arith.addf %17, %16 : vector<8x16xf32>
    %19 = arith.mulf %8, %18 : vector<8x16xf32>
    %20 = arith.truncf %19 : vector<8x16xf32> to vector<8x16xbf16>
    %c0_9 = arith.constant 0 : index
    %c0_10 = arith.constant 0 : index
    %21 = vector.load %arg4[%c0_9, %c0_10] : memref<16x32xbf16, #tpu.memory_space<vmem>>, vector<16x32xbf16>
    %cst_11 = arith.constant dense<0.000000e+00> : vector<8x32xf32>
    %22 = tpu.matmul %20, %21, %cst_11 {dimension_numbers = #tpu.dot_dimension_numbers<[1], [0], [0], [1], [0, 0, 1, 1], [], []>} : vector<8x16xbf16>, vector<16x32xbf16>, vector<8x32xf32> -> vector<8x32xf32>
    %c0_12 = arith.constant 0 : index
    %c0_13 = arith.constant 0 : index
    %23 = vector.load %arg5[%c0_12, %c0_13] : memref<1x32xf32, #tpu.memory_space<vmem>>, vector<1x32xf32>
    %24 = vector.broadcast %23 : vector<1x32xf32> to vector<8x32xf32>
    %25 = arith.addf %22, %24 : vector<8x32xf32>
    %cst_14 = arith.constant dense<0.000000e+00> : vector<8xf32>
    %26 = vector.multi_reduction <add>, %25, %cst_14 [1] : vector<8x32xf32> to vector<8xf32>
    %27 = vector.shape_cast %26 : vector<8xf32> to vector<8x1xf32>
    %cst_15 = arith.constant 3.200000e+01 : f32
    %28 = vector.broadcast %cst_15 : f32 to vector<8x1xf32>
    %29 = arith.divf %27, %28 : vector<8x1xf32>
    %30 = vector.broadcast %29 : vector<8x1xf32> to vector<8x32xf32>
    %31 = arith.subf %25, %30 : vector<8x32xf32>
    %32 = arith.mulf %31, %31 : vector<8x32xf32>
    %cst_16 = arith.constant dense<0.000000e+00> : vector<8xf32>
    %33 = vector.multi_reduction <add>, %32, %cst_16 [1] : vector<8x32xf32> to vector<8xf32>
    %34 = vector.shape_cast %33 : vector<8xf32> to vector<8x1xf32>
    %cst_17 = arith.constant 3.200000e+01 : f32
    %35 = vector.broadcast %cst_17 : f32 to vector<8x1xf32>
    %36 = arith.divf %34, %35 : vector<8x1xf32>
    %37 = vector.broadcast %29 : vector<8x1xf32> to vector<8x32xf32>
    %38 = arith.subf %25, %37 : vector<8x32xf32>
    %cst_18 = arith.constant 9.99999974E-6 : f32
    %39 = vector.broadcast %cst_18 : f32 to vector<8x1xf32>
    %40 = arith.addf %36, %39 : vector<8x1xf32>
    %41 = math.rsqrt %40 : vector<8x1xf32>
    %42 = vector.broadcast %41 : vector<8x1xf32> to vector<8x32xf32>
    %43 = arith.mulf %38, %42 : vector<8x32xf32>
    %c0_19 = arith.constant 0 : index
    %c0_20 = arith.constant 0 : index
    %44 = vector.load %arg6[%c0_19, %c0_20] : memref<1x32xf32, #tpu.memory_space<vmem>>, vector<1x32xf32>
    %45 = vector.broadcast %44 : vector<1x32xf32> to vector<8x32xf32>
    %46 = arith.mulf %43, %45 : vector<8x32xf32>
    %c0_21 = arith.constant 0 : index
    %c0_22 = arith.constant 0 : index
    %47 = vector.load %arg7[%c0_21, %c0_22] : memref<1x32xf32, #tpu.memory_space<vmem>>, vector<1x32xf32>
    %48 = vector.broadcast %47 : vector<1x32xf32> to vector<8x32xf32>
    %49 = arith.addf %46, %48 : vector<8x32xf32>
    %c0_23 = arith.constant 0 : index
    %c0_24 = arith.constant 0 : index
    %50 = vector.load %arg8[%c0_23, %c0_24] : memref<8x32xf32, #tpu.memory_space<vmem>>, vector<8x32xf32>
    tpu.vector_store %arg8[%c0_23, %c0_24], %49 {strides = array<i32>} : memref<8x32xf32, #tpu.memory_space<vmem>>, vector<8x32xf32>,
    return
  }
  func.func @transform_0(%arg0: i32) -> (i32, i32) {
    %c0_i32 = arith.constant 0 : i32
    %c0_i32_0 = arith.constant 0 : i32
    return %arg0, %c0_i32 : i32, i32
  }
  func.func @transform_1(%arg0: i32) -> (i32, i32) {
    %c0_i32 = arith.constant 0 : i32
    %c0_i32_0 = arith.constant 0 : i32
    %c0_i32_1 = arith.constant 0 : i32
    return %c0_i32, %c0_i32_0 : i32, i32
  }
  func.func @transform_2(%arg0: i32) -> (i32, i32) {
    %c0_i32 = arith.constant 0 : i32
    %c0_i32_0 = arith.constant 0 : i32
    %c0_i32_1 = arith.constant 0 : i32
    return %c0_i32, %c0_i32_0 : i32, i32
  }
  func.func @transform_3(%arg0: i32) -> (i32, i32) {
    %c0_i32 = arith.constant 0 : i32
    %c0_i32_0 = arith.constant 0 : i32
    %c0_i32_1 = arith.constant 0 : i32
    return %c0_i32, %c0_i32_0 : i32, i32
  }
  func.func @transform_4(%arg0: i32) -> (i32, i32) {
    %c0_i32 = arith.constant 0 : i32
    %c0_i32_0 = arith.constant 0 : i32
    %c0_i32_1 = arith.constant 0 : i32
    return %c0_i32, %c0_i32_0 : i32, i32
  }
  func.func @transform_5(%arg0: i32) -> (i32, i32) {
    %c0_i32 = arith.constant 0 : i32
    %c0_i32_0 = arith.constant 0 : i32
    %c0_i32_1 = arith.constant 0 : i32
    return %c0_i32, %c0_i32_0 : i32, i32
  }
  func.func @transform_6(%arg0: i32) -> (i32, i32) {
    %c0_i32 = arith.constant 0 : i32
    %c0_i32_0 = arith.constant 0 : i32
    %c0_i32_1 = arith.constant 0 : i32
    return %c0_i32, %c0_i32_0 : i32, i32
  }
  func.func @transform_7(%arg0: i32) -> (i32, i32) {
    %c0_i32 = arith.constant 0 : i32
    %c0_i32_0 = arith.constant 0 : i32
    return %arg0, %c0_i32 : i32, i32
  }
}

module attributes {stable_mosaic.version = 11 : i64} {
  func.func @_mlp_ln_kernel(%arg0: i32, %arg1: memref<16x32xf32, #tpu.memory_space<vmem>>, %arg2: memref<32x128xbf16, #tpu.memory_space<vmem>>, %arg3: memref<1x128xf32, #tpu.memory_space<vmem>>, %arg4: memref<128x32xbf16, #tpu.memory_space<vmem>>, %arg5: memref<1x32xf32, #tpu.memory_space<vmem>>, %arg6: memref<1x32xf32, #tpu.memory_space<vmem>>, %arg7: memref<1x32xf32, #tpu.memory_space<vmem>>, %arg8: memref<16x32xf32, #tpu.memory_space<vmem>>) attributes {dimension_semantics = [#tpu.dimension_semantics<parallel>], iteration_bounds = array<i64: 2>, scalar_prefetch = 0 : i64, scratch_operands = 0 : i64, tpu.core_type = #tpu.core_type<tc>, window_params = [{transform_indices = @transform_0, window_bounds = array<i64: 16, 32>}, {pipeline_mode = #tpu.pipeline_mode<synchronous>, transform_indices = @transform_1, window_bounds = array<i64: 32, 128>}, {pipeline_mode = #tpu.pipeline_mode<synchronous>, transform_indices = @transform_2, window_bounds = array<i64: 1, 128>}, {pipeline_mode = #tpu.pipeline_mode<synchronous>, transform_indices = @transform_3, window_bounds = array<i64: 128, 32>}, {pipeline_mode = #tpu.pipeline_mode<synchronous>, transform_indices = @transform_4, window_bounds = array<i64: 1, 32>}, {pipeline_mode = #tpu.pipeline_mode<synchronous>, transform_indices = @transform_5, window_bounds = array<i64: 1, 32>}, {pipeline_mode = #tpu.pipeline_mode<synchronous>, transform_indices = @transform_6, window_bounds = array<i64: 1, 32>}, {transform_indices = @transform_7, window_bounds = array<i64: 16, 32>}]} {
    %c0 = arith.constant 0 : index
    %c0_0 = arith.constant 0 : index
    %0 = vector.load %arg1[%c0, %c0_0] : memref<16x32xf32, #tpu.memory_space<vmem>>, vector<16x32xf32>
    %1 = arith.truncf %0 : vector<16x32xf32> to vector<16x32xbf16>
    %c0_1 = arith.constant 0 : index
    %c0_2 = arith.constant 0 : index
    %2 = vector.load %arg2[%c0_1, %c0_2] : memref<32x128xbf16, #tpu.memory_space<vmem>>, vector<32x128xbf16>
    %cst = arith.constant dense<0.000000e+00> : vector<16x128xf32>
    %3 = tpu.matmul %1, %2, %cst {dimension_numbers = #tpu.dot_dimension_numbers<[1], [0], [0], [1], [0, 0, 1, 1], [], []>} : vector<16x32xbf16>, vector<32x128xbf16>, vector<16x128xf32> -> vector<16x128xf32>
    %c0_3 = arith.constant 0 : index
    %c0_4 = arith.constant 0 : index
    %4 = vector.load %arg3[%c0_3, %c0_4] : memref<1x128xf32, #tpu.memory_space<vmem>>, vector<1x128xf32>
    %5 = vector.broadcast %4 : vector<1x128xf32> to vector<16x128xf32>
    %6 = arith.addf %3, %5 : vector<16x128xf32>
    %cst_5 = arith.constant 5.000000e-01 : f32
    %7 = vector.broadcast %cst_5 : f32 to vector<16x128xf32>
    %8 = arith.mulf %7, %6 : vector<16x128xf32>
    %cst_6 = arith.constant 4.471500e-02 : f32
    %9 = vector.broadcast %cst_6 : f32 to vector<16x128xf32>
    %10 = arith.mulf %9, %6 : vector<16x128xf32>
    %11 = arith.mulf %10, %6 : vector<16x128xf32>
    %12 = arith.mulf %11, %6 : vector<16x128xf32>
    %13 = arith.addf %6, %12 : vector<16x128xf32>
    %cst_7 = arith.constant 0.797884583 : f32
    %14 = vector.broadcast %cst_7 : f32 to vector<16x128xf32>
    %15 = arith.mulf %14, %13 : vector<16x128xf32>
    %16 = math.tanh %15 : vector<16x128xf32>
    %cst_8 = arith.constant 1.000000e+00 : f32
    %17 = vector.broadcast %cst_8 : f32 to vector<16x128xf32>
    %18 = arith.addf %17, %16 : vector<16x128xf32>
    %19 = arith.mulf %8, %18 : vector<16x128xf32>
    %20 = arith.truncf %19 : vector<16x128xf32> to vector<16x128xbf16>
    %c0_9 = arith.constant 0 : index
    %c0_10 = arith.constant 0 : index
    %21 = vector.load %arg4[%c0_9, %c0_10] : memref<128x32xbf16, #tpu.memory_space<vmem>>, vector<128x32xbf16>
    %cst_11 = arith.constant dense<0.000000e+00> : vector<16x32xf32>
    %22 = tpu.matmul %20, %21, %cst_11 {dimension_numbers = #tpu.dot_dimension_numbers<[1], [0], [0], [1], [0, 0, 1, 1], [], []>} : vector<16x128xbf16>, vector<128x32xbf16>, vector<16x32xf32> -> vector<16x32xf32>
    %c0_12 = arith.constant 0 : index
    %c0_13 = arith.constant 0 : index
    %23 = vector.load %arg5[%c0_12, %c0_13] : memref<1x32xf32, #tpu.memory_space<vmem>>, vector<1x32xf32>
    %24 = vector.broadcast %23 : vector<1x32xf32> to vector<16x32xf32>
    %25 = arith.addf %22, %24 : vector<16x32xf32>
    %26 = arith.addf %25, %0 : vector<16x32xf32>
    %cst_14 = arith.constant dense<0.000000e+00> : vector<16xf32>
    %27 = vector.multi_reduction <add>, %26, %cst_14 [1] : vector<16x32xf32> to vector<16xf32>
    %28 = vector.shape_cast %27 : vector<16xf32> to vector<16x1xf32>
    %cst_15 = arith.constant 3.200000e+01 : f32
    %29 = vector.broadcast %cst_15 : f32 to vector<16x1xf32>
    %30 = arith.divf %28, %29 : vector<16x1xf32>
    %31 = vector.broadcast %30 : vector<16x1xf32> to vector<16x32xf32>
    %32 = arith.subf %26, %31 : vector<16x32xf32>
    %33 = arith.mulf %32, %32 : vector<16x32xf32>
    %cst_16 = arith.constant dense<0.000000e+00> : vector<16xf32>
    %34 = vector.multi_reduction <add>, %33, %cst_16 [1] : vector<16x32xf32> to vector<16xf32>
    %35 = vector.shape_cast %34 : vector<16xf32> to vector<16x1xf32>
    %cst_17 = arith.constant 3.200000e+01 : f32
    %36 = vector.broadcast %cst_17 : f32 to vector<16x1xf32>
    %37 = arith.divf %35, %36 : vector<16x1xf32>
    %38 = vector.broadcast %30 : vector<16x1xf32> to vector<16x32xf32>
    %39 = arith.subf %26, %38 : vector<16x32xf32>
    %cst_18 = arith.constant 9.99999974E-6 : f32
    %40 = vector.broadcast %cst_18 : f32 to vector<16x1xf32>
    %41 = arith.addf %37, %40 : vector<16x1xf32>
    %42 = math.rsqrt %41 : vector<16x1xf32>
    %43 = vector.broadcast %42 : vector<16x1xf32> to vector<16x32xf32>
    %44 = arith.mulf %39, %43 : vector<16x32xf32>
    %c0_19 = arith.constant 0 : index
    %c0_20 = arith.constant 0 : index
    %45 = vector.load %arg6[%c0_19, %c0_20] : memref<1x32xf32, #tpu.memory_space<vmem>>, vector<1x32xf32>
    %46 = vector.broadcast %45 : vector<1x32xf32> to vector<16x32xf32>
    %47 = arith.mulf %44, %46 : vector<16x32xf32>
    %c0_21 = arith.constant 0 : index
    %c0_22 = arith.constant 0 : index
    %48 = vector.load %arg7[%c0_21, %c0_22] : memref<1x32xf32, #tpu.memory_space<vmem>>, vector<1x32xf32>
    %49 = vector.broadcast %48 : vector<1x32xf32> to vector<16x32xf32>
    %50 = arith.addf %47, %49 : vector<16x32xf32>
    %c0_23 = arith.constant 0 : index
    %c0_24 = arith.constant 0 : index
    %51 = vector.load %arg8[%c0_23, %c0_24] : memref<16x32xf32, #tpu.memory_space<vmem>>, vector<16x32xf32>
    tpu.vector_store %arg8[%c0_23, %c0_24], %50 {strides = array<i32>} : memref<16x32xf32, #tpu.memory_space<vmem>>, vector<16x32xf32>,
    return
  }
  func.func @transform_0(%arg0: i32) -> (i32, i32) {
    %c0_i32 = arith.constant 0 : i32
    %c0_i32_0 = arith.constant 0 : i32
    return %arg0, %c0_i32 : i32, i32
  }
  func.func @transform_1(%arg0: i32) -> (i32, i32) {
    %c0_i32 = arith.constant 0 : i32
    %c0_i32_0 = arith.constant 0 : i32
    %c0_i32_1 = arith.constant 0 : i32
    return %c0_i32, %c0_i32_0 : i32, i32
  }
  func.func @transform_2(%arg0: i32) -> (i32, i32) {
    %c0_i32 = arith.constant 0 : i32
    %c0_i32_0 = arith.constant 0 : i32
    %c0_i32_1 = arith.constant 0 : i32
    return %c0_i32, %c0_i32_0 : i32, i32
  }
  func.func @transform_3(%arg0: i32) -> (i32, i32) {
    %c0_i32 = arith.constant 0 : i32
    %c0_i32_0 = arith.constant 0 : i32
    %c0_i32_1 = arith.constant 0 : i32
    return %c0_i32, %c0_i32_0 : i32, i32
  }
  func.func @transform_4(%arg0: i32) -> (i32, i32) {
    %c0_i32 = arith.constant 0 : i32
    %c0_i32_0 = arith.constant 0 : i32
    %c0_i32_1 = arith.constant 0 : i32
    return %c0_i32, %c0_i32_0 : i32, i32
  }
  func.func @transform_5(%arg0: i32) -> (i32, i32) {
    %c0_i32 = arith.constant 0 : i32
    %c0_i32_0 = arith.constant 0 : i32
    %c0_i32_1 = arith.constant 0 : i32
    return %c0_i32, %c0_i32_0 : i32, i32
  }
  func.func @transform_6(%arg0: i32) -> (i32, i32) {
    %c0_i32 = arith.constant 0 : i32
    %c0_i32_0 = arith.constant 0 : i32
    %c0_i32_1 = arith.constant 0 : i32
    return %c0_i32, %c0_i32_0 : i32, i32
  }
  func.func @transform_7(%arg0: i32) -> (i32, i32) {
    %c0_i32 = arith.constant 0 : i32
    %c0_i32_0 = arith.constant 0 : i32
    return %arg0, %c0_i32 : i32, i32
  }
}

module attributes {stable_mosaic.version = 11 : i64} {
  func.func @_mha_ln_kernel(%arg0: i32, %arg1: memref<1x16x32xf32, #tpu.memory_space<vmem>>, %arg2: memref<1x16x32xf32, #tpu.memory_space<vmem>>, %arg3: memref<1x16x32xf32, #tpu.memory_space<vmem>>, %arg4: memref<1x16x32xf32, #tpu.memory_space<vmem>>, %arg5: memref<1x16x32xf32, #tpu.memory_space<vmem>>, %arg6: memref<1x1x16xf32, #tpu.memory_space<vmem>>, %arg7: memref<32x32xbf16, #tpu.memory_space<vmem>>, %arg8: memref<1x32xf32, #tpu.memory_space<vmem>>, %arg9: memref<32x32xbf16, #tpu.memory_space<vmem>>, %arg10: memref<1x32xf32, #tpu.memory_space<vmem>>, %arg11: memref<32x32xbf16, #tpu.memory_space<vmem>>, %arg12: memref<1x32xf32, #tpu.memory_space<vmem>>, %arg13: memref<32x32xbf16, #tpu.memory_space<vmem>>, %arg14: memref<1x32xf32, #tpu.memory_space<vmem>>, %arg15: memref<1x32xf32, #tpu.memory_space<vmem>>, %arg16: memref<1x32xf32, #tpu.memory_space<vmem>>, %arg17: memref<1x16x32xf32, #tpu.memory_space<vmem>>) attributes {dimension_semantics = [#tpu.dimension_semantics<parallel>], iteration_bounds = array<i64: 2>, scalar_prefetch = 0 : i64, scratch_operands = 0 : i64, tpu.core_type = #tpu.core_type<tc>, window_params = [{transform_indices = @transform_0, window_bounds = array<i64: 1, 16, 32>}, {pipeline_mode = #tpu.pipeline_mode<synchronous>, transform_indices = @transform_1, window_bounds = array<i64: 1, 16, 32>}, {transform_indices = @transform_2, window_bounds = array<i64: 1, 16, 32>}, {pipeline_mode = #tpu.pipeline_mode<synchronous>, transform_indices = @transform_3, window_bounds = array<i64: 1, 16, 32>}, {transform_indices = @transform_4, window_bounds = array<i64: 1, 16, 32>}, {transform_indices = @transform_5, window_bounds = array<i64: 1, 1, 16>}, {pipeline_mode = #tpu.pipeline_mode<synchronous>, transform_indices = @transform_6, window_bounds = array<i64: 32, 32>}, {pipeline_mode = #tpu.pipeline_mode<synchronous>, transform_indices = @transform_7, window_bounds = array<i64: 1, 32>}, {pipeline_mode = #tpu.pipeline_mode<synchronous>, transform_indices = @transform_8, window_bounds = array<i64: 32, 32>}, {pipeline_mode = #tpu.pipeline_mode<synchronous>, transform_indices = @transform_9, window_bounds = array<i64: 1, 32>}, {pipeline_mode = #tpu.pipeline_mode<synchronous>, transform_indices = @transform_10, window_bounds = array<i64: 32, 32>}, {pipeline_mode = #tpu.pipeline_mode<synchronous>, transform_indices = @transform_11, window_bounds = array<i64: 1, 32>}, {pipeline_mode = #tpu.pipeline_mode<synchronous>, transform_indices = @transform_12, window_bounds = array<i64: 32, 32>}, {pipeline_mode = #tpu.pipeline_mode<synchronous>, transform_indices = @transform_13, window_bounds = array<i64: 1, 32>}, {pipeline_mode = #tpu.pipeline_mode<synchronous>, transform_indices = @transform_14, window_bounds = array<i64: 1, 32>}, {pipeline_mode = #tpu.pipeline_mode<synchronous>, transform_indices = @transform_15, window_bounds = array<i64: 1, 32>}, {transform_indices = @transform_16, window_bounds = array<i64: 1, 16, 32>}]} {
    %c0 = arith.constant 0 : index
    %c0_0 = arith.constant 0 : index
    %c0_1 = arith.constant 0 : index
    %0 = vector.load %arg1[%c0, %c0_0, %c0_1] : memref<1x16x32xf32, #tpu.memory_space<vmem>>, vector<1x16x32xf32>
    %1 = vector.shape_cast %0 : vector<1x16x32xf32> to vector<16x32xf32>
    %c0_2 = arith.constant 0 : index
    %c0_3 = arith.constant 0 : index
    %c0_4 = arith.constant 0 : index
    %2 = vector.load %arg2[%c0_2, %c0_3, %c0_4] : memref<1x16x32xf32, #tpu.memory_space<vmem>>, vector<1x16x32xf32>
    %3 = vector.shape_cast %2 : vector<1x16x32xf32> to vector<16x32xf32>
    %4 = arith.addf %1, %3 : vector<16x32xf32>
    %5 = arith.truncf %4 : vector<16x32xf32> to vector<16x32xbf16>
    %c0_5 = arith.constant 0 : index
    %c0_6 = arith.constant 0 : index
    %c0_7 = arith.constant 0 : index
    %6 = vector.load %arg3[%c0_5, %c0_6, %c0_7] : memref<1x16x32xf32, #tpu.memory_space<vmem>>, vector<1x16x32xf32>
    %7 = vector.shape_cast %6 : vector<1x16x32xf32> to vector<16x32xf32>
    %c0_8 = arith.constant 0 : index
    %c0_9 = arith.constant 0 : index
    %c0_10 = arith.constant 0 : index
    %8 = vector.load %arg4[%c0_8, %c0_9, %c0_10] : memref<1x16x32xf32, #tpu.memory_space<vmem>>, vector<1x16x32xf32>
    %9 = vector.shape_cast %8 : vector<1x16x32xf32> to vector<16x32xf32>
    %10 = arith.addf %7, %9 : vector<16x32xf32>
    %11 = arith.truncf %10 : vector<16x32xf32> to vector<16x32xbf16>
    %c0_11 = arith.constant 0 : index
    %c0_12 = arith.constant 0 : index
    %c0_13 = arith.constant 0 : index
    %12 = vector.load %arg5[%c0_11, %c0_12, %c0_13] : memref<1x16x32xf32, #tpu.memory_space<vmem>>, vector<1x16x32xf32>
    %13 = vector.shape_cast %12 : vector<1x16x32xf32> to vector<16x32xf32>
    %14 = arith.truncf %13 : vector<16x32xf32> to vector<16x32xbf16>
    %c0_14 = arith.constant 0 : index
    %c0_15 = arith.constant 0 : index
    %15 = vector.load %arg7[%c0_14, %c0_15] : memref<32x32xbf16, #tpu.memory_space<vmem>>, vector<32x32xbf16>
    %cst = arith.constant dense<0.000000e+00> : vector<16x32xf32>
    %16 = tpu.matmul %5, %15, %cst {dimension_numbers = #tpu.dot_dimension_numbers<[1], [0], [0], [1], [0, 0, 1, 1], [], []>} : vector<16x32xbf16>, vector<32x32xbf16>, vector<16x32xf32> -> vector<16x32xf32>
    %c0_16 = arith.constant 0 : index
    %c0_17 = arith.constant 0 : index
    %17 = vector.load %arg8[%c0_16, %c0_17] : memref<1x32xf32, #tpu.memory_space<vmem>>, vector<1x32xf32>
    %18 = vector.broadcast %17 : vector<1x32xf32> to vector<16x32xf32>
    %19 = arith.addf %16, %18 : vector<16x32xf32>
    %c0_18 = arith.constant 0 : index
    %c0_19 = arith.constant 0 : index
    %20 = vector.load %arg9[%c0_18, %c0_19] : memref<32x32xbf16, #tpu.memory_space<vmem>>, vector<32x32xbf16>
    %cst_20 = arith.constant dense<0.000000e+00> : vector<16x32xf32>
    %21 = tpu.matmul %11, %20, %cst_20 {dimension_numbers = #tpu.dot_dimension_numbers<[1], [0], [0], [1], [0, 0, 1, 1], [], []>} : vector<16x32xbf16>, vector<32x32xbf16>, vector<16x32xf32> -> vector<16x32xf32>
    %c0_21 = arith.constant 0 : index
    %c0_22 = arith.constant 0 : index
    %22 = vector.load %arg10[%c0_21, %c0_22] : memref<1x32xf32, #tpu.memory_space<vmem>>, vector<1x32xf32>
    %23 = vector.broadcast %22 : vector<1x32xf32> to vector<16x32xf32>
    %24 = arith.addf %21, %23 : vector<16x32xf32>
    %c0_23 = arith.constant 0 : index
    %c0_24 = arith.constant 0 : index
    %25 = vector.load %arg11[%c0_23, %c0_24] : memref<32x32xbf16, #tpu.memory_space<vmem>>, vector<32x32xbf16>
    %cst_25 = arith.constant dense<0.000000e+00> : vector<16x32xf32>
    %26 = tpu.matmul %14, %25, %cst_25 {dimension_numbers = #tpu.dot_dimension_numbers<[1], [0], [0], [1], [0, 0, 1, 1], [], []>} : vector<16x32xbf16>, vector<32x32xbf16>, vector<16x32xf32> -> vector<16x32xf32>
    %c0_26 = arith.constant 0 : index
    %c0_27 = arith.constant 0 : index
    %27 = vector.load %arg12[%c0_26, %c0_27] : memref<1x32xf32, #tpu.memory_space<vmem>>, vector<1x32xf32>
    %28 = vector.broadcast %27 : vector<1x32xf32> to vector<16x32xf32>
    %29 = arith.addf %26, %28 : vector<16x32xf32>
    %30 = arith.truncf %19 : vector<16x32xf32> to vector<16x32xbf16>
    %31 = arith.truncf %24 : vector<16x32xf32> to vector<16x32xbf16>
    %32 = arith.truncf %29 : vector<16x32xf32> to vector<16x32xbf16>
    %c0_28 = arith.constant 0 : index
    %c0_29 = arith.constant 0 : index
    %c0_30 = arith.constant 0 : index
    %33 = vector.load %arg6[%c0_28, %c0_29, %c0_30] : memref<1x1x16xf32, #tpu.memory_space<vmem>>, vector<1x1x16xf32>
    %34 = vector.shape_cast %33 : vector<1x1x16xf32> to vector<1x16xf32>
    %cst_31 = arith.constant 0.000000e+00 : f32
    %35 = vector.broadcast %cst_31 : f32 to vector<16x32xf32>
    %36 = vector.extract_strided_slice %30 {offsets = [0, 0], sizes = [16, 8], strides = [1, 1]} : vector<16x32xbf16> to vector<16x8xbf16>
    %37 = vector.extract_strided_slice %31 {offsets = [0, 0], sizes = [16, 8], strides = [1, 1]} : vector<16x32xbf16> to vector<16x8xbf16>
    %cst_32 = arith.constant dense<0.000000e+00> : vector<16x16xf32>
    %38 = tpu.matmul %36, %37, %cst_32 {dimension_numbers = #tpu.dot_dimension_numbers<[1], [1], [0], [0], [0, 0, 1, 0], [], []>} : vector<16x8xbf16>, vector<16x8xbf16>, vector<16x16xf32> -> vector<16x16xf32>
    %cst_33 = arith.constant 0.353553385 : f32
    %39 = vector.broadcast %cst_33 : f32 to vector<16x16xf32>
    %40 = arith.mulf %38, %39 : vector<16x16xf32>
    %41 = vector.broadcast %34 : vector<1x16xf32> to vector<16x16xf32>
    %42 = arith.addf %40, %41 : vector<16x16xf32>
    %cst_34 = arith.constant dense<0xFF800000> : vector<16xf32>
    %43 = vector.multi_reduction <maximumf>, %42, %cst_34 [1] : vector<16x16xf32> to vector<16xf32>
    %44 = vector.shape_cast %43 : vector<16xf32> to vector<16x1xf32>
    %45 = vector.broadcast %44 : vector<16x1xf32> to vector<16x16xf32>
    %46 = arith.subf %42, %45 : vector<16x16xf32>
    %47 = math.exp %46 : vector<16x16xf32>
    %cst_35 = arith.constant dense<0.000000e+00> : vector<16xf32>
    %48 = vector.multi_reduction <add>, %47, %cst_35 [1] : vector<16x16xf32> to vector<16xf32>
    %49 = vector.shape_cast %48 : vector<16xf32> to vector<16x1xf32>
    %50 = arith.truncf %47 : vector<16x16xf32> to vector<16x16xbf16>
    %51 = vector.extract_strided_slice %32 {offsets = [0, 0], sizes = [16, 8], strides = [1, 1]} : vector<16x32xbf16> to vector<16x8xbf16>
    %cst_36 = arith.constant dense<0.000000e+00> : vector<16x8xf32>
    %52 = tpu.matmul %50, %51, %cst_36 {dimension_numbers = #tpu.dot_dimension_numbers<[1], [0], [0], [1], [0, 0, 1, 1], [], []>} : vector<16x16xbf16>, vector<16x8xbf16>, vector<16x8xf32> -> vector<16x8xf32>
    %53 = tpu.reciprocal %49 {approx = true} : vector<16x1xf32> -> vector<16x1xf32>
    %54 = vector.broadcast %53 : vector<16x1xf32> to vector<16x8xf32>
    %55 = arith.mulf %52, %54 : vector<16x8xf32>
    %56 = arith.truncf %55 : vector<16x8xf32> to vector<16x8xbf16>
    %c0_37 = arith.constant 0 : index
    %c0_38 = arith.constant 0 : index
    %57 = vector.load %arg13[%c0_37, %c0_38] : memref<32x32xbf16, #tpu.memory_space<vmem>>, vector<8x32xbf16>
    %cst_39 = arith.constant dense<0.000000e+00> : vector<16x32xf32>
    %58 = tpu.matmul %56, %57, %cst_39 {dimension_numbers = #tpu.dot_dimension_numbers<[1], [0], [0], [1], [0, 0, 1, 1], [], []>} : vector<16x8xbf16>, vector<8x32xbf16>, vector<16x32xf32> -> vector<16x32xf32>
    %59 = arith.addf %35, %58 : vector<16x32xf32>
    %60 = vector.extract_strided_slice %30 {offsets = [0, 8], sizes = [16, 8], strides = [1, 1]} : vector<16x32xbf16> to vector<16x8xbf16>
    %61 = vector.extract_strided_slice %31 {offsets = [0, 8], sizes = [16, 8], strides = [1, 1]} : vector<16x32xbf16> to vector<16x8xbf16>
    %cst_40 = arith.constant dense<0.000000e+00> : vector<16x16xf32>
    %62 = tpu.matmul %60, %61, %cst_40 {dimension_numbers = #tpu.dot_dimension_numbers<[1], [1], [0], [0], [0, 0, 1, 0], [], []>} : vector<16x8xbf16>, vector<16x8xbf16>, vector<16x16xf32> -> vector<16x16xf32>
    %cst_41 = arith.constant 0.353553385 : f32
    %63 = vector.broadcast %cst_41 : f32 to vector<16x16xf32>
    %64 = arith.mulf %62, %63 : vector<16x16xf32>
    %65 = vector.broadcast %34 : vector<1x16xf32> to vector<16x16xf32>
    %66 = arith.addf %64, %65 : vector<16x16xf32>
    %cst_42 = arith.constant dense<0xFF800000> : vector<16xf32>
    %67 = vector.multi_reduction <maximumf>, %66, %cst_42 [1] : vector<16x16xf32> to vector<16xf32>
    %68 = vector.shape_cast %67 : vector<16xf32> to vector<16x1xf32>
    %69 = vector.broadcast %68 : vector<16x1xf32> to vector<16x16xf32>
    %70 = arith.subf %66, %69 : vector<16x16xf32>
    %71 = math.exp %70 : vector<16x16xf32>
    %cst_43 = arith.constant dense<0.000000e+00> : vector<16xf32>
    %72 = vector.multi_reduction <add>, %71, %cst_43 [1] : vector<16x16xf32> to vector<16xf32>
    %73 = vector.shape_cast %72 : vector<16xf32> to vector<16x1xf32>
    %74 = arith.truncf %71 : vector<16x16xf32> to vector<16x16xbf16>
    %75 = vector.extract_strided_slice %32 {offsets = [0, 8], sizes = [16, 8], strides = [1, 1]} : vector<16x32xbf16> to vector<16x8xbf16>
    %cst_44 = arith.constant dense<0.000000e+00> : vector<16x8xf32>
    %76 = tpu.matmul %74, %75, %cst_44 {dimension_numbers = #tpu.dot_dimension_numbers<[1], [0], [0], [1], [0, 0, 1, 1], [], []>} : vector<16x16xbf16>, vector<16x8xbf16>, vector<16x8xf32> -> vector<16x8xf32>
    %77 = tpu.reciprocal %73 {approx = true} : vector<16x1xf32> -> vector<16x1xf32>
    %78 = vector.broadcast %77 : vector<16x1xf32> to vector<16x8xf32>
    %79 = arith.mulf %76, %78 : vector<16x8xf32>
    %80 = arith.truncf %79 : vector<16x8xf32> to vector<16x8xbf16>
    %c8 = arith.constant 8 : index
    %c0_45 = arith.constant 0 : index
    %81 = vector.load %arg13[%c8, %c0_45] : memref<32x32xbf16, #tpu.memory_space<vmem>>, vector<8x32xbf16>
    %cst_46 = arith.constant dense<0.000000e+00> : vector<16x32xf32>
    %82 = tpu.matmul %80, %81, %cst_46 {dimension_numbers = #tpu.dot_dimension_numbers<[1], [0], [0], [1], [0, 0, 1, 1], [], []>} : vector<16x8xbf16>, vector<8x32xbf16>, vector<16x32xf32> -> vector<16x32xf32>
    %83 = arith.addf %59, %82 : vector<16x32xf32>
    %84 = vector.extract_strided_slice %30 {offsets = [0, 16], sizes = [16, 8], strides = [1, 1]} : vector<16x32xbf16> to vector<16x8xbf16>
    %85 = vector.extract_strided_slice %31 {offsets = [0, 16], sizes = [16, 8], strides = [1, 1]} : vector<16x32xbf16> to vector<16x8xbf16>
    %cst_47 = arith.constant dense<0.000000e+00> : vector<16x16xf32>
    %86 = tpu.matmul %84, %85, %cst_47 {dimension_numbers = #tpu.dot_dimension_numbers<[1], [1], [0], [0], [0, 0, 1, 0], [], []>} : vector<16x8xbf16>, vector<16x8xbf16>, vector<16x16xf32> -> vector<16x16xf32>
    %cst_48 = arith.constant 0.353553385 : f32
    %87 = vector.broadcast %cst_48 : f32 to vector<16x16xf32>
    %88 = arith.mulf %86, %87 : vector<16x16xf32>
    %89 = vector.broadcast %34 : vector<1x16xf32> to vector<16x16xf32>
    %90 = arith.addf %88, %89 : vector<16x16xf32>
    %cst_49 = arith.constant dense<0xFF800000> : vector<16xf32>
    %91 = vector.multi_reduction <maximumf>, %90, %cst_49 [1] : vector<16x16xf32> to vector<16xf32>
    %92 = vector.shape_cast %91 : vector<16xf32> to vector<16x1xf32>
    %93 = vector.broadcast %92 : vector<16x1xf32> to vector<16x16xf32>
    %94 = arith.subf %90, %93 : vector<16x16xf32>
    %95 = math.exp %94 : vector<16x16xf32>
    %cst_50 = arith.constant dense<0.000000e+00> : vector<16xf32>
    %96 = vector.multi_reduction <add>, %95, %cst_50 [1] : vector<16x16xf32> to vector<16xf32>
    %97 = vector.shape_cast %96 : vector<16xf32> to vector<16x1xf32>
    %98 = arith.truncf %95 : vector<16x16xf32> to vector<16x16xbf16>
    %99 = vector.extract_strided_slice %32 {offsets = [0, 16], sizes = [16, 8], strides = [1, 1]} : vector<16x32xbf16> to vector<16x8xbf16>
    %cst_51 = arith.constant dense<0.000000e+00> : vector<16x8xf32>
    %100 = tpu.matmul %98, %99, %cst_51 {dimension_numbers = #tpu.dot_dimension_numbers<[1], [0], [0], [1], [0, 0, 1, 1], [], []>} : vector<16x16xbf16>, vector<16x8xbf16>, vector<16x8xf32> -> vector<16x8xf32>
    %101 = tpu.reciprocal %97 {approx = true} : vector<16x1xf32> -> vector<16x1xf32>
    %102 = vector.broadcast %101 : vector<16x1xf32> to vector<16x8xf32>
    %103 = arith.mulf %100, %102 : vector<16x8xf32>
    %104 = arith.truncf %103 : vector<16x8xf32> to vector<16x8xbf16>
    %c16 = arith.constant 16 : index
    %c0_52 = arith.constant 0 : index
    %105 = vector.load %arg13[%c16, %c0_52] : memref<32x32xbf16, #tpu.memory_space<vmem>>, vector<8x32xbf16>
    %cst_53 = arith.constant dense<0.000000e+00> : vector<16x32xf32>
    %106 = tpu.matmul %104, %105, %cst_53 {dimension_numbers = #tpu.dot_dimension_numbers<[1], [0], [0], [1], [0, 0, 1, 1], [], []>} : vector<16x8xbf16>, vector<8x32xbf16>, vector<16x32xf32> -> vector<16x32xf32>
    %107 = arith.addf %83, %106 : vector<16x32xf32>
    %108 = vector.extract_strided_slice %30 {offsets = [0, 24], sizes = [16, 8], strides = [1, 1]} : vector<16x32xbf16> to vector<16x8xbf16>
    %109 = vector.extract_strided_slice %31 {offsets = [0, 24], sizes = [16, 8], strides = [1, 1]} : vector<16x32xbf16> to vector<16x8xbf16>
    %cst_54 = arith.constant dense<0.000000e+00> : vector<16x16xf32>
    %110 = tpu.matmul %108, %109, %cst_54 {dimension_numbers = #tpu.dot_dimension_numbers<[1], [1], [0], [0], [0, 0, 1, 0], [], []>} : vector<16x8xbf16>, vector<16x8xbf16>, vector<16x16xf32> -> vector<16x16xf32>
    %cst_55 = arith.constant 0.353553385 : f32
    %111 = vector.broadcast %cst_55 : f32 to vector<16x16xf32>
    %112 = arith.mulf %110, %111 : vector<16x16xf32>
    %113 = vector.broadcast %34 : vector<1x16xf32> to vector<16x16xf32>
    %114 = arith.addf %112, %113 : vector<16x16xf32>
    %cst_56 = arith.constant dense<0xFF800000> : vector<16xf32>
    %115 = vector.multi_reduction <maximumf>, %114, %cst_56 [1] : vector<16x16xf32> to vector<16xf32>
    %116 = vector.shape_cast %115 : vector<16xf32> to vector<16x1xf32>
    %117 = vector.broadcast %116 : vector<16x1xf32> to vector<16x16xf32>
    %118 = arith.subf %114, %117 : vector<16x16xf32>
    %119 = math.exp %118 : vector<16x16xf32>
    %cst_57 = arith.constant dense<0.000000e+00> : vector<16xf32>
    %120 = vector.multi_reduction <add>, %119, %cst_57 [1] : vector<16x16xf32> to vector<16xf32>
    %121 = vector.shape_cast %120 : vector<16xf32> to vector<16x1xf32>
    %122 = arith.truncf %119 : vector<16x16xf32> to vector<16x16xbf16>
    %123 = vector.extract_strided_slice %32 {offsets = [0, 24], sizes = [16, 8], strides = [1, 1]} : vector<16x32xbf16> to vector<16x8xbf16>
    %cst_58 = arith.constant dense<0.000000e+00> : vector<16x8xf32>
    %124 = tpu.matmul %122, %123, %cst_58 {dimension_numbers = #tpu.dot_dimension_numbers<[1], [0], [0], [1], [0, 0, 1, 1], [], []>} : vector<16x16xbf16>, vector<16x8xbf16>, vector<16x8xf32> -> vector<16x8xf32>
    %125 = tpu.reciprocal %121 {approx = true} : vector<16x1xf32> -> vector<16x1xf32>
    %126 = vector.broadcast %125 : vector<16x1xf32> to vector<16x8xf32>
    %127 = arith.mulf %124, %126 : vector<16x8xf32>
    %128 = arith.truncf %127 : vector<16x8xf32> to vector<16x8xbf16>
    %c24 = arith.constant 24 : index
    %c0_59 = arith.constant 0 : index
    %129 = vector.load %arg13[%c24, %c0_59] : memref<32x32xbf16, #tpu.memory_space<vmem>>, vector<8x32xbf16>
    %cst_60 = arith.constant dense<0.000000e+00> : vector<16x32xf32>
    %130 = tpu.matmul %128, %129, %cst_60 {dimension_numbers = #tpu.dot_dimension_numbers<[1], [0], [0], [1], [0, 0, 1, 1], [], []>} : vector<16x8xbf16>, vector<8x32xbf16>, vector<16x32xf32> -> vector<16x32xf32>
    %131 = arith.addf %107, %130 : vector<16x32xf32>
    %c0_61 = arith.constant 0 : index
    %c0_62 = arith.constant 0 : index
    %132 = vector.load %arg14[%c0_61, %c0_62] : memref<1x32xf32, #tpu.memory_space<vmem>>, vector<1x32xf32>
    %133 = vector.broadcast %132 : vector<1x32xf32> to vector<16x32xf32>
    %134 = arith.addf %131, %133 : vector<16x32xf32>
    %135 = arith.addf %1, %134 : vector<16x32xf32>
    %cst_63 = arith.constant dense<0.000000e+00> : vector<16xf32>
    %136 = vector.multi_reduction <add>, %135, %cst_63 [1] : vector<16x32xf32> to vector<16xf32>
    %137 = vector.shape_cast %136 : vector<16xf32> to vector<16x1xf32>
    %cst_64 = arith.constant 3.200000e+01 : f32
    %138 = vector.broadcast %cst_64 : f32 to vector<16x1xf32>
    %139 = arith.divf %137, %138 : vector<16x1xf32>
    %140 = vector.broadcast %139 : vector<16x1xf32> to vector<16x32xf32>
    %141 = arith.subf %135, %140 : vector<16x32xf32>
    %142 = arith.mulf %141, %141 : vector<16x32xf32>
    %cst_65 = arith.constant dense<0.000000e+00> : vector<16xf32>
    %143 = vector.multi_reduction <add>, %142, %cst_65 [1] : vector<16x32xf32> to vector<16xf32>
    %144 = vector.shape_cast %143 : vector<16xf32> to vector<16x1xf32>
    %cst_66 = arith.constant 3.200000e+01 : f32
    %145 = vector.broadcast %cst_66 : f32 to vector<16x1xf32>
    %146 = arith.divf %144, %145 : vector<16x1xf32>
    %147 = vector.broadcast %139 : vector<16x1xf32> to vector<16x32xf32>
    %148 = arith.subf %135, %147 : vector<16x32xf32>
    %cst_67 = arith.constant 9.99999974E-6 : f32
    %149 = vector.broadcast %cst_67 : f32 to vector<16x1xf32>
    %150 = arith.addf %146, %149 : vector<16x1xf32>
    %151 = math.rsqrt %150 : vector<16x1xf32>
    %152 = vector.broadcast %151 : vector<16x1xf32> to vector<16x32xf32>
    %153 = arith.mulf %148, %152 : vector<16x32xf32>
    %c0_68 = arith.constant 0 : index
    %c0_69 = arith.constant 0 : index
    %154 = vector.load %arg15[%c0_68, %c0_69] : memref<1x32xf32, #tpu.memory_space<vmem>>, vector<1x32xf32>
    %155 = vector.broadcast %154 : vector<1x32xf32> to vector<16x32xf32>
    %156 = arith.mulf %153, %155 : vector<16x32xf32>
    %c0_70 = arith.constant 0 : index
    %c0_71 = arith.constant 0 : index
    %157 = vector.load %arg16[%c0_70, %c0_71] : memref<1x32xf32, #tpu.memory_space<vmem>>, vector<1x32xf32>
    %158 = vector.broadcast %157 : vector<1x32xf32> to vector<16x32xf32>
    %159 = arith.addf %156, %158 : vector<16x32xf32>
    %c0_72 = arith.constant 0 : index
    %c0_73 = arith.constant 0 : index
    %c0_74 = arith.constant 0 : index
    %160 = vector.load %arg17[%c0_72, %c0_73, %c0_74] : memref<1x16x32xf32, #tpu.memory_space<vmem>>, vector<1x16x32xf32>
    %161 = vector.shape_cast %160 : vector<1x16x32xf32> to vector<16x32xf32>
    %162 = vector.shape_cast %159 : vector<16x32xf32> to vector<1x16x32xf32>
    tpu.vector_store %arg17[%c0_72, %c0_73, %c0_74], %162 {strides = array<i32>} : memref<1x16x32xf32, #tpu.memory_space<vmem>>, vector<1x16x32xf32>,
    return
  }
  func.func @transform_0(%arg0: i32) -> (i32, i32, i32) {
    %c0_i32 = arith.constant 0 : i32
    %c0_i32_0 = arith.constant 0 : i32
    %c0_i32_1 = arith.constant 0 : i32
    return %arg0, %c0_i32, %c0_i32_0 : i32, i32, i32
  }
  func.func @transform_1(%arg0: i32) -> (i32, i32, i32) {
    %c0_i32 = arith.constant 0 : i32
    %c0_i32_0 = arith.constant 0 : i32
    %c0_i32_1 = arith.constant 0 : i32
    %c0_i32_2 = arith.constant 0 : i32
    return %c0_i32, %c0_i32_0, %c0_i32_1 : i32, i32, i32
  }
  func.func @transform_2(%arg0: i32) -> (i32, i32, i32) {
    %c0_i32 = arith.constant 0 : i32
    %c0_i32_0 = arith.constant 0 : i32
    %c0_i32_1 = arith.constant 0 : i32
    return %arg0, %c0_i32, %c0_i32_0 : i32, i32, i32
  }
  func.func @transform_3(%arg0: i32) -> (i32, i32, i32) {
    %c0_i32 = arith.constant 0 : i32
    %c0_i32_0 = arith.constant 0 : i32
    %c0_i32_1 = arith.constant 0 : i32
    %c0_i32_2 = arith.constant 0 : i32
    return %c0_i32, %c0_i32_0, %c0_i32_1 : i32, i32, i32
  }
  func.func @transform_4(%arg0: i32) -> (i32, i32, i32) {
    %c0_i32 = arith.constant 0 : i32
    %c0_i32_0 = arith.constant 0 : i32
    %c0_i32_1 = arith.constant 0 : i32
    return %arg0, %c0_i32, %c0_i32_0 : i32, i32, i32
  }
  func.func @transform_5(%arg0: i32) -> (i32, i32, i32) {
    %c0_i32 = arith.constant 0 : i32
    %c0_i32_0 = arith.constant 0 : i32
    %c0_i32_1 = arith.constant 0 : i32
    return %arg0, %c0_i32, %c0_i32_0 : i32, i32, i32
  }
  func.func @transform_6(%arg0: i32) -> (i32, i32) {
    %c0_i32 = arith.constant 0 : i32
    %c0_i32_0 = arith.constant 0 : i32
    %c0_i32_1 = arith.constant 0 : i32
    return %c0_i32, %c0_i32_0 : i32, i32
  }
  func.func @transform_7(%arg0: i32) -> (i32, i32) {
    %c0_i32 = arith.constant 0 : i32
    %c0_i32_0 = arith.constant 0 : i32
    %c0_i32_1 = arith.constant 0 : i32
    return %c0_i32, %c0_i32_0 : i32, i32
  }
  func.func @transform_8(%arg0: i32) -> (i32, i32) {
    %c0_i32 = arith.constant 0 : i32
    %c0_i32_0 = arith.constant 0 : i32
    %c0_i32_1 = arith.constant 0 : i32
    return %c0_i32, %c0_i32_0 : i32, i32
  }
  func.func @transform_9(%arg0: i32) -> (i32, i32) {
    %c0_i32 = arith.constant 0 : i32
    %c0_i32_0 = arith.constant 0 : i32
    %c0_i32_1 = arith.constant 0 : i32
    return %c0_i32, %c0_i32_0 : i32, i32
  }
  func.func @transform_10(%arg0: i32) -> (i32, i32) {
    %c0_i32 = arith.constant 0 : i32
    %c0_i32_0 = arith.constant 0 : i32
    %c0_i32_1 = arith.constant 0 : i32
    return %c0_i32, %c0_i32_0 : i32, i32
  }
  func.func @transform_11(%arg0: i32) -> (i32, i32) {
    %c0_i32 = arith.constant 0 : i32
    %c0_i32_0 = arith.constant 0 : i32
    %c0_i32_1 = arith.constant 0 : i32
    return %c0_i32, %c0_i32_0 : i32, i32
  }
  func.func @transform_12(%arg0: i32) -> (i32, i32) {
    %c0_i32 = arith.constant 0 : i32
    %c0_i32_0 = arith.constant 0 : i32
    %c0_i32_1 = arith.constant 0 : i32
    return %c0_i32, %c0_i32_0 : i32, i32
  }
  func.func @transform_13(%arg0: i32) -> (i32, i32) {
    %c0_i32 = arith.constant 0 : i32
    %c0_i32_0 = arith.constant 0 : i32
    %c0_i32_1 = arith.constant 0 : i32
    return %c0_i32, %c0_i32_0 : i32, i32
  }
  func.func @transform_14(%arg0: i32) -> (i32, i32) {
    %c0_i32 = arith.constant 0 : i32
    %c0_i32_0 = arith.constant 0 : i32
    %c0_i32_1 = arith.constant 0 : i32
    return %c0_i32, %c0_i32_0 : i32, i32
  }
  func.func @transform_15(%arg0: i32) -> (i32, i32) {
    %c0_i32 = arith.constant 0 : i32
    %c0_i32_0 = arith.constant 0 : i32
    %c0_i32_1 = arith.constant 0 : i32
    return %c0_i32, %c0_i32_0 : i32, i32
  }
  func.func @transform_16(%arg0: i32) -> (i32, i32, i32) {
    %c0_i32 = arith.constant 0 : i32
    %c0_i32_0 = arith.constant 0 : i32
    %c0_i32_1 = arith.constant 0 : i32
    return %arg0, %c0_i32, %c0_i32_0 : i32, i32, i32
  }
}

module attributes {stable_mosaic.version = 11 : i64} {
  func.func @_mlp_ln_kernel(%arg0: i32, %arg1: memref<16x32xf32, #tpu.memory_space<vmem>>, %arg2: memref<32x128xbf16, #tpu.memory_space<vmem>>, %arg3: memref<1x128xf32, #tpu.memory_space<vmem>>, %arg4: memref<128x32xbf16, #tpu.memory_space<vmem>>, %arg5: memref<1x32xf32, #tpu.memory_space<vmem>>, %arg6: memref<1x32xf32, #tpu.memory_space<vmem>>, %arg7: memref<1x32xf32, #tpu.memory_space<vmem>>, %arg8: memref<16x32xf32, #tpu.memory_space<vmem>>) attributes {dimension_semantics = [#tpu.dimension_semantics<parallel>], iteration_bounds = array<i64: 2>, scalar_prefetch = 0 : i64, scratch_operands = 0 : i64, tpu.core_type = #tpu.core_type<tc>, window_params = [{transform_indices = @transform_0, window_bounds = array<i64: 16, 32>}, {pipeline_mode = #tpu.pipeline_mode<synchronous>, transform_indices = @transform_1, window_bounds = array<i64: 32, 128>}, {pipeline_mode = #tpu.pipeline_mode<synchronous>, transform_indices = @transform_2, window_bounds = array<i64: 1, 128>}, {pipeline_mode = #tpu.pipeline_mode<synchronous>, transform_indices = @transform_3, window_bounds = array<i64: 128, 32>}, {pipeline_mode = #tpu.pipeline_mode<synchronous>, transform_indices = @transform_4, window_bounds = array<i64: 1, 32>}, {pipeline_mode = #tpu.pipeline_mode<synchronous>, transform_indices = @transform_5, window_bounds = array<i64: 1, 32>}, {pipeline_mode = #tpu.pipeline_mode<synchronous>, transform_indices = @transform_6, window_bounds = array<i64: 1, 32>}, {transform_indices = @transform_7, window_bounds = array<i64: 16, 32>}]} {
    %c0 = arith.constant 0 : index
    %c0_0 = arith.constant 0 : index
    %0 = vector.load %arg1[%c0, %c0_0] : memref<16x32xf32, #tpu.memory_space<vmem>>, vector<16x32xf32>
    %1 = arith.truncf %0 : vector<16x32xf32> to vector<16x32xbf16>
    %c0_1 = arith.constant 0 : index
    %c0_2 = arith.constant 0 : index
    %2 = vector.load %arg2[%c0_1, %c0_2] : memref<32x128xbf16, #tpu.memory_space<vmem>>, vector<32x128xbf16>
    %cst = arith.constant dense<0.000000e+00> : vector<16x128xf32>
    %3 = tpu.matmul %1, %2, %cst {dimension_numbers = #tpu.dot_dimension_numbers<[1], [0], [0], [1], [0, 0, 1, 1], [], []>} : vector<16x32xbf16>, vector<32x128xbf16>, vector<16x128xf32> -> vector<16x128xf32>
    %c0_3 = arith.constant 0 : index
    %c0_4 = arith.constant 0 : index
    %4 = vector.load %arg3[%c0_3, %c0_4] : memref<1x128xf32, #tpu.memory_space<vmem>>, vector<1x128xf32>
    %5 = vector.broadcast %4 : vector<1x128xf32> to vector<16x128xf32>
    %6 = arith.addf %3, %5 : vector<16x128xf32>
    %cst_5 = arith.constant 5.000000e-01 : f32
    %7 = vector.broadcast %cst_5 : f32 to vector<16x128xf32>
    %8 = arith.mulf %7, %6 : vector<16x128xf32>
    %cst_6 = arith.constant 4.471500e-02 : f32
    %9 = vector.broadcast %cst_6 : f32 to vector<16x128xf32>
    %10 = arith.mulf %9, %6 : vector<16x128xf32>
    %11 = arith.mulf %10, %6 : vector<16x128xf32>
    %12 = arith.mulf %11, %6 : vector<16x128xf32>
    %13 = arith.addf %6, %12 : vector<16x128xf32>
    %cst_7 = arith.constant 0.797884583 : f32
    %14 = vector.broadcast %cst_7 : f32 to vector<16x128xf32>
    %15 = arith.mulf %14, %13 : vector<16x128xf32>
    %16 = math.tanh %15 : vector<16x128xf32>
    %cst_8 = arith.constant 1.000000e+00 : f32
    %17 = vector.broadcast %cst_8 : f32 to vector<16x128xf32>
    %18 = arith.addf %17, %16 : vector<16x128xf32>
    %19 = arith.mulf %8, %18 : vector<16x128xf32>
    %20 = arith.truncf %19 : vector<16x128xf32> to vector<16x128xbf16>
    %c0_9 = arith.constant 0 : index
    %c0_10 = arith.constant 0 : index
    %21 = vector.load %arg4[%c0_9, %c0_10] : memref<128x32xbf16, #tpu.memory_space<vmem>>, vector<128x32xbf16>
    %cst_11 = arith.constant dense<0.000000e+00> : vector<16x32xf32>
    %22 = tpu.matmul %20, %21, %cst_11 {dimension_numbers = #tpu.dot_dimension_numbers<[1], [0], [0], [1], [0, 0, 1, 1], [], []>} : vector<16x128xbf16>, vector<128x32xbf16>, vector<16x32xf32> -> vector<16x32xf32>
    %c0_12 = arith.constant 0 : index
    %c0_13 = arith.constant 0 : index
    %23 = vector.load %arg5[%c0_12, %c0_13] : memref<1x32xf32, #tpu.memory_space<vmem>>, vector<1x32xf32>
    %24 = vector.broadcast %23 : vector<1x32xf32> to vector<16x32xf32>
    %25 = arith.addf %22, %24 : vector<16x32xf32>
    %26 = arith.addf %25, %0 : vector<16x32xf32>
    %cst_14 = arith.constant dense<0.000000e+00> : vector<16xf32>
    %27 = vector.multi_reduction <add>, %26, %cst_14 [1] : vector<16x32xf32> to vector<16xf32>
    %28 = vector.shape_cast %27 : vector<16xf32> to vector<16x1xf32>
    %cst_15 = arith.constant 3.200000e+01 : f32
    %29 = vector.broadcast %cst_15 : f32 to vector<16x1xf32>
    %30 = arith.divf %28, %29 : vector<16x1xf32>
    %31 = vector.broadcast %30 : vector<16x1xf32> to vector<16x32xf32>
    %32 = arith.subf %26, %31 : vector<16x32xf32>
    %33 = arith.mulf %32, %32 : vector<16x32xf32>
    %cst_16 = arith.constant dense<0.000000e+00> : vector<16xf32>
    %34 = vector.multi_reduction <add>, %33, %cst_16 [1] : vector<16x32xf32> to vector<16xf32>
    %35 = vector.shape_cast %34 : vector<16xf32> to vector<16x1xf32>
    %cst_17 = arith.constant 3.200000e+01 : f32
    %36 = vector.broadcast %cst_17 : f32 to vector<16x1xf32>
    %37 = arith.divf %35, %36 : vector<16x1xf32>
    %38 = vector.broadcast %30 : vector<16x1xf32> to vector<16x32xf32>
    %39 = arith.subf %26, %38 : vector<16x32xf32>
    %cst_18 = arith.constant 9.99999974E-6 : f32
    %40 = vector.broadcast %cst_18 : f32 to vector<16x1xf32>
    %41 = arith.addf %37, %40 : vector<16x1xf32>
    %42 = math.rsqrt %41 : vector<16x1xf32>
    %43 = vector.broadcast %42 : vector<16x1xf32> to vector<16x32xf32>
    %44 = arith.mulf %39, %43 : vector<16x32xf32>
    %c0_19 = arith.constant 0 : index
    %c0_20 = arith.constant 0 : index
    %45 = vector.load %arg6[%c0_19, %c0_20] : memref<1x32xf32, #tpu.memory_space<vmem>>, vector<1x32xf32>
    %46 = vector.broadcast %45 : vector<1x32xf32> to vector<16x32xf32>
    %47 = arith.mulf %44, %46 : vector<16x32xf32>
    %c0_21 = arith.constant 0 : index
    %c0_22 = arith.constant 0 : index
    %48 = vector.load %arg7[%c0_21, %c0_22] : memref<1x32xf32, #tpu.memory_space<vmem>>, vector<1x32xf32>
    %49 = vector.broadcast %48 : vector<1x32xf32> to vector<16x32xf32>
    %50 = arith.addf %47, %49 : vector<16x32xf32>
    %c0_23 = arith.constant 0 : index
    %c0_24 = arith.constant 0 : index
    %51 = vector.load %arg8[%c0_23, %c0_24] : memref<16x32xf32, #tpu.memory_space<vmem>>, vector<16x32xf32>
    tpu.vector_store %arg8[%c0_23, %c0_24], %50 {strides = array<i32>} : memref<16x32xf32, #tpu.memory_space<vmem>>, vector<16x32xf32>,
    return
  }
  func.func @transform_0(%arg0: i32) -> (i32, i32) {
    %c0_i32 = arith.constant 0 : i32
    %c0_i32_0 = arith.constant 0 : i32
    return %arg0, %c0_i32 : i32, i32
  }
  func.func @transform_1(%arg0: i32) -> (i32, i32) {
    %c0_i32 = arith.constant 0 : i32
    %c0_i32_0 = arith.constant 0 : i32
    %c0_i32_1 = arith.constant 0 : i32
    return %c0_i32, %c0_i32_0 : i32, i32
  }
  func.func @transform_2(%arg0: i32) -> (i32, i32) {
    %c0_i32 = arith.constant 0 : i32
    %c0_i32_0 = arith.constant 0 : i32
    %c0_i32_1 = arith.constant 0 : i32
    return %c0_i32, %c0_i32_0 : i32, i32
  }
  func.func @transform_3(%arg0: i32) -> (i32, i32) {
    %c0_i32 = arith.constant 0 : i32
    %c0_i32_0 = arith.constant 0 : i32
    %c0_i32_1 = arith.constant 0 : i32
    return %c0_i32, %c0_i32_0 : i32, i32
  }
  func.func @transform_4(%arg0: i32) -> (i32, i32) {
    %c0_i32 = arith.constant 0 : i32
    %c0_i32_0 = arith.constant 0 : i32
    %c0_i32_1 = arith.constant 0 : i32
    return %c0_i32, %c0_i32_0 : i32, i32
  }
  func.func @transform_5(%arg0: i32) -> (i32, i32) {
    %c0_i32 = arith.constant 0 : i32
    %c0_i32_0 = arith.constant 0 : i32
    %c0_i32_1 = arith.constant 0 : i32
    return %c0_i32, %c0_i32_0 : i32, i32
  }
  func.func @transform_6(%arg0: i32) -> (i32, i32) {
    %c0_i32 = arith.constant 0 : i32
    %c0_i32_0 = arith.constant 0 : i32
    %c0_i32_1 = arith.constant 0 : i32
    return %c0_i32, %c0_i32_0 : i32, i32
  }
  func.func @transform_7(%arg0: i32) -> (i32, i32) {
    %c0_i32 = arith.constant 0 : i32
    %c0_i32_0 = arith.constant 0 : i32
    return %arg0, %c0_i32 : i32, i32
  }
}

</mosaic_0001>

<bundles_post_ra>
// kernel: transformer_decoder_forward.7
= control target key start
LH: loop header
LB: loop body
LE: loop exit
PB: predicated region body
PF: predicated region fallthrough
CT: control target
= control target key end

     0   :  { %s588_s24 = smov 0   ;;  %s635_s0 = inlined_call_operand.vmem [shape: f32[16,16], index: 0, kind: input, shape index: {}]   ;;  %s636_s1 = inlined_call_operand.vmem [shape: bf16[16,16], index: 1, kind: input, shape index: {}]   ;;  %s637_s2 = inlined_call_operand.vmem [shape: f32[1,16], index: 2, kind: input, shape index: {}]   ;;  %s638_s3 = inlined_call_operand.vmem [shape: bf16[16,32], index: 3, kind: input, shape index: {}]   ;;  %s639_s4 = inlined_call_operand.vmem [shape: f32[1,32], index: 4, kind: input, shape index: {}]   ;;  %s640_s5 = inlined_call_operand.vmem [shape: f32[1,32], index: 5, kind: input, shape index: {}]   ;;  %s641_s6 = inlined_call_operand.vmem [shape: f32[1,32], index: 6, kind: input, shape index: {}]   ;;  %s642_s7 = inlined_call_operand.vmem [shape: f32[16,32], index: 7, kind: output, shape index: {}]  }
   0x1 LB: > { %s489_s25 = sadd.s32 4294967295, %s544_s24   ;;  %p493_p0 = scmp.ge.s32.totalorder %s544_s24, 1  ;;  %s544_s24 = sphi %s588_s24, %s17_s24  }
   0x2   : > { %p236_p1 = scmp.lt.s32.totalorder %s544_s24, 3 }
   0x4   : > { %p237_p2 = pnand %p493_p0, %p236_p1 }
   0x5   : > { %v532_v0 = vld [vmem:[%s636_s1] sm:$0xff] (!%p237_p2)   ;;  %v546_v1 = vmov (!%p237_p2), 0.0   ;;  %p266_p3 = scmp.lt.s32.totalorder (!%p237_p2), %s489_s25, 1  ;;  %vm547_vm0 = vmmov (!%p237_p2), 0   ;;  %vm292_vm1 = vcmask (!%p237_p2), 130048   ;;  %vm404_vm2 = vcmask (!%p237_p2), 261120  }
   0x6   : > { %240 = sbr.rel (%p237_p2) target bundleno = 788 (0x314), region = 48  ;;  %510 = vmatprep.subr.bf16.mxu0 (!%p237_p2), %v546_v1  ;;  %516 = vmatprep.subr.bf16.mxu1 (!%p237_p2), %v546_v1  ;;  %v533_v4 = vld [vmem:[%s638_s3] sm:$0xff] (!%p237_p2)  }
   0x7   : > { %511 = vmatpush3.bf16.msra.mxu0 (!%p237_p2), %v532_v0  ;;  %512 = vmatprep.mubr.msk.bf16.mxu0 (!%p237_p2), %vm547_vm0, %v546_v1  ;;  %v496_v5 = vld [vmem:[%s637_s2] ss:$0 sm:$0xff] (!%p237_p2) }
   0x8   : > { %518 = vmatprep.mubr.msk.bf16.mxu1 (!%p237_p2), %vm547_vm0, %v546_v1  ;;  %517 = vmatpush3.bf16.msra.mxu1 (!%p237_p2), %v533_v4  ;;  %v499_v21 = vld [vmem:[%s639_s4] ss:$0 sm:$0xff] (!%p237_p2) }
   0x9   : > { %v502_v37 = vld [vmem:[%s640_s5] ss:$0 sm:$0xff] (!%p237_p2) }
   0xa   : > { %v503_v39 = vld [vmem:[%s641_s6] ss:$0 sm:$0xff] (!%p237_p2) }
   0xd   : > { %s644_s25 = smov (!%p266_p3, %s489_s25), 1 }
   0xe   : > { %s494_s28 = sshll.u32 %s644_s25, 3 }
   0xf   : > { %s269_s8 = scalar_lea.vmem %s635_s0, %s494_s28  ;;  %s273_s21 = scalar_lea.vmem %s642_s7, %s494_s28 }
  0x10   : > { %v275_v2 = vld [vmem:[%s269_s8] sm:$0xff] }
  0x11   : > { %v276_v3 = vpack.c.bf16 %v275_v2, %v275_v2 }
  0x13   : > { %513 = vmatmul.mubr.msk.bf16.vlgmr.msra.gmra.mrb[0].mxu0 %vm292_vm1, %v276_v3 }
  0xe6   : > { %v330_v6 = vpop.f32.mrb[0].mxu0 }
  0xe7   : > { %v331_v7 = vadd.f32 %v496_v5, %v330_v6  ;;  %v514_v8 = vpop.f32.mrb[1].mxu0 }
  0xe8   : > { %v333_v9 = vpop.f32.mrb[2].mxu0 }
  0xe9   : > { %v337_v10 = vmul.f32 0.044715, %v331_v7  ;;  %v515_v11 = vpop.f32.mrb[3].mxu0  ;;  %v336_v17 = vmul.f32 0.5, %v331_v7 }
  0xeb   : > { %v338_v12 = vmul.f32 %v337_v10, %v331_v7 }
  0xed   : > { %v339_v13 = vmul.f32 %v338_v12, %v331_v7 }
  0xef   : > { %v340_v14 = vadd.f32 %v339_v13, %v331_v7 }
  0xf1   : > { %v341_v15 = vmul.f32 0.7978846, %v340_v14 }
  0xf3   : > { %534 = vtanh.f32 %v341_v15 }
  0xfd   : > { %v535_v16 = vpop.eup %534 }
  0xfe   : > { %v343_v18 = vadd.f32 1.0, %v535_v16 }
 0x100   : > { %v344_v19 = vmul.f32 %v343_v18, %v336_v17 }
 0x102   : > { %v345_v20 = vpack.c.bf16 %v344_v19, %v344_v19 }
 0x104   : > { %519 = vmatmul.mubr.msk.bf16.vlgmr.msra.gmra.mrb[0].mxu1 %vm292_vm1, %v345_v20 }
 0x1d7   : > { %v398_v22 = vpop.f32.mrb[0].mxu1 }
 0x1d8   : > { %v399_v23 = vadd.f32 %v499_v21, %v398_v22  ;;  %v520_v24 = vpop.f32.mrb[1].mxu1 }
 0x1d9   : > { %v401_v25 = vpop.f32.mrb[2].mxu1 }
 0x1da   : > { %v521_v26 = vpop.f32.mrb[3].mxu1  ;;  %v405_v27 = vsel %vm404_vm2, %v399_v23, 0.0 }
 0x1db   : > { %406 = vadd.xlane.f32.xlu0 %v405_v27 }
 0x268   : > { %v407_v28 = vpop.xlane.xlu0 %406 }
 0x269   : > { %v409_v29 = vmul.f32 0.03125, %v407_v28 }
 0x26b   : > { %v410_v30 = vsub.f32 %v399_v23, %v409_v29 }
 0x26d   : > { %v411_v31 = vmul.f32 %v410_v30, %v410_v30 }
 0x26f   : > { %v412_v32 = vsel %vm404_vm2, %v411_v31, 0.0 }
 0x270   : > { %413 = vadd.xlane.f32.xlu0 %v412_v32 }
 0x2fd   : > { %v414_v33 = vpop.xlane.xlu0 %413 }
 0x2fe   : > { %v415_v34 = vmul.f32 0.03125, %v414_v33 }
 0x300   : > { %v416_v35 = vadd.f32 1e-05, %v415_v34 }
 0x302   : > { %536 = vrsqrt.f32 %v416_v35 }
 0x30c   : > { %v537_v36 = vpop.eup %536 }
 0x30d   : > { %v418_v38 = vmul.f32 %v537_v36, %v410_v30 }
 0x30f   : > { %v426_v40 = vmul.f32 %v502_v37, %v418_v38 }
 0x311   : > { %v434_v41 = vadd.f32 %v503_v39, %v426_v40 }
 0x313   : > { %435 = vst.msk [vmem:[%s273_s21] sm:$0xff] %vm404_vm2, %v434_v41 }
 0x314 PF: > { %s17_s24 = sadd.s32 1, %s544_s24  }
 0x315   : > { %p14_p4 = scmp.ge.s32.totalorder %s17_s24, 4  }
 0x317   :  { %16 = sbr.rel (!%p14_p4) target bundleno = 1 (0x1), region = 78 }

// kernel: transformer_decoder_forward.9
= control target key start
LH: loop header
LB: loop body
LE: loop exit
PB: predicated region body
PF: predicated region fallthrough
CT: control target
= control target key end

     0   :  { %s734_s24 = smov 0   ;;  %s815_s0 = inlined_call_operand.vmem [shape: f32[32,32], index: 0, kind: input, shape index: {}]   ;;  %s816_s1 = inlined_call_operand.vmem [shape: bf16[32,128], index: 1, kind: input, shape index: {}]   ;;  %s817_s2 = inlined_call_operand.vmem [shape: f32[1,128], index: 2, kind: input, shape index: {}]   ;;  %s818_s3 = inlined_call_operand.vmem [shape: bf16[128,32], index: 3, kind: input, shape index: {}]   ;;  %s819_s4 = inlined_call_operand.vmem [shape: f32[1,32], index: 4, kind: input, shape index: {}]   ;;  %s820_s5 = inlined_call_operand.vmem [shape: f32[1,32], index: 5, kind: input, shape index: {}]   ;;  %s821_s6 = inlined_call_operand.vmem [shape: f32[1,32], index: 6, kind: input, shape index: {}]   ;;  %s822_s7 = inlined_call_operand.vmem [shape: f32[32,32], index: 7, kind: output, shape index: {}]  }
   0x1 LB: > { %s590_s25 = sadd.s32 4294967295, %s690_s24   ;;  %p594_p0 = scmp.ge.s32.totalorder %s690_s24, 1  ;;  %s690_s24 = sphi %s734_s24, %s17_s24  }
   0x2   : > { %p238_p1 = scmp.lt.s32.totalorder %s690_s24, 3 }
   0x4   : > { %p239_p2 = pnand %p594_p0, %p238_p1 }
   0x5   : > { %v666_v0 = vld [vmem:[%s816_s1] sm:$0xff] (!%p239_p2)   ;;  %v692_v1 = vmov (!%p239_p2), 0.0   ;;  %v667_v2 = vld [vmem:[%s816_s1 + $0x8] sm:$0xff] (!%p239_p2)   ;;  %vm693_vm0 = vmmov (!%p239_p2), 0   ;;  %s595_s30 = sshll.u32 (!%p239_p2), %s590_s25, 1  ;;  %vm309_vm1 = vcmask (!%p239_p2), 261120  }
   0x6   : > { %242 = sbr.rel (%p239_p2) target bundleno = 796 (0x31c), region = 48  ;;  %628 = vmatprep.subr.bf16.mxu0 (!%p239_p2), %v692_v1  ;;  %636 = vmatprep.subr.bf16.mxu1 (!%p239_p2), %v692_v1  ;;  %p271_p3 = scmp.lt.s32.totalorder (!%p239_p2), %s595_s30, 3  ;;  %v668_v6 = vld [vmem:[%s818_s3] sm:$0xff] (!%p239_p2)   ;;  %v669_v7 = vld [vmem:[%s818_s3 + $0x8] sm:$0xff] (!%p239_p2)   ;;  %v670_v8 = vld [vmem:[%s818_s3 + $0x10] sm:$0xff] (!%p239_p2)  }
   0x7   : > { %629 = vmatpush3.bf16.msra.mxu0 (!%p239_p2), %v666_v0  ;;  %632 = vmatprep.mubr.msk.bf16.mxu0 (!%p239_p2), %vm693_vm0, %v692_v1  ;;  %v671_v9 = vld [vmem:[%s818_s3 + $0x18] sm:$0xff] (!%p239_p2)   ;;  %v672_v10 = vld [vmem:[%s818_s3 + $0x20] sm:$0xff] (!%p239_p2)   ;;  %v673_v11 = vld [vmem:[%s818_s3 + $0x28] sm:$0xff] (!%p239_p2)  }
   0x8   : > { %630 = vmatprep.subr.bf16.mxu0 (!%p239_p2), %v692_v1  ;;  %652 = vmatprep.mubr.msk.bf16.mxu1 (!%p239_p2), %vm693_vm0, %v692_v1  ;;  %v674_v12 = vld [vmem:[%s818_s3 + $0x30] sm:$0xff] (!%p239_p2)   ;;  %v675_v13 = vld [vmem:[%s818_s3 + $0x38] sm:$0xff] (!%p239_p2)   ;;  %v599_v14 = vld [vmem:[%s817_s2] ss:$0 sm:$0xff] (!%p239_p2) }
   0x9   : > { %637 = vmatpush3.bf16.msra.mxu1 (!%p239_p2), %v668_v6  ;;  %v603_v40 = vld [vmem:[%s819_s4] ss:$0 sm:$0xff] (!%p239_p2) }
   0xa   : > { %638 = vmatprep.subr.bf16.mxu1 (!%p239_p2), %v692_v1  ;;  %v613_v6 = vld [vmem:[%s821_s6] ss:$0 sm:$0xff] (!%p239_p2) }
   0xb   : > { %631 = vmatpush3.bf16.msra.mxu0 (!%p239_p2), %v667_v2 }
   0xd   : > { %s824_s30 = smov (!%p271_p3, %s595_s30), 3  ;;  %639 = vmatpush3.bf16.msra.mxu1 %v669_v7 }
   0xe   : > { %s596_s8 = sshll.u32 %s824_s30, 3  ;;  %640 = vmatprep.subr.bf16.mxu1 %v692_v1 }
   0xf   : > { %s274_s11 = scalar_lea.vmem %s815_s0, %s596_s8  ;;  %s280_s18 = scalar_lea.vmem %s822_s7, %s596_s8 }
  0x10   : > { %v756_v3 = vld [vmem:[%s274_s11] sm:$0xff]  ;;  %v758_v4 = vld [vmem:[%s274_s11 + $0x8] sm:$0xff] }
  0x11   : > { %v285_v5 = vpack.c.bf16 %v758_v4, %v756_v3  ;;  %641 = vmatpush3.bf16.msra.mxu1 %v670_v8 }
  0x12   : > { %642 = vmatprep.subr.bf16.mxu1 %v692_v1 }
  0x13   : > { %633 = vmatmul.mubr.msk.bf16.vlgmr.msra.gmra.mrb[0].mxu0 %vm309_vm1, %v285_v5 }
  0x15   : > { %643 = vmatpush3.bf16.msra.mxu1 %v671_v9 }
  0x16   : > { %644 = vmatprep.subr.bf16.mxu1 %v692_v1 }
  0x19   : > { %645 = vmatpush3.bf16.msra.mxu1 %v672_v10 }
  0x1a   : > { %646 = vmatprep.subr.bf16.mxu1 %v692_v1 }
  0x1d   : > { %647 = vmatpush3.bf16.msra.mxu1 %v673_v11 }
  0x1e   : > { %648 = vmatprep.subr.bf16.mxu1 %v692_v1 }
  0x21   : > { %649 = vmatpush3.bf16.msra.mxu1 %v674_v12 }
  0x22   : > { %650 = vmatprep.subr.bf16.mxu1 %v692_v1 }
  0x25   : > { %651 = vmatpush3.bf16.msra.mxu1 %v675_v13 }
  0xe6   : > { %v347_v15 = vpop.f32.mrb[0].mxu0 }
  0xe7   : > { %v348_v16 = vadd.f32 %v599_v14, %v347_v15  ;;  %v634_v17 = vpop.f32.mrb[1].mxu0 }
  0xe8   : > { %v350_v18 = vpop.f32.mrb[2].mxu0 }
  0xe9   : > { %v356_v19 = vmul.f32 0.044715, %v348_v16  ;;  %v351_v20 = vadd.f32 %v599_v14, %v350_v18  ;;  %v635_v21 = vpop.f32.mrb[3].mxu0  ;;  %v354_v34 = vmul.f32 0.5, %v348_v16 }
  0xeb   : > { %v358_v22 = vmul.f32 %v356_v19, %v348_v16  ;;  %v357_v23 = vmul.f32 0.044715, %v351_v20  ;;  %v355_v35 = vmul.f32 0.5, %v351_v20 }
  0xed   : > { %v360_v24 = vmul.f32 %v358_v22, %v348_v16  ;;  %v359_v25 = vmul.f32 %v357_v23, %v351_v20 }
  0xef   : > { %v361_v26 = vmul.f32 %v359_v25, %v351_v20  ;;  %v362_v27 = vadd.f32 %v360_v24, %v348_v16 }
  0xf1   : > { %v363_v28 = vadd.f32 %v361_v26, %v351_v20  ;;  %v364_v29 = vmul.f32 0.7978846, %v362_v27 }
  0xf3   : > { %v365_v30 = vmul.f32 0.7978846, %v363_v28  ;;  %676 = vtanh.f32 %v364_v29 }
  0xf5   : > { %678 = vtanh.f32 %v365_v30 }
  0xfd   : > { %v677_v31 = vpop.eup %676 }
  0xfe   : > { %v368_v32 = vadd.f32 1.0, %v677_v31 }
  0xff   : > { %v679_v33 = vpop.eup %678 }
 0x100   : > { %v369_v36 = vadd.f32 1.0, %v679_v33  ;;  %v370_v37 = vmul.f32 %v368_v32, %v354_v34 }
 0x102   : > { %v371_v38 = vmul.f32 %v369_v36, %v355_v35 }
 0x104   : > { %v372_v39 = vpack.c.bf16 %v371_v38, %v370_v37 }
 0x106   : > { %653 = vmatmul.mubr.bf16.vlgmr.msra.gmra.mrb[0].mxu1 %v372_v39 }
 0x1d9   : > { %v478_v41 = vpop.f32.mrb[0].mxu1 }
 0x1da   : > { %v479_v42 = vadd.f32 %v603_v40, %v478_v41  ;;  %v654_v43 = vpop.f32.mrb[1].mxu1 }
 0x1db   : > { %v481_v44 = vpop.f32.mrb[2].mxu1 }
 0x1dc   : > { %v482_v45 = vadd.f32 %v603_v40, %v481_v44  ;;  %v655_v46 = vpop.f32.mrb[3].mxu1  ;;  %v485_v47 = vadd.f32 %v479_v42, %v756_v3 }
 0x1de   : > { %v487_v48 = vsel %vm309_vm1, %v485_v47, 0.0  ;;  %v486_v49 = vadd.f32 %v482_v45, %v758_v4  ;;  %v612_v4 = vld [vmem:[%s820_s5] ss:$0 sm:$0xff] }
 0x1df   : > { %488 = vadd.xlane.f32.xlu0 %v487_v48 }
 0x1e0   : > { %v490_v50 = vsel %vm309_vm1, %v486_v49, 0.0 }
 0x1e3   : > { %491 = vadd.xlane.f32.xlu0 %v490_v50 }
 0x26c   : > { %v489_v51 = vpop.xlane.xlu0 %488 }
 0x26d   : > { %v494_v52 = vmul.f32 0.03125, %v489_v51 }
 0x26f   : > { %v496_v53 = vsub.f32 %v485_v47, %v494_v52 }
 0x270   : > { %v492_v54 = vpop.xlane.xlu0 %491 }
 0x271   : > { %v495_v55 = vmul.f32 0.03125, %v492_v54  ;;  %v498_v56 = vmul.f32 %v496_v53, %v496_v53 }
 0x273   : > { %v497_v57 = vsub.f32 %v486_v49, %v495_v55  ;;  %v500_v58 = vsel %vm309_vm1, %v498_v56, 0.0 }
 0x274   : > { %501 = vadd.xlane.f32.xlu1 %v500_v58 }
 0x275   : > { %v499_v59 = vmul.f32 %v497_v57, %v497_v57 }
 0x277   : > { %v503_v60 = vsel %vm309_vm1, %v499_v59, 0.0 }
 0x278   : > { %504 = vadd.xlane.f32.xlu1 %v503_v60 }
 0x301   : > { %v502_v61 = vpop.xlane.xlu1 %501 }
 0x302   : > { %v506_v62 = vmul.f32 0.03125, %v502_v61 }
 0x304   : > { %v508_v63 = vadd.f32 1e-05, %v506_v62 }
 0x305   : > { %v505_v0 = vpop.xlane.xlu1 %504 }
 0x306   : > { %680 = vrsqrt.f32 %v508_v63  ;;  %v507_v1 = vmul.f32 0.03125, %v505_v0 }
 0x308   : > { %v509_v2 = vadd.f32 1e-05, %v507_v1 }
 0x30a   : > { %682 = vrsqrt.f32 %v509_v2 }
 0x310   : > { %v681_v3 = vpop.eup %680 }
 0x311   : > { %v512_v5 = vmul.f32 %v681_v3, %v496_v53 }
 0x313   : > { %v521_v7 = vmul.f32 %v612_v4, %v512_v5 }
 0x314   : > { %v683_v8 = vpop.eup %682 }
 0x315   : > { %v530_v9 = vadd.f32 %v613_v6, %v521_v7  ;;  %v513_v10 = vmul.f32 %v683_v8, %v497_v57 }
 0x317   : > { %532 = vst.msk [vmem:[%s280_s18] sm:$0xff] %vm309_vm1, %v530_v9  ;;  %v522_v11 = vmul.f32 %v612_v4, %v513_v10 }
 0x319   : > { %v531_v12 = vadd.f32 %v613_v6, %v522_v11 }
 0x31b   : > { %533 = vst.msk [vmem:[%s280_s18 + $0x8] sm:$0xff] %vm309_vm1, %v531_v12 }
 0x31c PF: > { %s17_s24 = sadd.s32 1, %s690_s24  }
 0x31d   : > { %p14_p4 = scmp.ge.s32.totalorder %s17_s24, 4  }
 0x31f   :  { %16 = sbr.rel (!%p14_p4) target bundleno = 1 (0x1), region = 78 }

// kernel: transformer_decoder_forward.8
= control target key start
LH: loop header
LB: loop body
LE: loop exit
PB: predicated region body
PF: predicated region fallthrough
CT: control target
= control target key end

     0   :  { %s1972_s21 = smov 0   ;;  %s2209_s0 = inlined_call_operand.vmem [shape: f32[2,16,32], index: 0, kind: input, shape index: {}]   ;;  %s2210_s1 = inlined_call_operand.vmem [shape: f32[1,16,32], index: 1, kind: input, shape index: {}]   ;;  %s2211_s2 = inlined_call_operand.vmem [shape: f32[2,8,32], index: 2, kind: input, shape index: {}, may-alias: {2,4}]   ;;  %s2212_s3 = inlined_call_operand.vmem [shape: f32[1,8,32], index: 3, kind: input, shape index: {}]   ;;  %s2213_s4 = inlined_call_operand.vmem [shape: f32[2,8,32], index: 4, kind: input, shape index: {}, may-alias: {2,4}]   ;;  %s2214_s5 = inlined_call_operand.vmem [shape: f32[2,1,8], index: 5, kind: input, shape index: {}]   ;;  %s2215_s6 = inlined_call_operand.vmem [shape: bf16[32,32], index: 6, kind: input, shape index: {}]   ;;  %s2216_s7 = inlined_call_operand.vmem [shape: f32[1,32], index: 7, kind: input, shape index: {}]   ;;  %s2217_s8 = inlined_call_operand.vmem [shape: bf16[32,32], index: 8, kind: input, shape index: {}]   ;;  %s2218_s9 = inlined_call_operand.vmem [shape: f32[1,32], index: 9, kind: input, shape index: {}]   ;;  %s2219_s10 = inlined_call_operand.vmem [shape: bf16[32,32], index: 10, kind: input, shape index: {}]   ;;  %s2220_s11 = inlined_call_operand.vmem [shape: f32[1,32], index: 11, kind: input, shape index: {}]   ;;  %s2221_s12 = inlined_call_operand.vmem [shape: bf16[32,32], index: 12, kind: input, shape index: {}]   ;;  %s2222_s13 = inlined_call_operand.vmem [shape: f32[1,32], index: 13, kind: input, shape index: {}]   ;;  %s2223_s14 = inlined_call_operand.vmem [shape: f32[1,32], index: 14, kind: input, shape index: {}]   ;;  %s2224_s15 = inlined_call_operand.vmem [shape: f32[1,32], index: 15, kind: input, shape index: {}]   ;;  %s2225_s16 = inlined_call_operand.vmem [shape: f32[2,16,32], index: 16, kind: output, shape index: {}]  }
   0x1   :  { %2226 = sst [smem:[#allocation2_spill]] %s2209_s0 }
   0x2 LB: > { %s1647_s22 = sadd.s32 4294967295, %s1880_s21   ;;  %p1651_p0 = scmp.ge.s32.totalorder %s1880_s21, 1  ;;  %s1880_s21 = sphi %s1972_s21, %s26_s21  }
   0x3   : > { %p488_p1 = scmp.lt.s32.totalorder %s1880_s21, 3 }
   0x5   : > { %p489_p2 = pnand %p1651_p0, %p488_p1 }
   0x6   : > { %v1832_v0 = vld [vmem:[%s2217_s8] sm:$0xff] (!%p489_p2)   ;;  %v1882_v1 = vmov (!%p489_p2), 0.0   ;;  %v1834_v3 = vld [vmem:[%s2217_s8 + $0x8] sm:$0xff] (!%p489_p2)   ;;  %vm1883_vm0 = vmmov (!%p489_p2), 0   ;;  %p549_p3 = scmp.lt.s32.totalorder (!%p489_p2), %s1647_s22, 1  ;;  %s2227_s0 = sld [smem:[#allocation2_spill]] (!%p489_p2) }
   0x7   : > { %492 = sbr.rel (%p489_p2) target bundleno = 2487 (0x9b7), region = 84  ;;  %1731 = vmatprep.subr.bf16.mxu1 (!%p489_p2), %v1882_v1  ;;  %1723 = vmatprep.subr.bf16.mxu0 (!%p489_p2), %v1882_v1  ;;  %v1833_v2 = vld [vmem:[%s2215_s6] sm:$0xff] (!%p489_p2)   ;;  %v1835_v4 = vld [vmem:[%s2215_s6 + $0x8] sm:$0xff] (!%p489_p2)   ;;  %vm607_vm1 = vcmask (!%p489_p2), 261120   ;;  %vm788_vm2 = vcmask (!%p489_p2), 64512   ;;  %vm868_vm3 = vcmask (!%p489_p2), 1043456  }
   0x8   : > { %1732 = vmatpush3.bf16.msra.mxu1 (!%p489_p2), %v1832_v0  ;;  %1735 = vmatprep.mubr.msk.bf16.mxu1 (!%p489_p2), %vm1883_vm0, %v1882_v1  ;;  %v579_v5 = vld [vmem:[%s2212_s3] sm:$0xff] (!%p489_p2)  ;;  %v574_v7 = vld [vmem:[%s2210_s1 + $0x8] sm:$0xff] (!%p489_p2)  ;;  %s1885_s27 = smov (!%p489_p2), 112  }
   0x9   : > { %1733 = vmatprep.subr.bf16.mxu1 (!%p489_p2), %v1882_v1  ;;  %1724 = vmatpush3.bf16.msra.mxu0 (!%p489_p2), %v1833_v2  ;;  %v573_v6 = vld [vmem:[%s2210_s1] sm:$0xff] (!%p489_p2)  ;;  %v1837_v27 = vld [vmem:[%s2219_s10 + $0x8] sm:$0xff] (!%p489_p2)  }
   0xa   : > { %1725 = vmatprep.subr.bf16.mxu0 (!%p489_p2), %v1882_v1  ;;  %1727 = vmatprep.mubr.msk.bf16.mxu0 (!%p489_p2), %vm1883_vm0, %v1882_v1  ;;  %v1662_v16 = vld [vmem:[%s2218_s9] ss:$0 sm:$0xff] (!%p489_p2) }
   0xb   : > { %v1658_v17 = vld [vmem:[%s2216_s7] ss:$0 sm:$0xff] (!%p489_p2) }
   0xc   : > { %1734 = vmatpush3.bf16.msra.mxu1 (!%p489_p2), %v1834_v3  ;;  %v1836_v19 = vld [vmem:[%s2219_s10] sm:$0xff] (!%p489_p2)  }
   0xd   : > { %1726 = vmatpush3.bf16.msra.mxu0 (!%p489_p2), %v1835_v4  ;;  %1747 = vmatprep.subr.bf16.mxu1 (!%p489_p2), %v1882_v1  ;;  %v1666_v51 = vld [vmem:[%s2220_s11] ss:$0 sm:$0xff] (!%p489_p2) }
   0xe   : > { %s2229_s22 = smov (!%p549_p3, %s1647_s22), 1  ;;  %1739 = vmatprep.subr.bf16.mxu0 %v1882_v1 }
   0xf   : > { %s1654_s18 = sshll.u32 %s2229_s22, 3  ;;  %s1688_s19 = sshll.u32 %s2229_s22, 4 }
  0x10   : > { %s557_s24 = scalar_lea.vmem %s2211_s2, %s1654_s18  ;;  %s553_s17 = scalar_lea.vmem %s2227_s0, %s1688_s19 }
  0x11   : > { %v578_v8 = vld [vmem:[%s557_s24] sm:$0xff]  ;;  %v2025_v11 = vld [vmem:[%s553_s17 + $0x8] sm:$0xff]  ;;  %s561_s26 = scalar_lea.vmem %s2213_s4, %s1654_s18  ;;  %s564_s24 = scalar_lea.vmem %s2214_s5, %s2229_s22 }
  0x12   : > { %v580_v9 = vadd.f32 %v579_v5, %v578_v8  ;;  %v2023_v10 = vld [vmem:[%s553_s17] sm:$0xff]  ;;  %v576_v13 = vadd.f32 %v574_v7, %v2025_v11  ;;  %s1884_s17 = smov 120   ;;  %s1886_s18 = smov 104  }
  0x13   : > { %v575_v12 = vadd.f32 %v573_v6, %v2023_v10  ;;  %v582_v23 = vld [vmem:[%s561_s26] sm:$0xff] }
  0x14   : > { %v581_v14 = vpack.c.bf16 %v580_v9, %v580_v9  ;;  %v583_v33 = vpack.c.bf16 %v582_v23, %v582_v23  ;;  %v2079_v40 = vld [vmem:[%s564_s24] ss:$0 sm:$0xff] }
  0x15   : > { %v577_v15 = vpack.c.bf16 %v576_v13, %v575_v12 }
  0x16   : > { %1736 = vmatmul.mubr.msk.bf16.vlgmr.msra.gmra.mrb[0].mxu1 %vm607_vm1, %v581_v14 }
  0x17   : > { %1728 = vmatmul.mubr.msk.bf16.vlgmr.msra.gmra.mrb[0].mxu0 %vm607_vm1, %v577_v15  ;;  %1749 = vmatprep.mubr.msk.bf16.mxu1 %vm1883_vm0, %v1882_v1 }
  0x18   : > { %1743 = vmatprep.mubr.msk.bf16.mxu0 %vm1883_vm0, %v1882_v1  ;;  %1740 = vmatpush3.bf16.msra.mxu0 %v1836_v19 }
  0x19   : > { %1741 = vmatprep.subr.bf16.mxu0 %v1882_v1 }
  0x1c   : > { %1742 = vmatpush3.bf16.msra.mxu0 %v1837_v27 }
  0x1d   : > { %1753 = vmatprep.subr.bf16.mxu0 %v1882_v1 }
  0x1f   : > { %1744 = vmatmul.mubr.msk.bf16.vlgmr.msra.gmra.mrb[4].mxu0 %vm607_vm1, %v583_v33  ;;  %v918_v33 = vld [vmem:[%s2221_s12] sm:$0xf] }
  0x20   : > { %1755 = vmatprep.mubr.msk.bf16.mxu0 %vm1883_vm0, %v1882_v1 }
  0xe9   : > { %v712_v18 = vpop.f32.mrb[0].mxu1 }
  0xea   : > { %v713_v20 = vadd.f32 %v1662_v16, %v712_v18  ;;  %v1737_v21 = vpop.f32.mrb[1].mxu1  ;;  %v645_v22 = vpop.f32.mrb[0].mxu0 }
  0xeb   : > { %v715_v24 = vpop.f32.mrb[2].mxu1  ;;  %v646_v25 = vadd.f32 %v1658_v17, %v645_v22  ;;  %v1729_v26 = vpop.f32.mrb[1].mxu0 }
  0xec   : > { %v2050_v28 = vpack.c.bf16 %v713_v20, %v713_v20  ;;  %v1738_v29 = vpop.f32.mrb[3].mxu1  ;;  %v648_v30 = vpop.f32.mrb[2].mxu0 }
  0xed   : > { %v649_v31 = vadd.f32 %v1658_v17, %v648_v30  ;;  %v1730_v32 = vpop.f32.mrb[3].mxu0 }
  0xee   : > { %923 = vrot.lane.b32.xlu0 %v2050_v28, %s1884_s17  ;;  %v793_v34 = vsel %vm788_vm2, %v2050_v28, 0  ;;  %v1050_v32 = vld [vmem:[%s2221_s12 + $0x4] sm:$0xf] }
  0xef   : > { %v2057_v35 = vpack.c.bf16 %v649_v31, %v646_v25  ;;  %1748 = vmatpush3.bf16.xpose.msra.mxu1 %v793_v34  ;;  %v1055_v34 = vsel %vm868_vm3, %v1050_v32, 0 }
  0xf0   : > { %1759 = vmatprep.subr.bf16.mxu1 %v1882_v1 }
  0xf2   : > { %920 = vrot.lane.b32.xlu0 %v2057_v35, %s1884_s17  ;;  %v778_v50 = vpop.f32.mrb[4].mxu0 }
  0xf3   : > { %v1745_v52 = vpop.f32.mrb[5].mxu0  ;;  %v779_v53 = vadd.f32 %v1666_v51, %v778_v50 }
  0xf4   : > { %v781_v54 = vpop.f32.mrb[6].mxu0 }
  0xf5   : > { %v1746_v55 = vpop.f32.mrb[7].mxu0  ;;  %v2088_v56 = vpack.c.bf16 %v779_v53, %v779_v53 }
  0xf6   : > { %1750 = vmatmul.mubr.msk.bf16.vlgmr.msra.gmra.mrb[4].mxu1 %vm788_vm2, %v2057_v35 }
  0xf7   : > { %1761 = vmatprep.mubr.msk.bf16.mxu1 %vm1883_vm0, %v1882_v1  ;;  %v870_v57 = vsel %vm868_vm3, %v2088_v56, 0 }
  0xf8   : > { %1754 = vmatpush3.bf16.msra.mxu0 %v870_v57 }
  0xf9   : > { %1765 = vmatprep.subr.bf16.mxu0 %v1882_v1 }
 0x160   : > { %v924_v36 = vpop.permute.xlu0 %923 }
 0x161   : > { %v929_v37 = vsel %vm788_vm2, %v924_v36, 0  ;;  %v1102_v36 = vsel %vm868_vm3, %v918_v33, 0 }
 0x162   : > { %1760 = vmatpush3.bf16.xpose.msra.mxu1 %v929_v37 }
 0x163   : > { %1771 = vmatprep.subr.bf16.mxu1 %v1882_v1 }
 0x164   : > { %v921_v38 = vpop.permute.xlu0 %920 }
 0x169   : > { %1762 = vmatmul.mubr.msk.bf16.vlgmr.msra.gmra.mrb[8].mxu1 %vm788_vm2, %v921_v38 }
 0x16a   : > { %1773 = vmatprep.mubr.msk.bf16.mxu1 %vm1883_vm0, %v1882_v1  ;;  %1772 = vmatpush3.bf16.msra.mxu1 %v1055_v34 }
 0x16b   : > { %1783 = vmatprep.subr.bf16.mxu1 %v1882_v1 }
 0x1c9   : > { %v829_v39 = vpop.f32.mrb[4].mxu1 }
 0x1ca   : > { %v836_v41 = vmul.f32 0.35355338, %v829_v39  ;;  %v1751_v42 = vpop.f32.mrb[5].mxu1 }
 0x1cb   : > { %v832_v43 = vpop.f32.mrb[6].mxu1 }
 0x1cc   : > { %v837_v44 = vmul.f32 0.35355338, %v832_v43  ;;  %v1752_v45 = vpop.f32.mrb[7].mxu1  ;;  %v844_v46 = vadd.f32 %v2079_v40, %v836_v41 }
 0x1ce   : > { %v846_v47 = vsel %vm788_vm2, %v844_v46, -inf  ;;  %v845_v48 = vadd.f32 %v2079_v40, %v837_v44 }
 0x1cf   : > { %847 = vmax.xlane.f32.xlu1 %v846_v47 }
 0x1d0   : > { %v849_v49 = vsel %vm788_vm2, %v845_v48, -inf }
 0x1d3   : > { %850 = vmax.xlane.f32.xlu1 %v849_v49 }
 0x23c   : > { %v965_v58 = vpop.f32.mrb[8].mxu1 }
 0x23d   : > { %v972_v59 = vmul.f32 0.35355338, %v965_v58  ;;  %v1763_v60 = vpop.f32.mrb[9].mxu1 }
 0x23e   : > { %v968_v61 = vpop.f32.mrb[10].mxu1 }
 0x23f   : > { %v973_v62 = vmul.f32 0.35355338, %v968_v61  ;;  %v1764_v63 = vpop.f32.mrb[11].mxu1  ;;  %v974_v0 = vadd.f32 %v2079_v40, %v972_v59 }
 0x241   : > { %v976_v2 = vsel %vm788_vm2, %v974_v0, -inf  ;;  %v975_v3 = vadd.f32 %v2079_v40, %v973_v62 }
 0x242   : > { %977 = vmax.xlane.f32.xlu0 %v976_v2 }
 0x243   : > { %v979_v4 = vsel %vm788_vm2, %v975_v3, -inf }
 0x244   : > { %980 = vmax.xlane.f32.xlu1 %v979_v4 }
 0x255   : > { %996 = vrot.lane.b32.xlu1 %v2088_v56, %s1884_s17  ;;  %s569_s17 = scalar_lea.vmem %s2225_s16, %s1688_s19 }
 0x25c   : > { %v848_v5 = vpop.xlane.xlu1 %847 }
 0x25d   : > { %v852_v6 = vsub.f32 %v844_v46, %v848_v5 }
 0x25f   : > { %v854_v7 = vmul.f32 1.442695, %v852_v6 }
 0x260   : > { %v851_v8 = vpop.xlane.xlu1 %850 }
 0x261   : > { %v853_v9 = vsub.f32 %v845_v48, %v851_v8  ;;  %1838 = vpow2.f32 %v854_v7 }
 0x263   : > { %v856_v12 = vmul.f32 1.442695, %v853_v9 }
 0x265   : > { %1840 = vpow2.f32 %v856_v12 }
 0x26b   : > { %v1839_v13 = vpop.eup %1838 }
 0x26c   : > { %v858_v30 = vsel %vm788_vm2, %v1839_v13, 0.0 }
 0x26f   : > { %v1841_v14 = vpop.eup %1840 }
 0x270   : > { %v864_v15 = vpack.c.bf16 %v1841_v14, %v1839_v13  ;;  %v861_v31 = vsel %vm788_vm2, %v1841_v14, 0.0 }
 0x272   : > { %1756 = vmatmul.mubr.msk.bf16.vlgmr.msra.gmra.mrb[8].mxu0 %vm788_vm2, %v864_v15 }
 0x273   : > { %1767 = vmatprep.mubr.msk.bf16.mxu0 %vm1883_vm0, %v1882_v1 }
 0x2cf   : > { %v978_v16 = vpop.xlane.xlu0 %977 }
 0x2d0   : > { %v982_v17 = vsub.f32 %v974_v0, %v978_v16 }
 0x2d1   : > { %v981_v18 = vpop.xlane.xlu1 %980 }
 0x2d2   : > { %v984_v19 = vmul.f32 1.442695, %v982_v17  ;;  %v983_v20 = vsub.f32 %v975_v3, %v981_v18 }
 0x2d4   : > { %1842 = vpow2.f32 %v984_v19  ;;  %v986_v21 = vmul.f32 1.442695, %v983_v20 }
 0x2d5   : > { %v997_v22 = vpop.permute.xlu1 %996 }
 0x2d6   : > { %1844 = vpow2.f32 %v986_v21  ;;  %v1002_v23 = vsel %vm868_vm3, %v997_v22, 0 }
 0x2d7   : > { %1766 = vmatpush3.bf16.msra.mxu0 %v1002_v23 }
 0x2d8   : > { %1777 = vmatprep.subr.bf16.mxu0 %v1882_v1 }
 0x2de   : > { %v1843_v24 = vpop.eup %1842 }
 0x2df   : > { %v988_v25 = vsel %vm788_vm2, %v1843_v24, 0.0 }
 0x2e0   : > { %v1845_v26 = vpop.eup %1844  ;;  %989 = vadd.xlane.f32.xlu1 %v988_v25 }
 0x2e1   : > { %v991_v27 = vsel %vm788_vm2, %v1845_v26, 0.0  ;;  %v994_v29 = vpack.c.bf16 %v1845_v26, %v1843_v24 }
 0x2e2   : > { %992 = vadd.xlane.f32.xlu0 %v991_v27 }
 0x2e3   : > { %1768 = vmatmul.mubr.msk.bf16.vlgmr.msra.gmra.mrb[12].mxu0 %vm788_vm2, %v994_v29 }
 0x2e4   : > { %859 = vadd.xlane.f32.xlu1 %v858_v30  ;;  %1779 = vmatprep.mubr.msk.bf16.mxu0 %vm1883_vm0, %v1882_v1 }
 0x2e5   : > { %1778 = vmatpush3.bf16.msra.mxu0 %v1102_v36 }
 0x2e6   : > { %1789 = vmatprep.subr.bf16.mxu0 %v1882_v1 }
 0x2f5   : > { %1219 = vrot.lane.b32.xlu1 %v2088_v56, %s1885_s27 }
 0x2f8   : > { %1147 = vrot.lane.b32.xlu0 %v2050_v28, %s1885_s27 }
 0x2fc   : > { %1145 = vrot.lane.b32.xlu0 %v2057_v35, %s1885_s27 }
 0x31b   : > { %862 = vadd.xlane.f32.xlu0 %v861_v31 }
 0x345   : > { %v906_v37 = vpop.f32.mrb[8].mxu0 }
 0x346   : > { %v1757_v38 = vpop.f32.mrb[9].mxu0 }
 0x347   : > { %v909_v39 = vpop.f32.mrb[10].mxu0 }
 0x348   : > { %v1758_v41 = vpop.f32.mrb[11].mxu0 }
 0x36d   : > { %v990_v43 = vpop.xlane.xlu1 %989 }
 0x36f   : > { %v993_v42 = vpop.xlane.xlu0 %992 }
 0x371   : > { %v860_v45 = vpop.xlane.xlu1 %859 }
 0x372   : > { %1846 = vrcp.f32 %v860_v45 }
 0x373   : > { %v1148_v44 = vpop.permute.xlu0 %1147 }
 0x374   : > { %v1153_v2 = vsel %vm788_vm2, %v1148_v44, 0 }
 0x375   : > { %v1220_v52 = vpop.permute.xlu1 %1219 }
 0x376   : > { %v1225_v59 = vsel %vm868_vm3, %v1220_v52, 0 }
 0x377   : > { %v1146_v46 = vpop.permute.xlu0 %1145 }
 0x37c   : > { %v1847_v48 = vpop.eup %1846 }
 0x37d   : > { %v915_v50 = vmul.f32 %v1847_v48, %v906_v37 }
 0x3a8   : > { %v863_v47 = vpop.xlane.xlu0 %862 }
 0x3a9   : > { %1848 = vrcp.f32 %v863_v47 }
 0x3aa   : > { %1850 = vrcp.f32 %v990_v43 }
 0x3ab   : > { %1852 = vrcp.f32 %v993_v42 }
 0x3b3   : > { %v1849_v49 = vpop.eup %1848 }
 0x3b4   : > { %v916_v51 = vmul.f32 %v1849_v49, %v909_v39  ;;  %v1851_v55 = vpop.eup %1850  ;;  %v1273_v39 = vld [vmem:[%s2221_s12 + $0x8] sm:$0xf] }
 0x3b5   : > { %v1853_v58 = vpop.eup %1852  ;;  %v1278_v41 = vsel %vm868_vm3, %v1273_v39, 0 }
 0x3b6   : > { %v1038_v53 = vpop.f32.mrb[12].mxu0  ;;  %v917_v54 = vpack.c.bf16 %v916_v51, %v915_v50 }
 0x3b7   : > { %v1769_v57 = vpop.f32.mrb[13].mxu0  ;;  %v1047_v61 = vmul.f32 %v1851_v55, %v1038_v53 }
 0x3b8   : > { %v1041_v60 = vpop.f32.mrb[14].mxu0  ;;  %1780 = vmatmul.mubr.msk.bf16.vlgmr.msra.gmra.mrb[16].mxu0 %vm788_vm2, %v917_v54 }
 0x3b9   : > { %v1048_v62 = vmul.f32 %v1853_v58, %v1041_v60  ;;  %1790 = vmatpush3.bf16.msra.mxu0 %v1225_v59  ;;  %v1770_v63 = vpop.f32.mrb[15].mxu0  ;;  %1791 = vmatprep.mubr.msk.bf16.mxu0 %vm1883_vm0, %v1882_v1 }
 0x3ba   : > { %1801 = vmatprep.subr.bf16.mxu0 %v1882_v1 }
 0x3bb   : > { %v1049_v0 = vpack.c.bf16 %v1048_v62, %v1047_v61 }
 0x3bd   : > { %1774 = vmatmul.mubr.msk.bf16.vlgmr.msra.gmra.mrb[12].mxu1 %vm788_vm2, %v1049_v0 }
 0x3be   : > { %1784 = vmatpush3.bf16.xpose.msra.mxu1 %v1153_v2  ;;  %1785 = vmatprep.mubr.msk.bf16.mxu1 %vm1883_vm0, %v1882_v1 }
 0x3bf   : > { %1795 = vmatprep.subr.bf16.mxu1 %v1882_v1 }
 0x3c5   : > { %1786 = vmatmul.mubr.msk.bf16.vlgmr.msra.gmra.mrb[16].mxu1 %vm788_vm2, %v1146_v46 }
 0x3c6   : > { %1797 = vmatprep.mubr.msk.bf16.mxu1 %vm1883_vm0, %v1882_v1  ;;  %1796 = vmatpush3.bf16.msra.mxu1 %v1278_v41 }
 0x3c7   : > { %1807 = vmatprep.subr.bf16.mxu1 %v1882_v1 }
 0x48b   : > { %v1138_v3 = vpop.f32.mrb[16].mxu0 }
 0x48c   : > { %v1781_v4 = vpop.f32.mrb[17].mxu0 }
 0x48d   : > { %v1141_v5 = vpop.f32.mrb[18].mxu0 }
 0x48e   : > { %v1782_v6 = vpop.f32.mrb[19].mxu0 }
 0x490   : > { %v1091_v7 = vpop.f32.mrb[12].mxu1 }
 0x491   : > { %v2137_v8 = vadd.f32 %v1138_v3, %v1091_v7  ;;  %v1775_v9 = vpop.f32.mrb[13].mxu1 }
 0x492   : > { %v1094_v12 = vpop.f32.mrb[14].mxu1 }
 0x493   : > { %v2139_v13 = vadd.f32 %v1141_v5, %v1094_v12  ;;  %v1776_v14 = vpop.f32.mrb[15].mxu1 }
 0x498   : > { %v1189_v15 = vpop.f32.mrb[16].mxu1 }
 0x499   : > { %v1196_v16 = vmul.f32 0.35355338, %v1189_v15  ;;  %v1787_v17 = vpop.f32.mrb[17].mxu1 }
 0x49a   : > { %v1192_v18 = vpop.f32.mrb[18].mxu1 }
 0x49b   : > { %v1197_v19 = vmul.f32 0.35355338, %v1192_v18  ;;  %v1788_v20 = vpop.f32.mrb[19].mxu1  ;;  %v1198_v21 = vadd.f32 %v2079_v40, %v1196_v16 }
 0x49d   : > { %v1200_v22 = vsel %vm788_vm2, %v1198_v21, -inf  ;;  %v1199_v23 = vadd.f32 %v2079_v40, %v1197_v19 }
 0x49e   : > { %1201 = vmax.xlane.f32.xlu1 %v1200_v22 }
 0x49f   : > { %v1203_v24 = vsel %vm788_vm2, %v1199_v23, -inf }
 0x4a2   : > { %1204 = vmax.xlane.f32.xlu1 %v1203_v24 }
 0x4b3   : > { %1325 = vrot.lane.b32.xlu1 %v2050_v28, %s1886_s18 }
 0x4b7   : > { %1323 = vrot.lane.b32.xlu1 %v2057_v35, %s1886_s18 }
 0x52b   : > { %v1202_v25 = vpop.xlane.xlu1 %1201 }
 0x52c   : > { %v1206_v26 = vsub.f32 %v1198_v21, %v1202_v25  ;;  %v1451_v21 = vld [vmem:[%s2221_s12 + $0xc] sm:$0xf] }
 0x52d   : > { %v1456_v22 = vsel %vm868_vm3, %v1451_v21, 0 }
 0x52e   : > { %v1208_v27 = vmul.f32 1.442695, %v1206_v26 }
 0x52f   : > { %v1205_v29 = vpop.xlane.xlu1 %1204 }
 0x530   : > { %1854 = vpow2.f32 %v1208_v27  ;;  %v1207_v30 = vsub.f32 %v1199_v23, %v1205_v29 }
 0x532   : > { %v1210_v31 = vmul.f32 1.442695, %v1207_v30 }
 0x533   : > { %v1326_v36 = vpop.permute.xlu1 %1325 }
 0x534   : > { %1856 = vpow2.f32 %v1210_v31  ;;  %v1331_v35 = vsel %vm788_vm2, %v1326_v36, 0 }
 0x537   : > { %v1324_v38 = vpop.permute.xlu1 %1323 }
 0x53a   : > { %v1855_v32 = vpop.eup %1854 }
 0x53b   : > { %v1212_v33 = vsel %vm788_vm2, %v1855_v32, 0.0 }
 0x53c   : > { %1213 = vadd.xlane.f32.xlu0 %v1212_v33 }
 0x53e   : > { %v1857_v34 = vpop.eup %1856 }
 0x53f   : > { %v1215_v37 = vsel %vm788_vm2, %v1857_v34, 0.0  ;;  %v1218_v28 = vpack.c.bf16 %v1857_v34, %v1855_v32  ;;  %v1683_v34 = vld [vmem:[%s2222_s13] ss:$0 sm:$0xff] }
 0x540   : > { %1216 = vadd.xlane.f32.xlu1 %v1215_v37 }
 0x541   : > { %1792 = vmatmul.mubr.msk.bf16.vlgmr.msra.gmra.mrb[20].mxu0 %vm788_vm2, %v1218_v28 }
 0x542   : > { %1802 = vmatpush3.bf16.xpose.msra.mxu0 %v1331_v35  ;;  %1803 = vmatprep.mubr.msk.bf16.mxu0 %vm1883_vm0, %v1882_v1 }
 0x543   : > { %1813 = vmatprep.subr.bf16.mxu0 %v1882_v1 }
 0x549   : > { %1804 = vmatmul.mubr.msk.bf16.vlgmr.msra.gmra.mrb[24].mxu0 %vm788_vm2, %v1324_v38 }
 0x54a   : > { %1815 = vmatprep.mubr.msk.bf16.mxu0 %vm1883_vm0, %v1882_v1  ;;  %1814 = vmatpush3.bf16.msra.mxu0 %v1456_v22 }
 0x5c9   : > { %v1214_v42 = vpop.xlane.xlu0 %1213 }
 0x5ca   : > { %1858 = vrcp.f32 %v1214_v42 }
 0x5cd   : > { %v1217_v43 = vpop.xlane.xlu1 %1216 }
 0x5ce   : > { %1860 = vrcp.f32 %v1217_v43 }
 0x5d4   : > { %v1859_v45 = vpop.eup %1858 }
 0x5d8   : > { %v1861_v47 = vpop.eup %1860 }
 0x614   : > { %v1261_v44 = vpop.f32.mrb[20].mxu0 }
 0x615   : > { %v1793_v46 = vpop.f32.mrb[21].mxu0  ;;  %v1270_v49 = vmul.f32 %v1859_v45, %v1261_v44 }
 0x616   : > { %v1264_v48 = vpop.f32.mrb[22].mxu0 }
 0x617   : > { %v1271_v50 = vmul.f32 %v1861_v47, %v1264_v48  ;;  %v1794_v51 = vpop.f32.mrb[23].mxu0 }
 0x619   : > { %v1272_v52 = vpack.c.bf16 %v1271_v50, %v1270_v49 }
 0x61b   : > { %1798 = vmatmul.mubr.msk.bf16.vlgmr.msra.gmra.mrb[20].mxu1 %vm788_vm2, %v1272_v52 }
 0x61c   : > { %v1367_v53 = vpop.f32.mrb[24].mxu0  ;;  %1809 = vmatprep.mubr.msk.bf16.mxu1 %vm1883_vm0, %v1882_v1 }
 0x61d   : > { %v1374_v54 = vmul.f32 0.35355338, %v1367_v53  ;;  %v1805_v55 = vpop.f32.mrb[25].mxu0 }
 0x61e   : > { %v1370_v57 = vpop.f32.mrb[26].mxu0 }
 0x61f   : > { %v1375_v58 = vmul.f32 0.35355338, %v1370_v57  ;;  %v1806_v59 = vpop.f32.mrb[27].mxu0  ;;  %v1376_v60 = vadd.f32 %v2079_v40, %v1374_v54 }
 0x621   : > { %v1378_v61 = vsel %vm788_vm2, %v1376_v60, -inf  ;;  %v1377_v62 = vadd.f32 %v2079_v40, %v1375_v58 }
 0x622   : > { %1379 = vmax.xlane.f32.xlu0 %v1378_v61 }
 0x623   : > { %v1381_v63 = vsel %vm788_vm2, %v1377_v62, -inf }
 0x626   : > { %1382 = vmax.xlane.f32.xlu0 %v1381_v63 }
 0x63c   : > { %1397 = vrot.lane.b32.xlu0 %v2088_v56, %s1886_s18 }
 0x6af   : > { %v1380_v0 = vpop.xlane.xlu0 %1379 }
 0x6b0   : > { %v1384_v1 = vsub.f32 %v1376_v60, %v1380_v0  ;;  %v1685_v0 = vld [vmem:[%s2224_s15] ss:$0 sm:$0xff] }
 0x6b2   : > { %v1386_v2 = vmul.f32 1.442695, %v1384_v1 }
 0x6b3   : > { %v1383_v3 = vpop.xlane.xlu0 %1382 }
 0x6b4   : > { %1862 = vpow2.f32 %v1386_v2  ;;  %v1385_v4 = vsub.f32 %v1377_v62, %v1383_v3  ;;  %v1684_v62 = vld [vmem:[%s2223_s14] ss:$0 sm:$0xff] }
 0x6b6   : > { %v1388_v5 = vmul.f32 1.442695, %v1385_v4 }
 0x6b7   : > { %v1398_v6 = vpop.permute.xlu0 %1397 }
 0x6b8   : > { %1864 = vpow2.f32 %v1388_v5  ;;  %v1403_v7 = vsel %vm868_vm3, %v1398_v6, 0 }
 0x6b9   : > { %1808 = vmatpush3.bf16.msra.mxu1 %v1403_v7 }
 0x6be   : > { %v1863_v40 = vpop.eup %1862 }
 0x6bf   : > { %v1390_v9 = vsel %vm788_vm2, %v1863_v40, 0.0 }
 0x6c0   : > { %1391 = vadd.xlane.f32.xlu0 %v1390_v9 }
 0x6c2   : > { %v1865_v12 = vpop.eup %1864 }
 0x6c3   : > { %v1393_v14 = vsel %vm788_vm2, %v1865_v12, 0.0  ;;  %v1396_v56 = vpack.c.bf16 %v1865_v12, %v1863_v40 }
 0x6c4   : > { %1394 = vadd.xlane.f32.xlu1 %v1393_v14 }
 0x6c5   : > { %1810 = vmatmul.mubr.msk.bf16.vlgmr.msra.gmra.mrb[24].mxu1 %vm788_vm2, %v1396_v56 }
 0x6ee   : > { %v1314_v15 = vpop.f32.mrb[20].mxu1 }
 0x6ef   : > { %v1321_v16 = vadd.f32 %v1314_v15, %v2137_v8  ;;  %v1799_v17 = vpop.f32.mrb[21].mxu1 }
 0x6f0   : > { %v1317_v18 = vpop.f32.mrb[22].mxu1 }
 0x6f1   : > { %v1322_v19 = vadd.f32 %v1317_v18, %v2139_v13  ;;  %v1800_v20 = vpop.f32.mrb[23].mxu1 }
 0x74d   : > { %v1392_v23 = vpop.xlane.xlu0 %1391 }
 0x74e   : > { %1866 = vrcp.f32 %v1392_v23 }
 0x751   : > { %v1395_v24 = vpop.xlane.xlu1 %1394 }
 0x752   : > { %1868 = vrcp.f32 %v1395_v24 }
 0x758   : > { %v1867_v26 = vpop.eup %1866 }
 0x75c   : > { %v1869_v8 = vpop.eup %1868 }
 0x798   : > { %v1439_v25 = vpop.f32.mrb[24].mxu1 }
 0x799   : > { %v1811_v27 = vpop.f32.mrb[25].mxu1  ;;  %v1448_v30 = vmul.f32 %v1867_v26, %v1439_v25 }
 0x79a   : > { %v1442_v29 = vpop.f32.mrb[26].mxu1 }
 0x79b   : > { %v1449_v31 = vmul.f32 %v1869_v8, %v1442_v29  ;;  %v1812_v13 = vpop.f32.mrb[27].mxu1 }
 0x79d   : > { %v1450_v32 = vpack.c.bf16 %v1449_v31, %v1448_v30 }
 0x79f   : > { %1816 = vmatmul.mubr.msk.bf16.vlgmr.msra.gmra.mrb[28].mxu0 %vm788_vm2, %v1450_v32 }
 0x872   : > { %v1492_v33 = vpop.f32.mrb[28].mxu0 }
 0x873   : > { %v1499_v36 = vadd.f32 %v1492_v33, %v1321_v16  ;;  %v1817_v37 = vpop.f32.mrb[29].mxu0 }
 0x874   : > { %v1495_v28 = vpop.f32.mrb[30].mxu0 }
 0x875   : > { %v1508_v35 = vadd.f32 %v1683_v34, %v1499_v36  ;;  %v1500_v38 = vadd.f32 %v1495_v28, %v1322_v19  ;;  %v1818_v39 = vpop.f32.mrb[31].mxu0 }
 0x877   : > { %v1509_v41 = vadd.f32 %v1683_v34, %v1500_v38  ;;  %v1510_v42 = vadd.f32 %v1508_v35, %v2023_v10 }
 0x879   : > { %v1512_v43 = vsel %vm607_vm1, %v1510_v42, 0.0  ;;  %v1511_v44 = vadd.f32 %v1509_v41, %v2025_v11 }
 0x87a   : > { %1513 = vadd.xlane.f32.xlu1 %v1512_v43 }
 0x87b   : > { %v1515_v45 = vsel %vm607_vm1, %v1511_v44, 0.0 }
 0x87e   : > { %1516 = vadd.xlane.f32.xlu1 %v1515_v45 }
 0x907   : > { %v1514_v46 = vpop.xlane.xlu1 %1513 }
 0x908   : > { %v1519_v47 = vmul.f32 0.03125, %v1514_v46 }
 0x90a   : > { %v1521_v48 = vsub.f32 %v1510_v42, %v1519_v47 }
 0x90b   : > { %v1517_v49 = vpop.xlane.xlu1 %1516 }
 0x90c   : > { %v1520_v50 = vmul.f32 0.03125, %v1517_v49  ;;  %v1523_v51 = vmul.f32 %v1521_v48, %v1521_v48 }
 0x90e   : > { %v1522_v52 = vsub.f32 %v1511_v44, %v1520_v50  ;;  %v1525_v53 = vsel %vm607_vm1, %v1523_v51, 0.0 }
 0x90f   : > { %1526 = vadd.xlane.f32.xlu1 %v1525_v53 }
 0x910   : > { %v1524_v54 = vmul.f32 %v1522_v52, %v1522_v52 }
 0x912   : > { %v1528_v10 = vsel %vm607_vm1, %v1524_v54, 0.0 }
 0x913   : > { %1529 = vadd.xlane.f32.xlu1 %v1528_v10 }
 0x99c   : > { %v1527_v11 = vpop.xlane.xlu1 %1526 }
 0x99d   : > { %v1531_v55 = vmul.f32 0.03125, %v1527_v11 }
 0x99f   : > { %v1533_v57 = vadd.f32 1e-05, %v1531_v55 }
 0x9a0   : > { %v1530_v58 = vpop.xlane.xlu1 %1529 }
 0x9a1   : > { %1870 = vrsqrt.f32 %v1533_v57  ;;  %v1532_v59 = vmul.f32 0.03125, %v1530_v58 }
 0x9a3   : > { %v1534_v60 = vadd.f32 1e-05, %v1532_v59 }
 0x9a5   : > { %1872 = vrsqrt.f32 %v1534_v60 }
 0x9ab   : > { %v1871_v61 = vpop.eup %1870 }
 0x9ac   : > { %v1537_v63 = vmul.f32 %v1871_v61, %v1521_v48 }
 0x9ae   : > { %v1546_v1 = vmul.f32 %v1684_v62, %v1537_v63 }
 0x9af   : > { %v1873_v2 = vpop.eup %1872 }
 0x9b0   : > { %v1555_v3 = vadd.f32 %v1685_v0, %v1546_v1  ;;  %v1538_v4 = vmul.f32 %v1873_v2, %v1522_v52 }
 0x9b2   : > { %1557 = vst.msk [vmem:[%s569_s17] sm:$0xff] %vm607_vm1, %v1555_v3  ;;  %v1547_v5 = vmul.f32 %v1684_v62, %v1538_v4 }
 0x9b4   : > { %v1556_v6 = vadd.f32 %v1685_v0, %v1547_v5 }
 0x9b6   : > { %1558 = vst.msk [vmem:[%s569_s17 + $0x8] sm:$0xff] %vm607_vm1, %v1556_v6 }
 0x9b7 PF: > { %s26_s21 = sadd.s32 1, %s1880_s21  }
 0x9b8   : > { %p23_p4 = scmp.ge.s32.totalorder %s26_s21, 4  }
 0x9ba   :  { %25 = sbr.rel (!%p23_p4) target bundleno = 2 (0x2), region = 123 }

// kernel: transformer_decoder_forward.11
= control target key start
LH: loop header
LB: loop body
LE: loop exit
PB: predicated region body
PF: predicated region fallthrough
CT: control target
= control target key end

     0   :  { %s1980_s21 = smov 0   ;;  %s2217_s0 = inlined_call_operand.vmem [shape: f32[2,16,32], index: 0, kind: input, shape index: {}, may-alias: {0,2,4}]   ;;  %s2218_s1 = inlined_call_operand.vmem [shape: f32[1,16,32], index: 1, kind: input, shape index: {}, may-alias: {1,3}]   ;;  %s2219_s2 = inlined_call_operand.vmem [shape: f32[2,16,32], index: 2, kind: input, shape index: {}, may-alias: {0,2,4}]   ;;  %s2220_s3 = inlined_call_operand.vmem [shape: f32[1,16,32], index: 3, kind: input, shape index: {}, may-alias: {1,3}]   ;;  %s2221_s4 = inlined_call_operand.vmem [shape: f32[2,16,32], index: 4, kind: input, shape index: {}, may-alias: {0,2,4}]   ;;  %s2222_s5 = inlined_call_operand.vmem [shape: f32[2,1,16], index: 5, kind: input, shape index: {}]   ;;  %s2223_s6 = inlined_call_operand.vmem [shape: bf16[32,32], index: 6, kind: input, shape index: {}]   ;;  %s2224_s7 = inlined_call_operand.vmem [shape: f32[1,32], index: 7, kind: input, shape index: {}]   ;;  %s2225_s8 = inlined_call_operand.vmem [shape: bf16[32,32], index: 8, kind: input, shape index: {}]   ;;  %s2226_s9 = inlined_call_operand.vmem [shape: f32[1,32], index: 9, kind: input, shape index: {}]   ;;  %s2227_s10 = inlined_call_operand.vmem [shape: bf16[32,32], index: 10, kind: input, shape index: {}]   ;;  %s2228_s11 = inlined_call_operand.vmem [shape: f32[1,32], index: 11, kind: input, shape index: {}]   ;;  %s2229_s12 = inlined_call_operand.vmem [shape: bf16[32,32], index: 12, kind: input, shape index: {}]   ;;  %s2230_s13 = inlined_call_operand.vmem [shape: f32[1,32], index: 13, kind: input, shape index: {}]   ;;  %s2231_s14 = inlined_call_operand.vmem [shape: f32[1,32], index: 14, kind: input, shape index: {}]   ;;  %s2232_s15 = inlined_call_operand.vmem [shape: f32[1,32], index: 15, kind: input, shape index: {}]   ;;  %s2233_s16 = inlined_call_operand.vmem [shape: f32[2,16,32], index: 16, kind: output, shape index: {}]  }
   0x1   :  { %2234 = sst [smem:[#allocation2_spill]] %s2217_s0 }
   0x2 LB: > { %s1651_s22 = sadd.s32 4294967295, %s1888_s21   ;;  %p1655_p0 = scmp.ge.s32.totalorder %s1888_s21, 1  ;;  %s1888_s21 = sphi %s1980_s21, %s26_s21  }
   0x3   : > { %p490_p1 = scmp.lt.s32.totalorder %s1888_s21, 3 }
   0x5   : > { %p491_p2 = pnand %p1655_p0, %p490_p1 }
   0x6   : > { %v1840_v0 = vld [vmem:[%s2225_s8] sm:$0xff] (!%p491_p2)   ;;  %v1890_v1 = vmov (!%p491_p2), 0.0   ;;  %v1841_v2 = vld [vmem:[%s2225_s8 + $0x8] sm:$0xff] (!%p491_p2)   ;;  %vm1891_vm0 = vmmov (!%p491_p2), 0   ;;  %p553_p3 = scmp.lt.s32.totalorder (!%p491_p2), %s1651_s22, 1  ;;  %s2235_s17 = sld [smem:[#allocation2_spill]] (!%p491_p2) }
   0x7   : > { %494 = sbr.rel (%p491_p2) target bundleno = 2489 (0x9b9), region = 84  ;;  %1739 = vmatprep.subr.bf16.mxu1 (!%p491_p2), %v1890_v1  ;;  %1731 = vmatprep.subr.bf16.mxu0 (!%p491_p2), %v1890_v1  ;;  %v1842_v3 = vld [vmem:[%s2223_s6] sm:$0xff] (!%p491_p2)   ;;  %v1843_v4 = vld [vmem:[%s2223_s6 + $0x8] sm:$0xff] (!%p491_p2)   ;;  %vm617_vm1 = vcmask (!%p491_p2), 261120   ;;  %vm800_vm2 = vcmask (!%p491_p2), 64512   ;;  %vm858_vm3 = vcmask (!%p491_p2), 130048  }
   0x8   : > { %1740 = vmatpush3.bf16.msra.mxu1 (!%p491_p2), %v1840_v0  ;;  %1743 = vmatprep.mubr.msk.bf16.mxu1 (!%p491_p2), %vm1891_vm0, %v1890_v1  ;;  %v586_v5 = vld [vmem:[%s2220_s3] sm:$0xff] (!%p491_p2)  ;;  %v587_v6 = vld [vmem:[%s2220_s3 + $0x8] sm:$0xff] (!%p491_p2)  ;;  %s1893_s26 = smov (!%p491_p2), 112   ;;  %vm1061_vm4 = vcmask (!%p491_p2), 1043456   ;;  %s1894_s0 = smov (!%p491_p2), 104  }
   0x9   : > { %1741 = vmatprep.subr.bf16.mxu1 (!%p491_p2), %v1890_v1  ;;  %1735 = vmatprep.mubr.msk.bf16.mxu0 (!%p491_p2), %vm1891_vm0, %v1890_v1  ;;  %v579_v7 = vld [vmem:[%s2218_s1] sm:$0xff] (!%p491_p2)  ;;  %v580_v8 = vld [vmem:[%s2218_s1 + $0x8] sm:$0xff] (!%p491_p2) }
   0xa   : > { %1732 = vmatpush3.bf16.msra.mxu0 (!%p491_p2), %v1842_v3  ;;  %v1664_v19 = vld [vmem:[%s2224_s7] ss:$0 sm:$0xff] (!%p491_p2)  ;;  %v1845_v34 = vld [vmem:[%s2227_s10 + $0x8] sm:$0xff] (!%p491_p2)  }
   0xb   : > { %1733 = vmatprep.subr.bf16.mxu0 (!%p491_p2), %v1890_v1  ;;  %v1668_v20 = vld [vmem:[%s2226_s9] ss:$0 sm:$0xff] (!%p491_p2) }
   0xc   : > { %1742 = vmatpush3.bf16.msra.mxu1 (!%p491_p2), %v1841_v2  ;;  %v1844_v27 = vld [vmem:[%s2227_s10] sm:$0xff] (!%p491_p2)  }
   0xd   : > { %1755 = vmatprep.subr.bf16.mxu1 (!%p491_p2), %v1890_v1  ;;  %v1672_v55 = vld [vmem:[%s2228_s11] ss:$0 sm:$0xff] (!%p491_p2) }
   0xe   : > { %s2237_s22 = smov (!%p553_p3, %s1651_s22), 1  ;;  %1734 = vmatpush3.bf16.msra.mxu0 %v1843_v4 }
   0xf   : > { %s2014_s18 = sshll.u32 %s2237_s22, 4  ;;  %1747 = vmatprep.subr.bf16.mxu0 %v1890_v1  ;;  %s570_s24 = scalar_lea.vmem %s2222_s5, %s2237_s22 }
  0x10   : > { %s562_s25 = scalar_lea.vmem %s2219_s2, %s2014_s18  ;;  %s557_s19 = scalar_lea.vmem %s2235_s17, %s2014_s18  ;;  %v2092_v45 = vld [vmem:[%s570_s24] ss:$0 sm:$0xff] }
  0x11   : > { %v584_v9 = vld [vmem:[%s562_s25] sm:$0xff]  ;;  %v585_v10 = vld [vmem:[%s562_s25 + $0x8] sm:$0xff]  ;;  %s567_s30 = scalar_lea.vmem %s2221_s4, %s2014_s18 }
  0x12   : > { %v588_v11 = vadd.f32 %v586_v5, %v584_v9  ;;  %v589_v12 = vadd.f32 %v587_v6, %v585_v10  ;;  %v2034_v13 = vld [vmem:[%s557_s19] sm:$0xff]  ;;  %v2036_v14 = vld [vmem:[%s557_s19 + $0x8] sm:$0xff]  ;;  %s1892_s19 = smov 120  }
  0x13   : > { %v581_v15 = vadd.f32 %v579_v7, %v2034_v13  ;;  %v582_v16 = vadd.f32 %v580_v8, %v2036_v14  ;;  %v591_v35 = vld [vmem:[%s567_s30] sm:$0xff]  ;;  %v592_v36 = vld [vmem:[%s567_s30 + $0x8] sm:$0xff] }
  0x14   : > { %v590_v17 = vpack.c.bf16 %v589_v12, %v588_v11  ;;  %v593_v40 = vpack.c.bf16 %v592_v36, %v591_v35  ;;  %v1057_v35 = vld [vmem:[%s2229_s12 + $0x4] sm:$0xf]  ;;  %v927_v36 = vld [vmem:[%s2229_s12] sm:$0xf] }
  0x15   : > { %v583_v18 = vpack.c.bf16 %v582_v16, %v581_v15 }
  0x16   : > { %1744 = vmatmul.mubr.msk.bf16.vlgmr.msra.gmra.mrb[0].mxu1 %vm617_vm1, %v590_v17 }
  0x17   : > { %1736 = vmatmul.mubr.msk.bf16.vlgmr.msra.gmra.mrb[0].mxu0 %vm617_vm1, %v583_v18  ;;  %1757 = vmatprep.mubr.msk.bf16.mxu1 %vm1891_vm0, %v1890_v1 }
  0x18   : > { %1751 = vmatprep.mubr.msk.bf16.mxu0 %vm1891_vm0, %v1890_v1  ;;  %1748 = vmatpush3.bf16.msra.mxu0 %v1844_v27 }
  0x19   : > { %1749 = vmatprep.subr.bf16.mxu0 %v1890_v1 }
  0x1c   : > { %1750 = vmatpush3.bf16.msra.mxu0 %v1845_v34 }
  0x1d   : > { %1761 = vmatprep.subr.bf16.mxu0 %v1890_v1 }
  0x1f   : > { %1752 = vmatmul.mubr.msk.bf16.vlgmr.msra.gmra.mrb[4].mxu0 %vm617_vm1, %v593_v40  ;;  %v1110_v40 = vsel %vm1061_vm4, %v927_v36, 0 }
  0x20   : > { %1763 = vmatprep.mubr.msk.bf16.mxu0 %vm1891_vm0, %v1890_v1 }
  0xe9   : > { %v722_v21 = vpop.f32.mrb[0].mxu1 }
  0xea   : > { %v1745_v22 = vpop.f32.mrb[1].mxu1  ;;  %v655_v23 = vpop.f32.mrb[0].mxu0  ;;  %v723_v28 = vadd.f32 %v1668_v20, %v722_v21 }
  0xeb   : > { %v725_v24 = vpop.f32.mrb[2].mxu1  ;;  %v656_v25 = vadd.f32 %v1664_v19, %v655_v23  ;;  %v1737_v26 = vpop.f32.mrb[1].mxu0 }
  0xec   : > { %v726_v29 = vadd.f32 %v1668_v20, %v725_v24  ;;  %v1746_v30 = vpop.f32.mrb[3].mxu1  ;;  %v658_v31 = vpop.f32.mrb[2].mxu0 }
  0xed   : > { %v659_v32 = vadd.f32 %v1664_v19, %v658_v31  ;;  %v1738_v33 = vpop.f32.mrb[3].mxu0 }
  0xee   : > { %v2063_v37 = vpack.c.bf16 %v726_v29, %v723_v28 }
  0xef   : > { %v2066_v38 = vpack.c.bf16 %v659_v32, %v656_v25 }
  0xf0   : > { %932 = vrot.lane.b32.xlu0 %v2063_v37, %s1892_s19  ;;  %v805_v39 = vsel %vm800_vm2, %v2063_v37, 0 }
  0xf1   : > { %1756 = vmatpush3.bf16.xpose.msra.mxu1 %v805_v39  ;;  %v1063_v39 = vsel %vm1061_vm4, %v1057_v35, 0 }
  0xf2   : > { %1767 = vmatprep.subr.bf16.mxu1 %v1890_v1  ;;  %v789_v56 = vpop.f32.mrb[4].mxu0 }
  0xf3   : > { %v1753_v57 = vpop.f32.mrb[5].mxu0  ;;  %v790_v58 = vadd.f32 %v1672_v55, %v789_v56 }
  0xf4   : > { %929 = vrot.lane.b32.xlu0 %v2066_v38, %s1892_s19  ;;  %v792_v59 = vpop.f32.mrb[6].mxu0 }
  0xf5   : > { %v793_v60 = vadd.f32 %v1672_v55, %v792_v59  ;;  %v1754_v61 = vpop.f32.mrb[7].mxu0 }
  0xf7   : > { %v2101_v62 = vpack.c.bf16 %v793_v60, %v790_v58 }
  0xf8   : > { %1758 = vmatmul.mubr.msk.bf16.vlgmr.msra.gmra.mrb[4].mxu1 %vm800_vm2, %v2066_v38 }
  0xf9   : > { %1769 = vmatprep.mubr.msk.bf16.mxu1 %vm1891_vm0, %v1890_v1  ;;  %1762 = vmatpush3.bf16.msra.mxu0 %v2101_v62 }
  0xfa   : > { %1773 = vmatprep.subr.bf16.mxu0 %v1890_v1 }
 0x162   : > { %v933_v41 = vpop.permute.xlu0 %932 }
 0x163   : > { %v938_v42 = vsel %vm800_vm2, %v933_v41, 0 }
 0x164   : > { %1768 = vmatpush3.bf16.xpose.msra.mxu1 %v938_v42 }
 0x165   : > { %1779 = vmatprep.subr.bf16.mxu1 %v1890_v1 }
 0x166   : > { %v930_v43 = vpop.permute.xlu0 %929 }
 0x16b   : > { %1770 = vmatmul.mubr.msk.bf16.vlgmr.msra.gmra.mrb[8].mxu1 %vm800_vm2, %v930_v43 }
 0x16c   : > { %1781 = vmatprep.mubr.msk.bf16.mxu1 %vm1891_vm0, %v1890_v1  ;;  %1780 = vmatpush3.bf16.msra.mxu1 %v1063_v39 }
 0x16d   : > { %1791 = vmatprep.subr.bf16.mxu1 %v1890_v1 }
 0x1cb   : > { %v841_v44 = vpop.f32.mrb[4].mxu1 }
 0x1cc   : > { %v848_v46 = vmul.f32 0.35355338, %v841_v44  ;;  %v1759_v47 = vpop.f32.mrb[5].mxu1 }
 0x1cd   : > { %v844_v48 = vpop.f32.mrb[6].mxu1 }
 0x1ce   : > { %v849_v49 = vmul.f32 0.35355338, %v844_v48  ;;  %v1760_v50 = vpop.f32.mrb[7].mxu1  ;;  %v856_v51 = vadd.f32 %v2092_v45, %v848_v46 }
 0x1d0   : > { %v859_v52 = vsel %vm858_vm3, %v856_v51, -inf  ;;  %v857_v53 = vadd.f32 %v2092_v45, %v849_v49 }
 0x1d1   : > { %860 = vmax.xlane.f32.xlu1 %v859_v52 }
 0x1d2   : > { %v862_v54 = vsel %vm858_vm3, %v857_v53, -inf }
 0x1d5   : > { %863 = vmax.xlane.f32.xlu1 %v862_v54 }
 0x23e   : > { %v974_v63 = vpop.f32.mrb[8].mxu1 }
 0x23f   : > { %v981_v0 = vmul.f32 0.35355338, %v974_v63  ;;  %v1771_v2 = vpop.f32.mrb[9].mxu1 }
 0x240   : > { %v977_v3 = vpop.f32.mrb[10].mxu1 }
 0x241   : > { %v982_v4 = vmul.f32 0.35355338, %v977_v3  ;;  %v1772_v5 = vpop.f32.mrb[11].mxu1  ;;  %v983_v6 = vadd.f32 %v2092_v45, %v981_v0 }
 0x243   : > { %v985_v7 = vsel %vm858_vm3, %v983_v6, -inf  ;;  %v984_v8 = vadd.f32 %v2092_v45, %v982_v4 }
 0x244   : > { %986 = vmax.xlane.f32.xlu0 %v985_v7 }
 0x245   : > { %v988_v9 = vsel %vm858_vm3, %v984_v8, -inf }
 0x246   : > { %989 = vmax.xlane.f32.xlu1 %v988_v9 }
 0x257   : > { %1005 = vrot.lane.b32.xlu1 %v2101_v62, %s1892_s19 }
 0x25e   : > { %v861_v10 = vpop.xlane.xlu1 %860 }
 0x25f   : > { %v865_v11 = vsub.f32 %v856_v51, %v861_v10 }
 0x261   : > { %v867_v12 = vmul.f32 1.442695, %v865_v11 }
 0x262   : > { %v864_v15 = vpop.xlane.xlu1 %863 }
 0x263   : > { %v866_v16 = vsub.f32 %v857_v53, %v864_v15  ;;  %1846 = vpow2.f32 %v867_v12 }
 0x265   : > { %v869_v17 = vmul.f32 1.442695, %v866_v16 }
 0x267   : > { %1848 = vpow2.f32 %v869_v17 }
 0x26d   : > { %v1847_v18 = vpop.eup %1846 }
 0x26e   : > { %v871_v33 = vsel %vm858_vm3, %v1847_v18, 0.0 }
 0x271   : > { %v1849_v19 = vpop.eup %1848 }
 0x272   : > { %v877_v20 = vpack.c.bf16 %v1849_v19, %v1847_v18  ;;  %v874_v34 = vsel %vm858_vm3, %v1849_v19, 0.0 }
 0x274   : > { %1764 = vmatmul.mubr.msk.bf16.vlgmr.msra.gmra.mrb[8].mxu0 %vm858_vm3, %v877_v20 }
 0x275   : > { %1775 = vmatprep.mubr.msk.bf16.mxu0 %vm1891_vm0, %v1890_v1 }
 0x2d1   : > { %v987_v21 = vpop.xlane.xlu0 %986 }
 0x2d2   : > { %v991_v22 = vsub.f32 %v983_v6, %v987_v21 }
 0x2d3   : > { %v990_v23 = vpop.xlane.xlu1 %989 }
 0x2d4   : > { %v993_v24 = vmul.f32 1.442695, %v991_v22  ;;  %v992_v25 = vsub.f32 %v984_v8, %v990_v23 }
 0x2d6   : > { %1850 = vpow2.f32 %v993_v24  ;;  %v995_v26 = vmul.f32 1.442695, %v992_v25 }
 0x2d7   : > { %v1006_v27 = vpop.permute.xlu1 %1005 }
 0x2d8   : > { %1852 = vpow2.f32 %v995_v26  ;;  %1774 = vmatpush3.bf16.msra.mxu0 %v1006_v27 }
 0x2d9   : > { %1785 = vmatprep.subr.bf16.mxu0 %v1890_v1 }
 0x2e0   : > { %v1851_v28 = vpop.eup %1850 }
 0x2e1   : > { %v997_v29 = vsel %vm858_vm3, %v1851_v28, 0.0 }
 0x2e2   : > { %v1853_v30 = vpop.eup %1852  ;;  %998 = vadd.xlane.f32.xlu1 %v997_v29 }
 0x2e3   : > { %v1000_v31 = vsel %vm858_vm3, %v1853_v30, 0.0  ;;  %v1003_v32 = vpack.c.bf16 %v1853_v30, %v1851_v28 }
 0x2e4   : > { %1001 = vadd.xlane.f32.xlu0 %v1000_v31 }
 0x2e5   : > { %1776 = vmatmul.mubr.msk.bf16.vlgmr.msra.gmra.mrb[12].mxu0 %vm858_vm3, %v1003_v32 }
 0x2e6   : > { %872 = vadd.xlane.f32.xlu1 %v871_v33  ;;  %1787 = vmatprep.mubr.msk.bf16.mxu0 %vm1891_vm0, %v1890_v1 }
 0x2e7   : > { %1786 = vmatpush3.bf16.msra.mxu0 %v1110_v40 }
 0x2e8   : > { %1797 = vmatprep.subr.bf16.mxu0 %v1890_v1 }
 0x2f7   : > { %1227 = vrot.lane.b32.xlu1 %v2101_v62, %s1893_s26 }
 0x2fa   : > { %1155 = vrot.lane.b32.xlu0 %v2063_v37, %s1893_s26 }
 0x2fe   : > { %1153 = vrot.lane.b32.xlu0 %v2066_v38, %s1893_s26 }
 0x31d   : > { %875 = vadd.xlane.f32.xlu0 %v874_v34 }
 0x347   : > { %v915_v41 = vpop.f32.mrb[8].mxu0 }
 0x348   : > { %v1765_v42 = vpop.f32.mrb[9].mxu0 }
 0x349   : > { %v918_v43 = vpop.f32.mrb[10].mxu0  ;;  %v1279_v42 = vld [vmem:[%s2229_s12 + $0x8] sm:$0xf] }
 0x34a   : > { %v1766_v44 = vpop.f32.mrb[11].mxu0 }
 0x36f   : > { %v999_v47 = vpop.xlane.xlu1 %998 }
 0x371   : > { %v1002_v46 = vpop.xlane.xlu0 %1001 }
 0x373   : > { %v873_v49 = vpop.xlane.xlu1 %872 }
 0x374   : > { %1854 = vrcp.f32 %v873_v49 }
 0x375   : > { %v1156_v48 = vpop.permute.xlu0 %1155 }
 0x376   : > { %v1161_v5 = vsel %vm800_vm2, %v1156_v48, 0 }
 0x377   : > { %v1228_v61 = vpop.permute.xlu1 %1227 }
 0x379   : > { %v1154_v50 = vpop.permute.xlu0 %1153 }
 0x37e   : > { %v1855_v52 = vpop.eup %1854 }
 0x37f   : > { %v924_v54 = vmul.f32 %v1855_v52, %v915_v41 }
 0x3aa   : > { %v876_v51 = vpop.xlane.xlu0 %875 }
 0x3ab   : > { %1856 = vrcp.f32 %v876_v51 }
 0x3ac   : > { %1858 = vrcp.f32 %v999_v47 }
 0x3ad   : > { %1860 = vrcp.f32 %v1002_v46 }
 0x3b5   : > { %v1857_v53 = vpop.eup %1856 }
 0x3b6   : > { %v925_v55 = vmul.f32 %v1857_v53, %v918_v43  ;;  %v1859_v58 = vpop.eup %1858  ;;  %v1284_v43 = vsel %vm1061_vm4, %v1279_v42, 0 }
 0x3b7   : > { %v1861_v60 = vpop.eup %1860 }
 0x3b8   : > { %v1045_v56 = vpop.f32.mrb[12].mxu0  ;;  %v926_v57 = vpack.c.bf16 %v925_v55, %v924_v54 }
 0x3b9   : > { %v1777_v59 = vpop.f32.mrb[13].mxu0  ;;  %v1054_v0 = vmul.f32 %v1859_v58, %v1045_v56 }
 0x3ba   : > { %v1048_v63 = vpop.f32.mrb[14].mxu0  ;;  %1788 = vmatmul.mubr.msk.bf16.vlgmr.msra.gmra.mrb[16].mxu0 %vm800_vm2, %v926_v57 }
 0x3bb   : > { %v1055_v2 = vmul.f32 %v1861_v60, %v1048_v63  ;;  %1798 = vmatpush3.bf16.msra.mxu0 %v1228_v61  ;;  %v1778_v3 = vpop.f32.mrb[15].mxu0  ;;  %1799 = vmatprep.mubr.msk.bf16.mxu0 %vm1891_vm0, %v1890_v1 }
 0x3bc   : > { %1809 = vmatprep.subr.bf16.mxu0 %v1890_v1 }
 0x3bd   : > { %v1056_v4 = vpack.c.bf16 %v1055_v2, %v1054_v0 }
 0x3bf   : > { %1782 = vmatmul.mubr.msk.bf16.vlgmr.msra.gmra.mrb[12].mxu1 %vm800_vm2, %v1056_v4 }
 0x3c0   : > { %1792 = vmatpush3.bf16.xpose.msra.mxu1 %v1161_v5  ;;  %1793 = vmatprep.mubr.msk.bf16.mxu1 %vm1891_vm0, %v1890_v1 }
 0x3c1   : > { %1803 = vmatprep.subr.bf16.mxu1 %v1890_v1 }
 0x3c7   : > { %1794 = vmatmul.mubr.msk.bf16.vlgmr.msra.gmra.mrb[16].mxu1 %vm800_vm2, %v1154_v50 }
 0x3c8   : > { %1805 = vmatprep.mubr.msk.bf16.mxu1 %vm1891_vm0, %v1890_v1  ;;  %1804 = vmatpush3.bf16.msra.mxu1 %v1284_v43 }
 0x3c9   : > { %1815 = vmatprep.subr.bf16.mxu1 %v1890_v1 }
 0x48d   : > { %v1146_v6 = vpop.f32.mrb[16].mxu0 }
 0x48e   : > { %v1789_v7 = vpop.f32.mrb[17].mxu0 }
 0x48f   : > { %v1149_v8 = vpop.f32.mrb[18].mxu0 }
 0x490   : > { %v1790_v9 = vpop.f32.mrb[19].mxu0 }
 0x492   : > { %v1099_v10 = vpop.f32.mrb[12].mxu1 }
 0x493   : > { %v2147_v11 = vadd.f32 %v1146_v6, %v1099_v10  ;;  %v1783_v12 = vpop.f32.mrb[13].mxu1 }
 0x494   : > { %v1102_v15 = vpop.f32.mrb[14].mxu1 }
 0x495   : > { %v2149_v16 = vadd.f32 %v1149_v8, %v1102_v15  ;;  %v1784_v17 = vpop.f32.mrb[15].mxu1 }
 0x49a   : > { %v1197_v18 = vpop.f32.mrb[16].mxu1 }
 0x49b   : > { %v1204_v19 = vmul.f32 0.35355338, %v1197_v18  ;;  %v1795_v20 = vpop.f32.mrb[17].mxu1 }
 0x49c   : > { %v1200_v21 = vpop.f32.mrb[18].mxu1 }
 0x49d   : > { %v1205_v22 = vmul.f32 0.35355338, %v1200_v21  ;;  %v1796_v23 = vpop.f32.mrb[19].mxu1  ;;  %v1206_v24 = vadd.f32 %v2092_v45, %v1204_v19 }
 0x49e   : > { %v1455_v23 = vld [vmem:[%s2229_s12 + $0xc] sm:$0xf] }
 0x49f   : > { %v1208_v25 = vsel %vm858_vm3, %v1206_v24, -inf  ;;  %v1207_v26 = vadd.f32 %v2092_v45, %v1205_v22 }
 0x4a0   : > { %1209 = vmax.xlane.f32.xlu1 %v1208_v25 }
 0x4a1   : > { %v1211_v27 = vsel %vm858_vm3, %v1207_v26, -inf }
 0x4a4   : > { %1212 = vmax.xlane.f32.xlu1 %v1211_v27 }
 0x4b5   : > { %1331 = vrot.lane.b32.xlu1 %v2063_v37, %s1894_s0 }
 0x4b9   : > { %1329 = vrot.lane.b32.xlu1 %v2066_v38, %s1894_s0 }
 0x52d   : > { %v1210_v28 = vpop.xlane.xlu1 %1209 }
 0x52e   : > { %v1214_v29 = vsub.f32 %v1206_v24, %v1210_v28  ;;  %v1460_v24 = vsel %vm1061_vm4, %v1455_v23, 0 }
 0x530   : > { %v1216_v30 = vmul.f32 1.442695, %v1214_v29 }
 0x531   : > { %v1213_v31 = vpop.xlane.xlu1 %1212 }
 0x532   : > { %1862 = vpow2.f32 %v1216_v30  ;;  %v1215_v32 = vsub.f32 %v1207_v26, %v1213_v31 }
 0x534   : > { %v1218_v33 = vmul.f32 1.442695, %v1215_v32 }
 0x535   : > { %v1332_v39 = vpop.permute.xlu1 %1331 }
 0x536   : > { %1864 = vpow2.f32 %v1218_v33  ;;  %v1337_v38 = vsel %vm800_vm2, %v1332_v39, 0 }
 0x539   : > { %v1330_v41 = vpop.permute.xlu1 %1329 }
 0x53c   : > { %v1863_v34 = vpop.eup %1862 }
 0x53d   : > { %v1220_v35 = vsel %vm858_vm3, %v1863_v34, 0.0 }
 0x53e   : > { %1221 = vadd.xlane.f32.xlu0 %v1220_v35  ;;  %v1689_v35 = vld [vmem:[%s2230_s13] ss:$0 sm:$0xff] }
 0x540   : > { %v1865_v36 = vpop.eup %1864 }
 0x541   : > { %v1223_v40 = vsel %vm858_vm3, %v1865_v36, 0.0  ;;  %v1226_v37 = vpack.c.bf16 %v1865_v36, %v1863_v34 }
 0x542   : > { %1224 = vadd.xlane.f32.xlu1 %v1223_v40 }
 0x543   : > { %1800 = vmatmul.mubr.msk.bf16.vlgmr.msra.gmra.mrb[20].mxu0 %vm858_vm3, %v1226_v37 }
 0x544   : > { %1810 = vmatpush3.bf16.xpose.msra.mxu0 %v1337_v38  ;;  %1811 = vmatprep.mubr.msk.bf16.mxu0 %vm1891_vm0, %v1890_v1 }
 0x545   : > { %1821 = vmatprep.subr.bf16.mxu0 %v1890_v1 }
 0x54b   : > { %1812 = vmatmul.mubr.msk.bf16.vlgmr.msra.gmra.mrb[24].mxu0 %vm800_vm2, %v1330_v41 }
 0x54c   : > { %1823 = vmatprep.mubr.msk.bf16.mxu0 %vm1891_vm0, %v1890_v1  ;;  %1822 = vmatpush3.bf16.msra.mxu0 %v1460_v24 }
 0x5cb   : > { %v1222_v44 = vpop.xlane.xlu0 %1221 }
 0x5cc   : > { %1866 = vrcp.f32 %v1222_v44 }
 0x5cf   : > { %v1225_v46 = vpop.xlane.xlu1 %1224 }
 0x5d0   : > { %1868 = vrcp.f32 %v1225_v46 }
 0x5d6   : > { %v1867_v48 = vpop.eup %1866 }
 0x5da   : > { %v1869_v50 = vpop.eup %1868 }
 0x616   : > { %v1267_v47 = vpop.f32.mrb[20].mxu0 }
 0x617   : > { %v1801_v49 = vpop.f32.mrb[21].mxu0  ;;  %v1276_v52 = vmul.f32 %v1867_v48, %v1267_v47 }
 0x618   : > { %v1270_v51 = vpop.f32.mrb[22].mxu0 }
 0x619   : > { %v1277_v53 = vmul.f32 %v1869_v50, %v1270_v51  ;;  %v1802_v54 = vpop.f32.mrb[23].mxu0 }
 0x61b   : > { %v1278_v55 = vpack.c.bf16 %v1277_v53, %v1276_v52 }
 0x61d   : > { %1806 = vmatmul.mubr.msk.bf16.vlgmr.msra.gmra.mrb[20].mxu1 %vm800_vm2, %v1278_v55 }
 0x61e   : > { %v1373_v56 = vpop.f32.mrb[24].mxu0  ;;  %1817 = vmatprep.mubr.msk.bf16.mxu1 %vm1891_vm0, %v1890_v1 }
 0x61f   : > { %v1380_v57 = vmul.f32 0.35355338, %v1373_v56  ;;  %v1813_v58 = vpop.f32.mrb[25].mxu0 }
 0x620   : > { %v1376_v59 = vpop.f32.mrb[26].mxu0 }
 0x621   : > { %v1381_v60 = vmul.f32 0.35355338, %v1376_v59  ;;  %v1814_v61 = vpop.f32.mrb[27].mxu0  ;;  %v1382_v63 = vadd.f32 %v2092_v45, %v1380_v57 }
 0x623   : > { %v1384_v0 = vsel %vm858_vm3, %v1382_v63, -inf  ;;  %v1383_v2 = vadd.f32 %v2092_v45, %v1381_v60 }
 0x624   : > { %1385 = vmax.xlane.f32.xlu0 %v1384_v0  ;;  %v1690_v0 = vld [vmem:[%s2231_s14] ss:$0 sm:$0xff] }
 0x625   : > { %v1387_v3 = vsel %vm858_vm3, %v1383_v2, -inf }
 0x628   : > { %1388 = vmax.xlane.f32.xlu0 %v1387_v3  ;;  %v1691_v3 = vld [vmem:[%s2232_s15] ss:$0 sm:$0xff] }
 0x63e   : > { %1403 = vrot.lane.b32.xlu0 %v2101_v62, %s1894_s0  ;;  %s575_s0 = scalar_lea.vmem %s2233_s16, %s2014_s18 }
 0x6b1   : > { %v1386_v4 = vpop.xlane.xlu0 %1385 }
 0x6b2   : > { %v1390_v1 = vsub.f32 %v1382_v63, %v1386_v4 }
 0x6b4   : > { %v1392_v5 = vmul.f32 1.442695, %v1390_v1 }
 0x6b5   : > { %v1389_v6 = vpop.xlane.xlu0 %1388 }
 0x6b6   : > { %1870 = vpow2.f32 %v1392_v5  ;;  %v1391_v7 = vsub.f32 %v1383_v2, %v1389_v6 }
 0x6b8   : > { %v1394_v8 = vmul.f32 1.442695, %v1391_v7 }
 0x6b9   : > { %v1404_v9 = vpop.permute.xlu0 %1403 }
 0x6ba   : > { %1872 = vpow2.f32 %v1394_v8  ;;  %1816 = vmatpush3.bf16.msra.mxu1 %v1404_v9 }
 0x6c0   : > { %v1871_v10 = vpop.eup %1870 }
 0x6c1   : > { %v1396_v45 = vsel %vm858_vm3, %v1871_v10, 0.0 }
 0x6c2   : > { %1397 = vadd.xlane.f32.xlu0 %v1396_v45 }
 0x6c4   : > { %v1873_v12 = vpop.eup %1872 }
 0x6c5   : > { %v1399_v15 = vsel %vm858_vm3, %v1873_v12, 0.0  ;;  %v1402_v17 = vpack.c.bf16 %v1873_v12, %v1871_v10 }
 0x6c6   : > { %1400 = vadd.xlane.f32.xlu1 %v1399_v15 }
 0x6c7   : > { %1818 = vmatmul.mubr.msk.bf16.vlgmr.msra.gmra.mrb[24].mxu1 %vm858_vm3, %v1402_v17 }
 0x6f0   : > { %v1320_v62 = vpop.f32.mrb[20].mxu1 }
 0x6f1   : > { %v1327_v18 = vadd.f32 %v1320_v62, %v2147_v11  ;;  %v1807_v19 = vpop.f32.mrb[21].mxu1 }
 0x6f2   : > { %v1323_v20 = vpop.f32.mrb[22].mxu1 }
 0x6f3   : > { %v1328_v21 = vadd.f32 %v1323_v20, %v2149_v16  ;;  %v1808_v22 = vpop.f32.mrb[23].mxu1 }
 0x74f   : > { %v1398_v25 = vpop.xlane.xlu0 %1397 }
 0x750   : > { %1874 = vrcp.f32 %v1398_v25 }
 0x753   : > { %v1401_v26 = vpop.xlane.xlu1 %1400 }
 0x754   : > { %1876 = vrcp.f32 %v1401_v26 }
 0x75a   : > { %v1875_v28 = vpop.eup %1874 }
 0x75e   : > { %v1877_v11 = vpop.eup %1876 }
 0x79a   : > { %v1443_v27 = vpop.f32.mrb[24].mxu1 }
 0x79b   : > { %v1819_v29 = vpop.f32.mrb[25].mxu1  ;;  %v1452_v31 = vmul.f32 %v1875_v28, %v1443_v27 }
 0x79c   : > { %v1446_v30 = vpop.f32.mrb[26].mxu1 }
 0x79d   : > { %v1453_v32 = vmul.f32 %v1877_v11, %v1446_v30  ;;  %v1820_v16 = vpop.f32.mrb[27].mxu1 }
 0x79f   : > { %v1454_v33 = vpack.c.bf16 %v1453_v32, %v1452_v31 }
 0x7a1   : > { %1824 = vmatmul.mubr.msk.bf16.vlgmr.msra.gmra.mrb[28].mxu0 %vm800_vm2, %v1454_v33 }
 0x874   : > { %v1496_v34 = vpop.f32.mrb[28].mxu0 }
 0x875   : > { %v1503_v36 = vadd.f32 %v1496_v34, %v1327_v18  ;;  %v1825_v39 = vpop.f32.mrb[29].mxu0 }
 0x876   : > { %v1499_v40 = vpop.f32.mrb[30].mxu0 }
 0x877   : > { %v1512_v37 = vadd.f32 %v1689_v35, %v1503_v36  ;;  %v1504_v38 = vadd.f32 %v1499_v40, %v1328_v21  ;;  %v1826_v41 = vpop.f32.mrb[31].mxu0 }
 0x879   : > { %v1513_v42 = vadd.f32 %v1689_v35, %v1504_v38  ;;  %v1514_v43 = vadd.f32 %v1512_v37, %v2034_v13 }
 0x87b   : > { %v1516_v44 = vsel %vm617_vm1, %v1514_v43, 0.0  ;;  %v1515_v46 = vadd.f32 %v1513_v42, %v2036_v14 }
 0x87c   : > { %1517 = vadd.xlane.f32.xlu1 %v1516_v44 }
 0x87d   : > { %v1519_v47 = vsel %vm617_vm1, %v1515_v46, 0.0 }
 0x880   : > { %1520 = vadd.xlane.f32.xlu1 %v1519_v47 }
 0x909   : > { %v1518_v48 = vpop.xlane.xlu1 %1517 }
 0x90a   : > { %v1523_v49 = vmul.f32 0.03125, %v1518_v48 }
 0x90c   : > { %v1525_v50 = vsub.f32 %v1514_v43, %v1523_v49 }
 0x90d   : > { %v1521_v51 = vpop.xlane.xlu1 %1520 }
 0x90e   : > { %v1524_v52 = vmul.f32 0.03125, %v1521_v51  ;;  %v1527_v53 = vmul.f32 %v1525_v50, %v1525_v50 }
 0x910   : > { %v1526_v54 = vsub.f32 %v1515_v46, %v1524_v52  ;;  %v1529_v55 = vsel %vm617_vm1, %v1527_v53, 0.0 }
 0x911   : > { %1530 = vadd.xlane.f32.xlu1 %v1529_v55 }
 0x912   : > { %v1528_v56 = vmul.f32 %v1526_v54, %v1526_v54 }
 0x914   : > { %v1532_v13 = vsel %vm617_vm1, %v1528_v56, 0.0 }
 0x915   : > { %1533 = vadd.xlane.f32.xlu1 %v1532_v13 }
 0x99e   : > { %v1531_v14 = vpop.xlane.xlu1 %1530 }
 0x99f   : > { %v1535_v57 = vmul.f32 0.03125, %v1531_v14 }
 0x9a1   : > { %v1537_v58 = vadd.f32 1e-05, %v1535_v57 }
 0x9a2   : > { %v1534_v59 = vpop.xlane.xlu1 %1533 }
 0x9a3   : > { %1878 = vrsqrt.f32 %v1537_v58  ;;  %v1536_v60 = vmul.f32 0.03125, %v1534_v59 }
 0x9a5   : > { %v1538_v61 = vadd.f32 1e-05, %v1536_v60 }
 0x9a7   : > { %1880 = vrsqrt.f32 %v1538_v61 }
 0x9ad   : > { %v1879_v63 = vpop.eup %1878 }
 0x9ae   : > { %v1541_v2 = vmul.f32 %v1879_v63, %v1525_v50 }
 0x9b0   : > { %v1550_v4 = vmul.f32 %v1690_v0, %v1541_v2 }
 0x9b1   : > { %v1881_v1 = vpop.eup %1880 }
 0x9b2   : > { %v1559_v5 = vadd.f32 %v1691_v3, %v1550_v4  ;;  %v1542_v6 = vmul.f32 %v1881_v1, %v1526_v54 }
 0x9b4   : > { %1561 = vst.msk [vmem:[%s575_s0] sm:$0xff] %vm617_vm1, %v1559_v5  ;;  %v1551_v7 = vmul.f32 %v1690_v0, %v1542_v6 }
 0x9b6   : > { %v1560_v8 = vadd.f32 %v1691_v3, %v1551_v7 }
 0x9b8   : > { %1562 = vst.msk [vmem:[%s575_s0 + $0x8] sm:$0xff] %vm617_vm1, %v1560_v8 }
 0x9b9 PF: > { %s26_s21 = sadd.s32 1, %s1888_s21  }
 0x9ba   : > { %p23_p4 = scmp.ge.s32.totalorder %s26_s21, 4  }
 0x9bc   :  { %25 = sbr.rel (!%p23_p4) target bundleno = 2 (0x2), region = 123 }

// kernel: transformer_decoder_forward.13
= control target key start
LH: loop header
LB: loop body
LE: loop exit
PB: predicated region body
PF: predicated region fallthrough
CT: control target
= control target key end

     0   :  { %12 = vsyncpa [#allocation3], 0  ;;  %s1005_s0 = inlined_call_operand.vmem [shape: f32[32,32], index: 0, kind: input, shape index: {}]   ;;  %s1006_s1 = inlined_call_operand.vmem [shape: bf16[32,128], index: 1, kind: input, shape index: {}]   ;;  %s1007_s2 = inlined_call_operand.vmem [shape: f32[1,128], index: 2, kind: input, shape index: {}]   ;;  %s1008_s3 = inlined_call_operand.vmem [shape: bf16[128,32], index: 3, kind: input, shape index: {}]   ;;  %s1009_s4 = inlined_call_operand.vmem [shape: f32[1,32], index: 4, kind: input, shape index: {}]   ;;  %s1010_s5 = inlined_call_operand.vmem [shape: f32[1,32], index: 5, kind: input, shape index: {}]   ;;  %s1011_s6 = inlined_call_operand.vmem [shape: f32[1,32], index: 6, kind: input, shape index: {}]   ;;  %s1012_s7 = inlined_call_operand.hbm [shape: f32[32,32], index: 7, kind: output, shape index: {}]  }
   0x1   :  { %14 = vsyncpa [#allocation3 + $0x1], 0  ;;  %s846_s24 = smov 0   ;;  %s848_s25 = smov 0  }
   0x2   :  { %s850_s26 = smov 0   ;;  %s852_s27 = smov 0  }
   0x3 LB: > { %s867_s28 = sadd.s32 4294967295, %s799_s27   ;;  %s608_s29 = sadd.s32 4294967294, %s799_s27   ;;  %s799_s27 = sphi %s852_s27, %s1018_s27   ;;  %s795_s26 = sphi %s850_s26, %s1017_s26   ;;  %s791_s25 = sphi %s848_s25, %s1016_s25   ;;  %s787_s24 = sphi %s846_s24, %s1015_s24  }
   0x4   : > { %s871_s30 = sadd.s32 1, %s799_s27   ;;  %s179_s8 = sadd.s32 1, %s795_s26 }
   0x5   : > { %s176_s9 = ssub.s32 %s799_s27, %s871_s30  ;;  %p189_p0 = scmp.ne.s32.totalorder %s795_s26, %s791_s25 }
   0x6   : > { %p177_p1 = scmp.eq.s32.totalorder %s176_s9, 0  ;;  %p190_p2 = scmp.eq.s32.totalorder %s867_s28, 1 }
   0x7   : > { %p195_p3 = scmp.ne.s32.totalorder %s791_s25, %s787_s24  ;;  %p196_p4 = scmp.eq.s32.totalorder %s608_s29, 1 }
   0x8   : > { %s882_s10 = scalar_select %p177_p1, %s795_s26, %s179_s8  }
   0x9   : > { %p884_p5 = por %p190_p2, %p189_p0  ;;  %p888_p6 = por %p196_p4, %p195_p3 }
   0xa   : > { %p611_p7 = scmp.ge.s32.totalorder %s799_s27, 1  ;;  %p241_p8 = scmp.lt.s32.totalorder %s799_s27, 3 }
   0xc   : > { %p242_p9 = pnand %p611_p7, %p241_p8 }
   0xd   : > { %v719_v0 = vld [vmem:[%s1006_s1] sm:$0xff] (!%p242_p9)   ;;  %v801_v1 = vmov (!%p242_p9), 0.0   ;;  %v720_v2 = vld [vmem:[%s1006_s1 + $0x8] sm:$0xff] (!%p242_p9)   ;;  %vm802_vm0 = vmmov (!%p242_p9), 0   ;;  %s613_s17 = sshll.u32 (!%p242_p9), %s867_s28, 1  ;;  %vm307_vm1 = vcmask (!%p242_p9), 261120  }
   0xe   : > { %245 = sbr.rel (%p242_p9) target bundleno = 818 (0x332), region = 48  ;;  %648 = vmatprep.subr.bf16.mxu0 (!%p242_p9), %v801_v1  ;;  %656 = vmatprep.subr.bf16.mxu1 (!%p242_p9), %v801_v1  ;;  %p274_p10 = scmp.lt.s32.totalorder (!%p242_p9), %s613_s17, 3  ;;  %v721_v6 = vld [vmem:[%s1008_s3] sm:$0xff] (!%p242_p9)   ;;  %v722_v7 = vld [vmem:[%s1008_s3 + $0x8] sm:$0xff] (!%p242_p9)   ;;  %v723_v8 = vld [vmem:[%s1008_s3 + $0x10] sm:$0xff] (!%p242_p9)  }
   0xf   : > { %649 = vmatpush3.bf16.msra.mxu0 (!%p242_p9), %v719_v0  ;;  %652 = vmatprep.mubr.msk.bf16.mxu0 (!%p242_p9), %vm802_vm0, %v801_v1  ;;  %v724_v9 = vld [vmem:[%s1008_s3 + $0x18] sm:$0xff] (!%p242_p9)   ;;  %v725_v10 = vld [vmem:[%s1008_s3 + $0x20] sm:$0xff] (!%p242_p9)   ;;  %v726_v11 = vld [vmem:[%s1008_s3 + $0x28] sm:$0xff] (!%p242_p9)   ;;  %s270_s14 = sand.u32 (!%p242_p9), 1, %s791_s25   ;;  %s635_s20 = sshll.u32 (!%p242_p9), %s867_s28, 8 }
  0x10   : > { %650 = vmatprep.subr.bf16.mxu0 (!%p242_p9), %v801_v1  ;;  %672 = vmatprep.mubr.msk.bf16.mxu1 (!%p242_p9), %vm802_vm0, %v801_v1  ;;  %v727_v12 = vld [vmem:[%s1008_s3 + $0x30] sm:$0xff] (!%p242_p9)   ;;  %v728_v13 = vld [vmem:[%s1008_s3 + $0x38] sm:$0xff] (!%p242_p9)   ;;  %v615_v14 = vld [vmem:[%s1007_s2] ss:$0 sm:$0xff] (!%p242_p9)  ;;  %s959_s8 = scalar_lea.hbm (!%p242_p9), %s1012_s7, %s635_s20  ;;  %s964_s9 = scalar_lea.sflag (!%p242_p9), [#allocation3], %s270_s14 }
  0x11   : > { %657 = vmatpush3.bf16.msra.mxu1 (!%p242_p9), %v721_v6  ;;  %v619_v40 = vld [vmem:[%s1009_s4] ss:$0 sm:$0xff] (!%p242_p9)  ;;  %s803_s13 = smov (!%p242_p9), [#allocation2]  }
  0x12   : > { %658 = vmatprep.subr.bf16.mxu1 (!%p242_p9), %v801_v1  ;;  %v629_v6 = vld [vmem:[%s1011_s6] ss:$0 sm:$0xff] (!%p242_p9)  ;;  %s741_s15 = sshll.u32 (!%p242_p9), %s803_s13, 4  ;;  %s742_s15 = int_to_ptr.vmem [resolvable:$false] %s741_s15 }
  0x13   : > { %651 = vmatpush3.bf16.msra.mxu0 (!%p242_p9), %v720_v2  ;;  %s743_s16 = scalar_lea.vmem (!%p242_p9), %s742_s15, 512 }
  0x15   : > { %s1020_s17 = smov (!%p274_p10, %s613_s17), 3  ;;  %659 = vmatpush3.bf16.msra.mxu1 %v722_v7 }
  0x16   : > { %s614_s18 = sshll.u32 %s1020_s17, 3  ;;  %660 = vmatprep.subr.bf16.mxu1 %v801_v1  ;;  %s612_s17 = sshll.u32 %s270_s14, 4 }
  0x17   : > { %s277_s21 = scalar_lea.vmem %s1005_s0, %s614_s18 }
  0x18   : > { %v904_v3 = vld [vmem:[%s277_s21] sm:$0xff]  ;;  %v906_v4 = vld [vmem:[%s277_s21 + $0x8] sm:$0xff]  ;;  %s272_s21 = scalar_lea.vmem [#allocation2], %s612_s17 }
  0x19   : > { %v283_v5 = vpack.c.bf16 %v906_v4, %v904_v3  ;;  %661 = vmatpush3.bf16.msra.mxu1 %v723_v8  ;;  %s546_s22 = sshll.u32 %s272_s21, 4  ;;  %s961_s22 = int_to_ptr.vmem [resolvable:$true] %s546_s22 }
  0x1a   : > { %662 = vmatprep.subr.bf16.mxu1 %v801_v1  ;;  %s737_s28 = scalar_lea.vmem %s961_s22, 256  ;;  %p744_p0 = scmp.lt.s32.totalorder %s961_s22, %s742_s15 }
  0x1b   : > { %653 = vmatmul.mubr.msk.bf16.vlgmr.msra.gmra.mrb[0].mxu0 %vm307_vm1, %v283_v5  ;;  %p738_p11 = scmp.ne.s32.totalorder %s961_s22, %s737_s28  ;;  %p745_p1 = scmp.lt.s32.totalorder %s743_s16, %s737_s28 }
  0x1d   : > { %663 = vmatpush3.bf16.msra.mxu1 %v724_v9  ;;  %p739_p12 = pnand %p738_p11, %p884_p5  ;;  %p746_p2 = por %p745_p1, %p744_p0 }
  0x1e   : > { %664 = vmatprep.subr.bf16.mxu1 %v801_v1 }
  0x1f   : > { %p740_p13 = pneg %p739_p12 }
  0x21   : > { %665 = vmatpush3.bf16.msra.mxu1 %v725_v10  ;;  %p747_p3 = pnand %p746_p2, %p740_p13 }
  0x22   : > { %666 = vmatprep.subr.bf16.mxu1 %v801_v1 }
  0x25   : > { %667 = vmatpush3.bf16.msra.mxu1 %v726_v11 }
  0x26   : > { %668 = vmatprep.subr.bf16.mxu1 %v801_v1 }
  0x29   : > { %669 = vmatpush3.bf16.msra.mxu1 %v727_v12 }
  0x2a   : > { %670 = vmatprep.subr.bf16.mxu1 %v801_v1 }
  0x2d   : > { %671 = vmatpush3.bf16.msra.mxu1 %v728_v13 }
  0xee   : > { %v345_v15 = vpop.f32.mrb[0].mxu0 }
  0xef   : > { %v346_v16 = vadd.f32 %v615_v14, %v345_v15  ;;  %v654_v17 = vpop.f32.mrb[1].mxu0 }
  0xf0   : > { %v348_v18 = vpop.f32.mrb[2].mxu0 }
  0xf1   : > { %v354_v19 = vmul.f32 0.044715, %v346_v16  ;;  %v349_v20 = vadd.f32 %v615_v14, %v348_v18  ;;  %v655_v21 = vpop.f32.mrb[3].mxu0  ;;  %v352_v34 = vmul.f32 0.5, %v346_v16 }
  0xf3   : > { %v356_v22 = vmul.f32 %v354_v19, %v346_v16  ;;  %v355_v23 = vmul.f32 0.044715, %v349_v20  ;;  %v353_v35 = vmul.f32 0.5, %v349_v20 }
  0xf5   : > { %v358_v24 = vmul.f32 %v356_v22, %v346_v16  ;;  %v357_v25 = vmul.f32 %v355_v23, %v349_v20 }
  0xf7   : > { %v359_v26 = vmul.f32 %v357_v25, %v349_v20  ;;  %v360_v27 = vadd.f32 %v358_v24, %v346_v16 }
  0xf9   : > { %v361_v28 = vadd.f32 %v359_v26, %v349_v20  ;;  %v362_v29 = vmul.f32 0.7978846, %v360_v27 }
  0xfb   : > { %v363_v30 = vmul.f32 0.7978846, %v361_v28  ;;  %729 = vtanh.f32 %v362_v29 }
  0xfd   : > { %731 = vtanh.f32 %v363_v30 }
 0x105   : > { %v730_v31 = vpop.eup %729 }
 0x106   : > { %v366_v32 = vadd.f32 1.0, %v730_v31 }
 0x107   : > { %v732_v33 = vpop.eup %731 }
 0x108   : > { %v367_v36 = vadd.f32 1.0, %v732_v33  ;;  %v368_v37 = vmul.f32 %v366_v32, %v352_v34 }
 0x10a   : > { %v369_v38 = vmul.f32 %v367_v36, %v353_v35 }
 0x10c   : > { %v370_v39 = vpack.c.bf16 %v369_v38, %v368_v37 }
 0x10e   : > { %673 = vmatmul.mubr.bf16.vlgmr.msra.gmra.mrb[0].mxu1 %v370_v39 }
 0x1e1   : > { %v476_v41 = vpop.f32.mrb[0].mxu1 }
 0x1e2   : > { %v477_v42 = vadd.f32 %v619_v40, %v476_v41  ;;  %v674_v43 = vpop.f32.mrb[1].mxu1 }
 0x1e3   : > { %v479_v44 = vpop.f32.mrb[2].mxu1 }
 0x1e4   : > { %v480_v45 = vadd.f32 %v619_v40, %v479_v44  ;;  %v675_v46 = vpop.f32.mrb[3].mxu1  ;;  %v483_v47 = vadd.f32 %v477_v42, %v904_v3 }
 0x1e6   : > { %v485_v48 = vsel %vm307_vm1, %v483_v47, 0.0  ;;  %v484_v49 = vadd.f32 %v480_v45, %v906_v4  ;;  %v628_v4 = vld [vmem:[%s1010_s5] ss:$0 sm:$0xff] }
 0x1e7   : > { %486 = vadd.xlane.f32.xlu0 %v485_v48 }
 0x1e8   : > { %v488_v50 = vsel %vm307_vm1, %v484_v49, 0.0 }
 0x1eb   : > { %489 = vadd.xlane.f32.xlu0 %v488_v50 }
 0x274   : > { %v487_v51 = vpop.xlane.xlu0 %486 }
 0x275   : > { %v492_v52 = vmul.f32 0.03125, %v487_v51 }
 0x277   : > { %v494_v53 = vsub.f32 %v483_v47, %v492_v52 }
 0x278   : > { %v490_v54 = vpop.xlane.xlu0 %489 }
 0x279   : > { %v493_v55 = vmul.f32 0.03125, %v490_v54  ;;  %v496_v56 = vmul.f32 %v494_v53, %v494_v53 }
 0x27b   : > { %v495_v57 = vsub.f32 %v484_v49, %v493_v55  ;;  %v498_v58 = vsel %vm307_vm1, %v496_v56, 0.0 }
 0x27c   : > { %499 = vadd.xlane.f32.xlu1 %v498_v58 }
 0x27d   : > { %v497_v59 = vmul.f32 %v495_v57, %v495_v57 }
 0x27f   : > { %v501_v60 = vsel %vm307_vm1, %v497_v59, 0.0 }
 0x280   : > { %502 = vadd.xlane.f32.xlu1 %v501_v60 }
 0x309   : > { %v500_v61 = vpop.xlane.xlu1 %499 }
 0x30a   : > { %v504_v62 = vmul.f32 0.03125, %v500_v61 }
 0x30c   : > { %v506_v63 = vadd.f32 1e-05, %v504_v62 }
 0x30d   : > { %v503_v0 = vpop.xlane.xlu1 %502 }
 0x30e   : > { %733 = vrsqrt.f32 %v506_v63  ;;  %v505_v1 = vmul.f32 0.03125, %v503_v0 }
 0x310   : > { %v507_v2 = vadd.f32 1e-05, %v505_v1 }
 0x312   : > { %735 = vrsqrt.f32 %v507_v2 }
 0x318   : > { %v734_v3 = vpop.eup %733 }
 0x319   : > { %v510_v5 = vmul.f32 %v734_v3, %v494_v53 }
 0x31b   : > { %v519_v7 = vmul.f32 %v628_v4, %v510_v5 }
 0x31c   : > { %v736_v8 = vpop.eup %735 }
 0x31d   : > { %v511_v9 = vmul.f32 %v736_v8, %v495_v57  ;;  %v528_v10 = vadd.f32 %v629_v6, %v519_v7 }
 0x31f   : > { %v520_v11 = vmul.f32 %v628_v4, %v511_v9  ;;  %530 = vst.msk [vmem:[%s272_s21] sm:$0xff] %vm307_vm1, %v528_v10 }
 0x321   : > { %v529_v12 = vadd.f32 %v629_v6, %v520_v11 }
 0x323   : > { %531 = vst.msk [vmem:[%s272_s21 + $0x8] sm:$0xff] %vm307_vm1, %v529_v12 }
 0x324   : > { %750 = shalt.err (!%p747_p3)
}
 0x325   : > { %s751_s14 = scalar_lea.hbm %s959_s8, 256  ;;  %s755_s19 = scalar_lea.hbm %s1012_s7, 512 }
 0x326   : > { %p752_p4 = scmp.ne.s32.totalorder %s959_s8, %s751_s14  ;;  %p756_p9 = scmp.lt.u32.totalorder %s959_s8, %s1012_s7 }
 0x327   : > { %p757_p10 = scmp.lt.u32.totalorder %s755_s19, %s751_s14  ;;  %p759_p12 = scmp.lt.u32.totalorder %s751_s14, %s959_s8 }
 0x328   : > { %p753_p7 = pnand %p752_p4, %p884_p5 }
 0x329   : > { %p758_p11 = por %p757_p10, %p756_p9 }
 0x32a   : > { %p754_p8 = pneg %p753_p7 }
 0x32b   : > { %p760_p13 = por %p759_p12, %p758_p11 }
 0x32d   : > { %p761_p0 = pnand %p760_p13, %p754_p8 }
 0x32f   : > { %764 = shalt.err (!%p761_p0)
}
 0x330   : > { %s804_s23 = smov 128   ;;  %s805_s29 = smov 8  }
 0x331   : > { %676 = dma.vmem_to_hbm [thread:$0]  (%p884_p5), %s961_s22, 256, %s959_s8, %s964_s9, %s804_s23, %s804_s23, %s805_s29  }
 0x332 PF: > { %p682_p1 = scmp.ge.s32.totalorder %s799_s27, 2  ;;  %s561_s28 = sand.u32 1, %s787_s24  }
 0x333   : > { %s562_s13 = scalar_lea.sflag [#allocation3], %s561_s28 }
 0x334   : > { %p679_p2 = pnand %p682_p1, %p888_p6 }
 0x336   : > { %782 = dma.done.wait (!%p679_p2), %s562_s13, 256  }
 0x337   : > { %784 = vsyncadd (!%p679_p2), %s562_s13, 4294967040  ;;  %p17_p3 = scmp.ge.s32.totalorder %s871_s30, 4   ;;  %s1015_s24 = smov %s791_s25 }
 0x338   : > { %s1016_s25 = smov %s795_s26  ;;  %s1017_s26 = smov %s882_s10 }
 0x339   : > { %s1018_s27 = smov %s871_s30  ;;  %19 = sbr.rel (!%p17_p3) target bundleno = 3 (0x3), region = 83 }
 0x340   :  { %567 = vsyncpa [#allocation3], 1 }
 0x341   :  { %569 = vsyncpa [#allocation3 + $0x1], 1 }

</bundles_post_ra>
